<compile_context>
chip_gen: v7x
topology: tpu7x:2x2x1
jax: 0.10.0
libtpu: 0.0.40
codegen_flags: <defaults>
</compile_context>

<pallas_src>
import math

import jax
import jax.numpy as jnp
from jax import lax
from jax.experimental import pallas as pl
from jax.experimental.pallas import tpu as pltpu

# ---------------------------------------------------------------------------
# cfg constants (typical RoITr values, deterministic)
# ---------------------------------------------------------------------------
POS_MARGIN = 0.1          # coarse_loss_positive_margin
NEG_MARGIN = 1.4          # coarse_loss_negative_margin
POS_OPTIMAL = 0.1         # coarse_loss_positive_optimal
NEG_OPTIMAL = 1.4         # coarse_loss_negative_optimal
LOG_SCALE = 40.0          # coarse_loss_log_scale
POSITIVE_OVERLAP = 0.1    # coarse_loss_positive_overlap

FINE_POSITIVE_RADIUS = 0.1  # fine_loss_positive_radius
# TODO(synk): mutual-nearest-neighbour (topk) filtering of gt_corr_map is not
# implemented; cfg.fine_loss_use_mnn = False is assumed.

WEIGHT_COARSE = 1.0       # coarse_loss_weight
WEIGHT_FINE = 1.0         # fine_loss_weight


# ---------------------------------------------------------------------------
# helpers
# ---------------------------------------------------------------------------
def _vmem_limit_bytes(work_bytes, frac=0.8, fallback_cap=64 << 20):
    """Scoped-VMEM limit sized to the working set, capped by physical VMEM."""
    try:
        cap = int(pltpu.get_tpu_info().vmem_capacity_bytes)
    except Exception:  # best effort; fall back to the v7x-safe 64 MiB figure
        cap = fallback_cap
    return int(min(max(2 * work_bytes, 8 << 20), int(frac * cap)))


def _logsumexp(x, axis):
    m = jnp.max(x, axis=axis, keepdims=True)
    return m + jnp.log(jnp.sum(jnp.exp(x - m), axis=axis, keepdims=True))


def _softplus(x):
    # numerically-stable softplus: max(x,0) + log(1 + exp(-|x|))
    return jnp.maximum(x, 0.0) + jnp.log(1.0 + jnp.exp(-jnp.abs(x)))


# ---------------------------------------------------------------------------
# Coarse matching loss kernel
# ---------------------------------------------------------------------------
def coarse_matching_loss_kernel(tgt_ref, src_ref, tgt_idx_ref, src_idx_ref,
                                ovl_row_ref, ovl_col_ref, loss_ref):
    tgt = tgt_ref[...]                       # (N, C) f32
    src = src_ref[...]                       # (M, C) f32
    n = tgt.shape[0]
    m = src.shape[0]
    k = tgt_idx_ref.shape[1]

    # ---- pairwise sqrt feature distances (square_distance + sqrt) ----------
    # HIGHEST precision: d2 = a^2 + b^2 - 2ab is cancellation-sensitive and
    # feeds the loss value directly.
    sq_t = jnp.sum(tgt * tgt, axis=-1, keepdims=True)              # (N, 1)
    sq_s = jnp.sum(src * src, axis=-1)[None, :]                    # (1, M)
    dots = lax.dot_general(tgt, src, (((1,), (1,)), ((), ())),
                           preferred_element_type=jnp.float32,
                           precision=lax.Precision.HIGHEST)        # (N, M)
    d2 = jnp.maximum(sq_t + sq_s - 2.0 * dots, 1e-12)
    feat_dists = jnp.sqrt(d2)                                      # (N, M)

    # ---- one-hot scatter operands (built in-kernel, no (N,M) HBM scatter) --
    row_iota = lax.broadcasted_iota(jnp.int32, (n, k), 0)
    t_onehot = (row_iota == tgt_idx_ref[...]).astype(jnp.float32)          # (N, K)
    col_iota = lax.broadcasted_iota(jnp.int32, (k, m), 1)
    s_onehot = (col_iota == src_idx_ref[...]).astype(jnp.float32)          # (K, M)

    # ---- K-length pre-processing in f32 (exact threshold behaviour) --------
    ovl_row = ovl_row_ref[...]                                     # (1, K)
    ovl_col = ovl_col_ref[...]                                     # (K, 1)
    pos_val_col = jnp.sqrt(jnp.where(ovl_col > POSITIVE_OVERLAP,
                                     ovl_col, 0.0))                # (K, 1) sqrt(ovl) if pos
    pos_ind_col = jnp.where(ovl_col > POSITIVE_OVERLAP, 1.0, 0.0)  # (K, 1)
    nz_col = jnp.where(ovl_col != 0.0, 1.0, 0.0)                   # (K, 1)
    pos_ind_row = jnp.where(ovl_row > POSITIVE_OVERLAP, 1.0, 0.0)  # (1, K)
    nz_row = jnp.where(ovl_row != 0.0, 1.0, 0.0)                   # (1, K)

    # ---- row/col validity from K-length operands (no (N,M) reductions) -----
    row_pos_cnt = jnp.sum(t_onehot * pos_ind_row, axis=1, keepdims=True)   # (N, 1)
    row_nz_cnt = jnp.sum(t_onehot * nz_row, axis=1, keepdims=True)         # (N, 1)
    col_pos_cnt = jnp.sum(s_onehot * pos_ind_col, axis=0, keepdims=True)   # (1, M)
    col_nz_cnt = jnp.sum(s_onehot * nz_col, axis=0, keepdims=True)         # (1, M)
    # row has a negative iff not every column carries a nonzero overlap.
    row_valid = jnp.where((row_pos_cnt > 0.0) & (row_nz_cnt < float(m)),
                          1.0, 0.0)                                # (N, 1)
    col_valid = jnp.where((col_pos_cnt > 0.0) & (col_nz_cnt < float(n)),
                          1.0, 0.0)                                # (1, M)

    # ---- positive branch (fully reduced before negatives: small live set) --
    # pos_scales scattered directly; default MXU precision (one-hots exact,
    # sqrt(overlap) weight tolerates ~2^-8 relative rounding).
    pos_scales = lax.dot_general(t_onehot, s_onehot * pos_val_col,
                                 (((1,), (0,)), ((), ())),
                                 preferred_element_type=jnp.float32)  # (N, M)
    pos_w = jnp.maximum(feat_dists - POS_OPTIMAL, 0.0) * pos_scales
    pos_arg = LOG_SCALE * (feat_dists - POS_MARGIN) * pos_w
    loss_pos_row = _logsumexp(pos_arg, axis=1)                     # (N, 1)
    loss_pos_col = _logsumexp(pos_arg, axis=0)                     # (1, M)

    # ---- negative branch ----------------------------------------------------
    # nz_nm is exactly 0/1 under default precision (values are 0/1).
    nz_nm = lax.dot_general(t_onehot, s_onehot * nz_col,
                            (((1,), (0,)), ((), ())),
                            preferred_element_type=jnp.float32)    # (N, M)
    neg_w = jnp.maximum(NEG_OPTIMAL - feat_dists, 0.0) * (1.0 - nz_nm)
    neg_arg = LOG_SCALE * (NEG_MARGIN - feat_dists) * neg_w
    loss_neg_row = _logsumexp(neg_arg, axis=1)                     # (N, 1)
    loss_neg_col = _logsumexp(neg_arg, axis=0)                     # (1, M)

    # ---- combine ------------------------------------------------------------
    loss_row = _softplus(loss_pos_row + loss_neg_row) / LOG_SCALE  # (N, 1)
    loss_col = _softplus(loss_pos_col + loss_neg_col) / LOG_SCALE  # (1, M)

    mean_row = (jnp.sum(loss_row * row_valid, keepdims=True) /
                jnp.sum(row_valid, keepdims=True))                 # (1, 1)
    mean_col = (jnp.sum(loss_col * col_valid, keepdims=True) /
                jnp.sum(col_valid, keepdims=True))                 # (1, 1)

    loss_ref[...] = 0.5 * (mean_row + mean_col)


def coarse_matching_loss(tgt_node_feats, src_node_feats,
                         gt_node_corr_indices, gt_node_corr_overlaps):
    """CoarseMatchingLoss forward. Returns scalar f32."""
    n, c = tgt_node_feats.shape
    m = src_node_feats.shape[0]
    k = gt_node_corr_indices.shape[0]

    tgt_idx = gt_node_corr_indices[:, 0].astype(jnp.int32).reshape(1, k)
    src_idx = gt_node_corr_indices[:, 1].astype(jnp.int32).reshape(k, 1)
    ovl = gt_node_corr_overlaps.astype(jnp.float32)
    ovl_row = ovl.reshape(1, k)
    ovl_col = ovl.reshape(k, 1)

    # ~4 live (N,M) f32 temporaries + one-hots + inputs.
    work_bytes = 4 * (n * c + m * c + n * k + k * m + 6 * n * m + 6 * (n + m))
    vmem_limit = _vmem_limit_bytes(work_bytes)
    # TODO(synk): for very large N,M on v7x (64 MiB VMEM), switch to a row-tiled
    # grid with running column-logsumexp accumulators ("parallel" row axis).

    out = pl.pallas_call(
        coarse_matching_loss_kernel,
        out_shape=jax.ShapeDtypeStruct((1, 1), jnp.float32),
        in_specs=[pl.BlockSpec(memory_space=pltpu.MemorySpace.VMEM)] * 6,
        out_specs=pl.BlockSpec(memory_space=pltpu.MemorySpace.VMEM),
        compiler_params=pltpu.CompilerParams(vmem_limit_bytes=vmem_limit),
    )(tgt_node_feats.astype(jnp.float32),
      src_node_feats.astype(jnp.float32),
      tgt_idx, src_idx, ovl_row, ovl_col)
    return out[0, 0]


# ---------------------------------------------------------------------------
# Fine matching loss kernel (whole batch / large batch tiles per grid step)
# ---------------------------------------------------------------------------
def fine_matching_loss_kernel(rt_ref, tgt_ref, srct_ref, tmask_ref, smask_ref,
                              sc_ref, loss_ref, sum_acc, cnt_acc):
    @pl.when(pl.program_id(0) == 0)
    def _():
        sum_acc[...] = jnp.zeros_like(sum_acc)
        cnt_acc[...] = jnp.zeros_like(cnt_acc)

    rt = rt_ref[...]          # (1, 12): [r00..r22, t0, t1, t2]
    tgt = tgt_ref[...]        # (bt, K1, 3)
    srct = srct_ref[...]      # (bt, 3, K2)
    tm = tmask_ref[...]       # (bt, K1, 1) 0/1
    sm = smask_ref[...]       # (bt, 1, K2) 0/1
    sc = sc_ref[...]          # (bt, K1+1, K2+1)

    k1 = tgt.shape[1]
    k2 = srct.shape[2]

    # rigid transform folded in-kernel (w = rot @ s + trans), pure f32 VPU math
    sx = srct[:, 0:1, :]
    sy = srct[:, 1:2, :]
    sz = srct[:, 2:3, :]                                            # (bt, 1, K2)
    wx = sx * rt[:, 0:1] + sy * rt[:, 1:2] + sz * rt[:, 2:3] + rt[:, 9:10]
    wy = sx * rt[:, 3:4] + sy * rt[:, 4:5] + sz * rt[:, 5:6] + rt[:, 10:11]
    wz = sx * rt[:, 6:7] + sy * rt[:, 7:8] + sz * rt[:, 8:9] + rt[:, 11:12]

    # pairwise squared distances, coordinate-unrolled (3-dim points, VPU only)
    dx = tgt[:, :, 0:1] - wx                                        # (bt, K1, K2)
    d2 = dx * dx
    dy = tgt[:, :, 1:2] - wy
    d2 = d2 + dy * dy
    dz = tgt[:, :, 2:3] - wz
    d2 = d2 + dz * dz

    pair_mask = tm * sm                                             # (bt, K1, K2)
    corr = jnp.where(d2 < FINE_POSITIVE_RADIUS ** 2, pair_mask, 0.0)

    # slack labels (rows/cols with a valid point but no correspondence)
    slack_row = jnp.where(jnp.sum(corr, axis=2, keepdims=True) == 0.0,
                          tm, 0.0)                                  # (bt, K1, 1)
    slack_col = jnp.where(jnp.sum(corr, axis=1, keepdims=True) == 0.0,
                          sm, 0.0)                                  # (bt, 1, K2)

    main_sc = sc[:, :k1, :k2]                                       # (bt, K1, K2)
    row_sc = sc[:, :k1, k2:k2 + 1]                                  # (bt, K1, 1)
    col_sc = sc[:, k1:k1 + 1, :k2]                                  # (bt, 1, K2)

    sel_sum = (jnp.sum(main_sc * corr) + jnp.sum(row_sc * slack_row)
               + jnp.sum(col_sc * slack_col))
    sel_cnt = jnp.sum(corr) + jnp.sum(slack_row) + jnp.sum(slack_col)

    sum_acc[...] = sum_acc[...] + sel_sum
    cnt_acc[...] = cnt_acc[...] + sel_cnt

    @pl.when(pl.program_id(0) == pl.num_programs(0) - 1)
    def _():
        # loss = -matching_scores[labels].mean() over the whole batch
        loss_ref[...] = -(sum_acc[...] / cnt_acc[...])


def fine_matching_loss(tgt_knn_points, src_knn_points, tgt_knn_masks,
                       src_knn_masks, matching_scores, rot, trans):
    """FineMatchingLoss forward. Returns scalar f32."""
    b, k1, _ = tgt_knn_points.shape
    k2 = src_knn_points.shape[1]

    # rot/trans flattened into one tiny lane vector consumed in-kernel.
    rt = jnp.concatenate([rot.astype(jnp.float32).reshape(-1),
                          trans.astype(jnp.float32).reshape(-1)]).reshape(1, 12)

    # coordinates-on-sublanes layout for src (single cheap wrapper transpose);
    # keeps all in-kernel slices as plain range slices.
    src_t = jnp.transpose(src_knn_points.astype(jnp.float32), (0, 2, 1))  # (B,3,K2)
    tmask = tgt_knn_masks.astype(jnp.float32).reshape(b, k1, 1)
    smask = src_knn_masks.astype(jnp.float32).reshape(b, 1, k2)

    # choose the largest batch tile (divisor of B) that fits comfortably.
    per_b_bytes = 4 * (3 * k1 + 3 * k2 + k1 + k2
                       + (k1 + 1) * (k2 + 1) + 6 * k1 * k2)
    budget = 8 << 20
    if b * per_b_bytes <= budget:
        bt = b
    else:
        cap = max(1, budget // per_b_bytes)
        bt = 1
        for d in range(min(b, cap), 0, -1):
            if b % d == 0:
                bt = d
                break
    nb = b // bt
    vmem_limit = _vmem_limit_bytes(2 * bt * per_b_bytes)
    # TODO(synk): on v7x, split large B across the two TensorCores ("parallel"
    # batch-tile axis with per-core partials) instead of a single arbitrary axis.

    out = pl.pallas_call(
        fine_matching_loss_kernel,
        grid=(nb,),
        out_shape=jax.ShapeDtypeStruct((1, 1), jnp.float32),
        in_specs=[
            pl.BlockSpec((1, 12), lambda i: (0, 0)),
            pl.BlockSpec((bt, k1, 3), lambda i: (i, 0, 0)),
            pl.BlockSpec((bt, 3, k2), lambda i: (i, 0, 0)),
            pl.BlockSpec((bt, k1, 1), lambda i: (i, 0, 0)),
            pl.BlockSpec((bt, 1, k2), lambda i: (i, 0, 0)),
            pl.BlockSpec((bt, k1 + 1, k2 + 1), lambda i: (i, 0, 0)),
        ],
        out_specs=pl.BlockSpec((1, 1), lambda i: (0, 0)),
        scratch_shapes=[pltpu.VMEM((1, 1), jnp.float32),
                        pltpu.VMEM((1, 1), jnp.float32)],
        compiler_params=pltpu.CompilerParams(
            dimension_semantics=("arbitrary",),
            vmem_limit_bytes=vmem_limit),
    )(rt, tgt_knn_points.astype(jnp.float32), src_t, tmask, smask,
      matching_scores.astype(jnp.float32))
    return out[0, 0]


# ---------------------------------------------------------------------------
# OverallLoss forward
# ---------------------------------------------------------------------------
def overall_loss(output_dict, data_dict):
    c_loss = coarse_matching_loss(
        output_dict['tgt_node_feats'], output_dict['src_node_feats'],
        output_dict['gt_node_corr_indices'], output_dict['gt_node_corr_overlaps'])
    f_loss = fine_matching_loss(
        output_dict['tgt_node_corr_knn_points'],
        output_dict['src_node_corr_knn_points'],
        output_dict['tgt_node_corr_knn_masks'],
        output_dict['src_node_corr_knn_masks'],
        output_dict['matching_scores'],
        data_dict['rot'][0], data_dict['trans'][0])
    loss = WEIGHT_COARSE * c_loss + WEIGHT_FINE * f_loss
    # TODO(synk): colabsfm.LOGGER tensorboard logging / GLOBAL_STEP side effects
    # are not replicated.
    return {'loss': loss, 'c_loss': c_loss, 'f_loss': f_loss,
            'o_loss': 0.0 * f_loss}


if __name__ == "__main__":
    key = jax.random.PRNGKey(0)
    keys = jax.random.split(key, 10)

    # ---- coarse-loss inputs -------------------------------------------------
    N, M, C, K = 128, 128, 32, 64
    tgt_feats = jax.random.normal(keys[0], (N, C), jnp.float32)
    src_feats = jax.random.normal(keys[1], (M, C), jnp.float32)
    tgt_idx = jax.random.permutation(keys[2], N)[:K]
    src_idx = jax.random.permutation(keys[3], M)[:K]
    gt_node_corr_indices = jnp.stack([tgt_idx, src_idx], axis=1).astype(jnp.int32)
    gt_node_corr_overlaps = jax.random.uniform(keys[4], (K,), jnp.float32,
                                               minval=0.2, maxval=1.0)

    # ---- fine-loss inputs ---------------------------------------------------
    B, K1, K2 = 4, 16, 16
    theta = 0.5
    rot = jnp.array([[math.cos(theta), -math.sin(theta), 0.0],
                     [math.sin(theta), math.cos(theta), 0.0],
                     [0.0, 0.0, 1.0]], jnp.float32)                 # (3, 3)
    trans = jnp.array([[0.1], [-0.2], [0.3]], jnp.float32)          # (3, 1)

    tgt_knn = jax.random.uniform(keys[5], (B, K1, 3), jnp.float32)
    noise = 0.02 * jax.random.normal(keys[6], (B, K2, 3), jnp.float32)
    world = tgt_knn[:, :K2, :] + noise
    # inverse rigid transform so that (src_knn @ rot.T + trans.T) ~ tgt_knn
    src_knn = jnp.matmul(world - trans.T[None, :], rot)
    tgt_masks = jax.random.uniform(keys[7], (B, K1)) > 0.2
    src_masks = jax.random.uniform(keys[8], (B, K2)) > 0.2
    matching_scores = jax.nn.log_softmax(
        jax.random.normal(keys[9], (B, K1 + 1, K2 + 1), jnp.float32), axis=-1)

    output_dict = {
        'tgt_node_feats': tgt_feats,
        'src_node_feats': src_feats,
        'gt_node_corr_indices': gt_node_corr_indices,
        'gt_node_corr_overlaps': gt_node_corr_overlaps,
        'tgt_node_corr_knn_points': tgt_knn,
        'src_node_corr_knn_points': src_knn,
        'tgt_node_corr_knn_masks': tgt_masks,
        'src_node_corr_knn_masks': src_masks,
        'matching_scores': matching_scores,
    }
    data_dict = {'rot': rot[None], 'trans': trans[None]}

    losses = overall_loss(output_dict, data_dict)
    loss = jax.block_until_ready(losses['loss'])
    assert jnp.isfinite(loss), f"loss is not finite: {loss}"
    assert jnp.isfinite(losses['c_loss']) and jnp.isfinite(losses['f_loss'])
    print("KERNEL_OK")
</pallas_src>

<mosaic_0001>
module attributes {stable_mosaic.version = 11 : i64} {
  func.func @coarse_matching_loss_kernel(%arg0: memref<128x32xf32, #tpu.memory_space<vmem>>, %arg1: memref<128x32xf32, #tpu.memory_space<vmem>>, %arg2: memref<1x64xi32, #tpu.memory_space<vmem>>, %arg3: memref<64x1xi32, #tpu.memory_space<vmem>>, %arg4: memref<1x64xf32, #tpu.memory_space<vmem>>, %arg5: memref<64x1xf32, #tpu.memory_space<vmem>>, %arg6: memref<1x1xf32, #tpu.memory_space<vmem>>) attributes {dimension_semantics = [], scalar_prefetch = 0 : i64, scratch_operands = 0 : i64, tpu.core_type = #tpu.core_type<tc>} {
    %c0 = arith.constant 0 : index
    %c0_0 = arith.constant 0 : index
    %0 = vector.load %arg0[%c0, %c0_0] : memref<128x32xf32, #tpu.memory_space<vmem>>, vector<128x32xf32>
    %c0_1 = arith.constant 0 : index
    %c0_2 = arith.constant 0 : index
    %1 = vector.load %arg1[%c0_1, %c0_2] : memref<128x32xf32, #tpu.memory_space<vmem>>, vector<128x32xf32>
    %2 = arith.mulf %0, %0 : vector<128x32xf32>
    %cst = arith.constant dense<0.000000e+00> : vector<128xf32>
    %3 = vector.multi_reduction <add>, %2, %cst [1] : vector<128x32xf32> to vector<128xf32>
    %4 = vector.shape_cast %3 : vector<128xf32> to vector<128x1xf32>
    %5 = arith.mulf %1, %1 : vector<128x32xf32>
    %cst_3 = arith.constant dense<0.000000e+00> : vector<128xf32>
    %6 = vector.multi_reduction <add>, %5, %cst_3 [1] : vector<128x32xf32> to vector<128xf32>
    %7 = vector.shape_cast %6 : vector<128xf32> to vector<1x128xf32>
    %cst_4 = arith.constant dense<0.000000e+00> : vector<128x128xf32>
    %8 = tpu.matmul %0, %1, %cst_4 {dimension_numbers = #tpu.dot_dimension_numbers<[1], [1], [0], [0], [0, 0, 1, 0], [], []>, precision = #tpu.contract_precision<fp32>} : vector<128x32xf32>, vector<128x32xf32>, vector<128x128xf32> -> vector<128x128xf32>
    %9 = vector.broadcast %4 : vector<128x1xf32> to vector<128x128xf32>
    %10 = vector.broadcast %7 : vector<1x128xf32> to vector<128x128xf32>
    %11 = arith.addf %9, %10 : vector<128x128xf32>
    %cst_5 = arith.constant 2.000000e+00 : f32
    %12 = vector.broadcast %cst_5 : f32 to vector<128x128xf32>
    %13 = arith.mulf %12, %8 : vector<128x128xf32>
    %14 = arith.subf %11, %13 : vector<128x128xf32>
    %cst_6 = arith.constant 9.99999996E-13 : f32
    %15 = vector.broadcast %cst_6 : f32 to vector<128x128xf32>
    %16 = arith.maximumf %14, %15 : vector<128x128xf32>
    %17 = math.sqrt %16 : vector<128x128xf32>
    %18 = tpu.iota {dimensions = array<i32: 0>} : vector<128x64xi32>
    %c0_7 = arith.constant 0 : index
    %c0_8 = arith.constant 0 : index
    %19 = vector.load %arg2[%c0_7, %c0_8] : memref<1x64xi32, #tpu.memory_space<vmem>>, vector<1x64xi32>
    %20 = vector.broadcast %19 : vector<1x64xi32> to vector<128x64xi32>
    %21 = arith.cmpi eq, %18, %20 : vector<128x64xi32>
    %22 = arith.extui %21 : vector<128x64xi1> to vector<128x64xi32>
    %23 = arith.sitofp %22 : vector<128x64xi32> to vector<128x64xf32>
    %24 = tpu.iota {dimensions = array<i32: 1>} : vector<64x128xi32>
    %c0_9 = arith.constant 0 : index
    %c0_10 = arith.constant 0 : index
    %25 = vector.load %arg3[%c0_9, %c0_10] : memref<64x1xi32, #tpu.memory_space<vmem>>, vector<64x1xi32>
    %26 = vector.broadcast %25 : vector<64x1xi32> to vector<64x128xi32>
    %27 = arith.cmpi eq, %24, %26 : vector<64x128xi32>
    %28 = arith.extui %27 : vector<64x128xi1> to vector<64x128xi32>
    %29 = arith.sitofp %28 : vector<64x128xi32> to vector<64x128xf32>
    %c0_11 = arith.constant 0 : index
    %c0_12 = arith.constant 0 : index
    %30 = vector.load %arg4[%c0_11, %c0_12] : memref<1x64xf32, #tpu.memory_space<vmem>>, vector<1x64xf32>
    %c0_13 = arith.constant 0 : index
    %c0_14 = arith.constant 0 : index
    %31 = vector.load %arg5[%c0_13, %c0_14] : memref<64x1xf32, #tpu.memory_space<vmem>>, vector<64x1xf32>
    %cst_15 = arith.constant 1.000000e-01 : f32
    %32 = vector.broadcast %cst_15 : f32 to vector<64x1xf32>
    %33 = arith.cmpf ogt, %31, %32 : vector<64x1xf32>
    %cst_16 = arith.constant 0.000000e+00 : f32
    %34 = vector.broadcast %cst_16 : f32 to vector<64x1xf32>
    %35 = arith.select %33, %31, %34 : vector<64x1xi1>, vector<64x1xf32>
    %36 = math.sqrt %35 : vector<64x1xf32>
    %cst_17 = arith.constant 1.000000e-01 : f32
    %37 = vector.broadcast %cst_17 : f32 to vector<64x1xf32>
    %38 = arith.cmpf ogt, %31, %37 : vector<64x1xf32>
    %cst_18 = arith.constant 1.000000e+00 : f32
    %cst_19 = arith.constant 0.000000e+00 : f32
    %39 = vector.broadcast %cst_18 : f32 to vector<64x1xf32>
    %40 = vector.broadcast %cst_19 : f32 to vector<64x1xf32>
    %41 = arith.select %38, %39, %40 : vector<64x1xi1>, vector<64x1xf32>
    %cst_20 = arith.constant 0.000000e+00 : f32
    %42 = vector.broadcast %cst_20 : f32 to vector<64x1xf32>
    %43 = arith.cmpf one, %31, %42 : vector<64x1xf32>
    %cst_21 = arith.constant 1.000000e+00 : f32
    %cst_22 = arith.constant 0.000000e+00 : f32
    %44 = vector.broadcast %cst_21 : f32 to vector<64x1xf32>
    %45 = vector.broadcast %cst_22 : f32 to vector<64x1xf32>
    %46 = arith.select %43, %44, %45 : vector<64x1xi1>, vector<64x1xf32>
    %cst_23 = arith.constant 1.000000e-01 : f32
    %47 = vector.broadcast %cst_23 : f32 to vector<1x64xf32>
    %48 = arith.cmpf ogt, %30, %47 : vector<1x64xf32>
    %cst_24 = arith.constant 1.000000e+00 : f32
    %cst_25 = arith.constant 0.000000e+00 : f32
    %49 = vector.broadcast %cst_24 : f32 to vector<1x64xf32>
    %50 = vector.broadcast %cst_25 : f32 to vector<1x64xf32>
    %51 = arith.select %48, %49, %50 : vector<1x64xi1>, vector<1x64xf32>
    %cst_26 = arith.constant 0.000000e+00 : f32
    %52 = vector.broadcast %cst_26 : f32 to vector<1x64xf32>
    %53 = arith.cmpf one, %30, %52 : vector<1x64xf32>
    %cst_27 = arith.constant 1.000000e+00 : f32
    %cst_28 = arith.constant 0.000000e+00 : f32
    %54 = vector.broadcast %cst_27 : f32 to vector<1x64xf32>
    %55 = vector.broadcast %cst_28 : f32 to vector<1x64xf32>
    %56 = arith.select %53, %54, %55 : vector<1x64xi1>, vector<1x64xf32>
    %57 = vector.broadcast %51 : vector<1x64xf32> to vector<128x64xf32>
    %58 = arith.mulf %23, %57 : vector<128x64xf32>
    %cst_29 = arith.constant dense<0.000000e+00> : vector<128xf32>
    %59 = vector.multi_reduction <add>, %58, %cst_29 [1] : vector<128x64xf32> to vector<128xf32>
    %60 = vector.shape_cast %59 : vector<128xf32> to vector<128x1xf32>
    %61 = vector.broadcast %56 : vector<1x64xf32> to vector<128x64xf32>
    %62 = arith.mulf %23, %61 : vector<128x64xf32>
    %cst_30 = arith.constant dense<0.000000e+00> : vector<128xf32>
    %63 = vector.multi_reduction <add>, %62, %cst_30 [1] : vector<128x64xf32> to vector<128xf32>
    %64 = vector.shape_cast %63 : vector<128xf32> to vector<128x1xf32>
    %65 = vector.broadcast %41 : vector<64x1xf32> to vector<64x128xf32>
    %66 = arith.mulf %29, %65 : vector<64x128xf32>
    %cst_31 = arith.constant dense<0.000000e+00> : vector<128xf32>
    %67 = vector.multi_reduction <add>, %66, %cst_31 [0] : vector<64x128xf32> to vector<128xf32>
    %68 = vector.shape_cast %67 : vector<128xf32> to vector<1x128xf32>
    %69 = vector.broadcast %46 : vector<64x1xf32> to vector<64x128xf32>
    %70 = arith.mulf %29, %69 : vector<64x128xf32>
    %cst_32 = arith.constant dense<0.000000e+00> : vector<128xf32>
    %71 = vector.multi_reduction <add>, %70, %cst_32 [0] : vector<64x128xf32> to vector<128xf32>
    %72 = vector.shape_cast %71 : vector<128xf32> to vector<1x128xf32>
    %cst_33 = arith.constant 0.000000e+00 : f32
    %73 = vector.broadcast %cst_33 : f32 to vector<128x1xf32>
    %74 = arith.cmpf ogt, %60, %73 : vector<128x1xf32>
    %cst_34 = arith.constant 1.280000e+02 : f32
    %75 = vector.broadcast %cst_34 : f32 to vector<128x1xf32>
    %76 = arith.cmpf olt, %64, %75 : vector<128x1xf32>
    %77 = arith.andi %74, %76 : vector<128x1xi1>
    %cst_35 = arith.constant 1.000000e+00 : f32
    %cst_36 = arith.constant 0.000000e+00 : f32
    %78 = vector.broadcast %cst_35 : f32 to vector<128x1xf32>
    %79 = vector.broadcast %cst_36 : f32 to vector<128x1xf32>
    %80 = arith.select %77, %78, %79 : vector<128x1xi1>, vector<128x1xf32>
    %cst_37 = arith.constant 0.000000e+00 : f32
    %81 = vector.broadcast %cst_37 : f32 to vector<1x128xf32>
    %82 = arith.cmpf ogt, %68, %81 : vector<1x128xf32>
    %cst_38 = arith.constant 1.280000e+02 : f32
    %83 = vector.broadcast %cst_38 : f32 to vector<1x128xf32>
    %84 = arith.cmpf olt, %72, %83 : vector<1x128xf32>
    %85 = arith.andi %82, %84 : vector<1x128xi1>
    %cst_39 = arith.constant 1.000000e+00 : f32
    %cst_40 = arith.constant 0.000000e+00 : f32
    %86 = vector.broadcast %cst_39 : f32 to vector<1x128xf32>
    %87 = vector.broadcast %cst_40 : f32 to vector<1x128xf32>
    %88 = arith.select %85, %86, %87 : vector<1x128xi1>, vector<1x128xf32>
    %89 = vector.broadcast %36 : vector<64x1xf32> to vector<64x128xf32>
    %90 = arith.mulf %29, %89 : vector<64x128xf32>
    %cst_41 = arith.constant dense<0.000000e+00> : vector<128x128xf32>
    %91 = tpu.matmul %23, %90, %cst_41 {dimension_numbers = #tpu.dot_dimension_numbers<[1], [0], [0], [1], [0, 0, 1, 1], [], []>} : vector<128x64xf32>, vector<64x128xf32>, vector<128x128xf32> -> vector<128x128xf32>
    %cst_42 = arith.constant 1.000000e-01 : f32
    %92 = vector.broadcast %cst_42 : f32 to vector<128x128xf32>
    %93 = arith.subf %17, %92 : vector<128x128xf32>
    %cst_43 = arith.constant 0.000000e+00 : f32
    %94 = vector.broadcast %cst_43 : f32 to vector<128x128xf32>
    %95 = arith.maximumf %93, %94 : vector<128x128xf32>
    %96 = arith.mulf %95, %91 : vector<128x128xf32>
    %cst_44 = arith.constant 1.000000e-01 : f32
    %97 = vector.broadcast %cst_44 : f32 to vector<128x128xf32>
    %98 = arith.subf %17, %97 : vector<128x128xf32>
    %cst_45 = arith.constant 4.000000e+01 : f32
    %99 = vector.broadcast %cst_45 : f32 to vector<128x128xf32>
    %100 = arith.mulf %99, %98 : vector<128x128xf32>
    %101 = arith.mulf %100, %96 : vector<128x128xf32>
    %cst_46 = arith.constant dense<0xFF800000> : vector<128xf32>
    %102 = vector.multi_reduction <maximumf>, %101, %cst_46 [1] : vector<128x128xf32> to vector<128xf32>
    %103 = vector.shape_cast %102 : vector<128xf32> to vector<128x1xf32>
    %104 = vector.broadcast %103 : vector<128x1xf32> to vector<128x128xf32>
    %105 = arith.subf %101, %104 : vector<128x128xf32>
    %106 = math.exp %105 : vector<128x128xf32>
    %cst_47 = arith.constant dense<0.000000e+00> : vector<128xf32>
    %107 = vector.multi_reduction <add>, %106, %cst_47 [1] : vector<128x128xf32> to vector<128xf32>
    %108 = vector.shape_cast %107 : vector<128xf32> to vector<128x1xf32>
    %109 = math.log %108 : vector<128x1xf32>
    %110 = arith.addf %103, %109 : vector<128x1xf32>
    %cst_48 = arith.constant dense<0xFF800000> : vector<128xf32>
    %111 = vector.multi_reduction <maximumf>, %101, %cst_48 [0] : vector<128x128xf32> to vector<128xf32>
    %112 = vector.shape_cast %111 : vector<128xf32> to vector<1x128xf32>
    %113 = vector.broadcast %112 : vector<1x128xf32> to vector<128x128xf32>
    %114 = arith.subf %101, %113 : vector<128x128xf32>
    %115 = math.exp %114 : vector<128x128xf32>
    %cst_49 = arith.constant dense<0.000000e+00> : vector<128xf32>
    %116 = vector.multi_reduction <add>, %115, %cst_49 [0] : vector<128x128xf32> to vector<128xf32>
    %117 = vector.shape_cast %116 : vector<128xf32> to vector<1x128xf32>
    %118 = math.log %117 : vector<1x128xf32>
    %119 = arith.addf %112, %118 : vector<1x128xf32>
    %120 = vector.broadcast %46 : vector<64x1xf32> to vector<64x128xf32>
    %121 = arith.mulf %29, %120 : vector<64x128xf32>
    %cst_50 = arith.constant dense<0.000000e+00> : vector<128x128xf32>
    %122 = tpu.matmul %23, %121, %cst_50 {dimension_numbers = #tpu.dot_dimension_numbers<[1], [0], [0], [1], [0, 0, 1, 1], [], []>} : vector<128x64xf32>, vector<64x128xf32>, vector<128x128xf32> -> vector<128x128xf32>
    %cst_51 = arith.constant 1.400000e+00 : f32
    %123 = vector.broadcast %cst_51 : f32 to vector<128x128xf32>
    %124 = arith.subf %123, %17 : vector<128x128xf32>
    %cst_52 = arith.constant 0.000000e+00 : f32
    %125 = vector.broadcast %cst_52 : f32 to vector<128x128xf32>
    %126 = arith.maximumf %124, %125 : vector<128x128xf32>
    %cst_53 = arith.constant 1.000000e+00 : f32
    %127 = vector.broadcast %cst_53 : f32 to vector<128x128xf32>
    %128 = arith.subf %127, %122 : vector<128x128xf32>
    %129 = arith.mulf %126, %128 : vector<128x128xf32>
    %cst_54 = arith.constant 1.400000e+00 : f32
    %130 = vector.broadcast %cst_54 : f32 to vector<128x128xf32>
    %131 = arith.subf %130, %17 : vector<128x128xf32>
    %cst_55 = arith.constant 4.000000e+01 : f32
    %132 = vector.broadcast %cst_55 : f32 to vector<128x128xf32>
    %133 = arith.mulf %132, %131 : vector<128x128xf32>
    %134 = arith.mulf %133, %129 : vector<128x128xf32>
    %cst_56 = arith.constant dense<0xFF800000> : vector<128xf32>
    %135 = vector.multi_reduction <maximumf>, %134, %cst_56 [1] : vector<128x128xf32> to vector<128xf32>
    %136 = vector.shape_cast %135 : vector<128xf32> to vector<128x1xf32>
    %137 = vector.broadcast %136 : vector<128x1xf32> to vector<128x128xf32>
    %138 = arith.subf %134, %137 : vector<128x128xf32>
    %139 = math.exp %138 : vector<128x128xf32>
    %cst_57 = arith.constant dense<0.000000e+00> : vector<128xf32>
    %140 = vector.multi_reduction <add>, %139, %cst_57 [1] : vector<128x128xf32> to vector<128xf32>
    %141 = vector.shape_cast %140 : vector<128xf32> to vector<128x1xf32>
    %142 = math.log %141 : vector<128x1xf32>
    %143 = arith.addf %136, %142 : vector<128x1xf32>
    %cst_58 = arith.constant dense<0xFF800000> : vector<128xf32>
    %144 = vector.multi_reduction <maximumf>, %134, %cst_58 [0] : vector<128x128xf32> to vector<128xf32>
    %145 = vector.shape_cast %144 : vector<128xf32> to vector<1x128xf32>
    %146 = vector.broadcast %145 : vector<1x128xf32> to vector<128x128xf32>
    %147 = arith.subf %134, %146 : vector<128x128xf32>
    %148 = math.exp %147 : vector<128x128xf32>
    %cst_59 = arith.constant dense<0.000000e+00> : vector<128xf32>
    %149 = vector.multi_reduction <add>, %148, %cst_59 [0] : vector<128x128xf32> to vector<128xf32>
    %150 = vector.shape_cast %149 : vector<128xf32> to vector<1x128xf32>
    %151 = math.log %150 : vector<1x128xf32>
    %152 = arith.addf %145, %151 : vector<1x128xf32>
    %153 = arith.addf %110, %143 : vector<128x1xf32>
    %cst_60 = arith.constant 0.000000e+00 : f32
    %154 = vector.broadcast %cst_60 : f32 to vector<128x1xf32>
    %155 = arith.maximumf %153, %154 : vector<128x1xf32>
    %156 = math.absf %153 : vector<128x1xf32>
    %cst_61 = arith.constant 0.000000e+00 : f32
    %157 = vector.broadcast %cst_61 : f32 to vector<128x1xf32>
    %158 = arith.subf %157, %156 : vector<128x1xf32>
    %159 = math.exp %158 : vector<128x1xf32>
    %cst_62 = arith.constant 1.000000e+00 : f32
    %160 = vector.broadcast %cst_62 : f32 to vector<128x1xf32>
    %161 = arith.addf %160, %159 : vector<128x1xf32>
    %162 = math.log %161 : vector<128x1xf32>
    %163 = arith.addf %155, %162 : vector<128x1xf32>
    %cst_63 = arith.constant 4.000000e+01 : f32
    %164 = vector.broadcast %cst_63 : f32 to vector<128x1xf32>
    %165 = arith.divf %163, %164 : vector<128x1xf32>
    %166 = arith.addf %119, %152 : vector<1x128xf32>
    %cst_64 = arith.constant 0.000000e+00 : f32
    %167 = vector.broadcast %cst_64 : f32 to vector<1x128xf32>
    %168 = arith.maximumf %166, %167 : vector<1x128xf32>
    %169 = math.absf %166 : vector<1x128xf32>
    %cst_65 = arith.constant 0.000000e+00 : f32
    %170 = vector.broadcast %cst_65 : f32 to vector<1x128xf32>
    %171 = arith.subf %170, %169 : vector<1x128xf32>
    %172 = math.exp %171 : vector<1x128xf32>
    %cst_66 = arith.constant 1.000000e+00 : f32
    %173 = vector.broadcast %cst_66 : f32 to vector<1x128xf32>
    %174 = arith.addf %173, %172 : vector<1x128xf32>
    %175 = math.log %174 : vector<1x128xf32>
    %176 = arith.addf %168, %175 : vector<1x128xf32>
    %cst_67 = arith.constant 4.000000e+01 : f32
    %177 = vector.broadcast %cst_67 : f32 to vector<1x128xf32>
    %178 = arith.divf %176, %177 : vector<1x128xf32>
    %179 = arith.mulf %165, %80 : vector<128x1xf32>
    %180 = vector.shape_cast %179 : vector<128x1xf32> to vector<1x128x1xf32>
    %cst_68 = arith.constant dense<0.000000e+00> : vector<1xf32>
    %181 = vector.multi_reduction <add>, %180, %cst_68 [1, 2] : vector<1x128x1xf32> to vector<1xf32>
    %182 = vector.shape_cast %181 : vector<1xf32> to vector<1x1x1xf32>
    %183 = vector.extract %182[0, 0, 0] : f32 from vector<1x1x1xf32>
    %184 = vector.broadcast %183 : f32 to vector<1x1xf32>
    %185 = vector.shape_cast %80 : vector<128x1xf32> to vector<1x128x1xf32>
    %cst_69 = arith.constant dense<0.000000e+00> : vector<1xf32>
    %186 = vector.multi_reduction <add>, %185, %cst_69 [1, 2] : vector<1x128x1xf32> to vector<1xf32>
    %187 = vector.shape_cast %186 : vector<1xf32> to vector<1x1x1xf32>
    %188 = vector.extract %187[0, 0, 0] : f32 from vector<1x1x1xf32>
    %189 = vector.broadcast %188 : f32 to vector<1x1xf32>
    %190 = arith.divf %184, %189 : vector<1x1xf32>
    %191 = arith.mulf %178, %88 : vector<1x128xf32>
    %192 = vector.shape_cast %191 : vector<1x128xf32> to vector<1x1x128xf32>
    %cst_70 = arith.constant dense<0.000000e+00> : vector<1xf32>
    %193 = vector.multi_reduction <add>, %192, %cst_70 [1, 2] : vector<1x1x128xf32> to vector<1xf32>
    %194 = vector.shape_cast %193 : vector<1xf32> to vector<1x1x1xf32>
    %195 = vector.extract %194[0, 0, 0] : f32 from vector<1x1x1xf32>
    %196 = vector.broadcast %195 : f32 to vector<1x1xf32>
    %197 = vector.shape_cast %88 : vector<1x128xf32> to vector<1x1x128xf32>
    %cst_71 = arith.constant dense<0.000000e+00> : vector<1xf32>
    %198 = vector.multi_reduction <add>, %197, %cst_71 [1, 2] : vector<1x1x128xf32> to vector<1xf32>
    %199 = vector.shape_cast %198 : vector<1xf32> to vector<1x1x1xf32>
    %200 = vector.extract %199[0, 0, 0] : f32 from vector<1x1x1xf32>
    %201 = vector.broadcast %200 : f32 to vector<1x1xf32>
    %202 = arith.divf %196, %201 : vector<1x1xf32>
    %203 = arith.addf %190, %202 : vector<1x1xf32>
    %cst_72 = arith.constant 5.000000e-01 : f32
    %204 = vector.broadcast %cst_72 : f32 to vector<1x1xf32>
    %205 = arith.mulf %204, %203 : vector<1x1xf32>
    %c0_73 = arith.constant 0 : index
    %c0_74 = arith.constant 0 : index
    %206 = vector.load %arg6[%c0_73, %c0_74] : memref<1x1xf32, #tpu.memory_space<vmem>>, vector<1x1xf32>
    tpu.vector_store %arg6[%c0_73, %c0_74], %205 {strides = array<i32>} : memref<1x1xf32, #tpu.memory_space<vmem>>, vector<1x1xf32>,
    return
  }
}

</mosaic_0001>

<bundles_post_ra>
// kernel: tpu_custom_call.1
= control target key start
LH: loop header
LB: loop body
LE: loop exit
PB: predicated region body
PF: predicated region fallthrough
CT: control target
= control target key end

     0   :  { %vm72_vm0 = vcmask 261120   ;;  %v5292_v5 = vmov 0   ;;  %s7836_s0 = inlined_call_operand.vmem [shape: f32[128,32], index: 0, kind: input, shape index: {}]   ;;  %s7837_s1 = inlined_call_operand.vmem [shape: f32[128,32], index: 1, kind: input, shape index: {}]   ;;  %s7838_s2 = inlined_call_operand.vmem [shape: s32[1,64], index: 2, kind: input, shape index: {}]   ;;  %s7839_s3 = inlined_call_operand.vmem [shape: s32[64,1], index: 3, kind: input, shape index: {}]   ;;  %s7840_s4 = inlined_call_operand.vmem [shape: f32[1,64], index: 4, kind: input, shape index: {}]   ;;  %s7841_s5 = inlined_call_operand.vmem [shape: f32[64,1], index: 5, kind: input, shape index: {}]   ;;  %s7842_s6 = inlined_call_operand.hbm [shape: f32[1,1], index: 6, kind: output, shape index: {}]  }
   0x1   :  { %v5333_v0 = vld [vmem:[%s7837_s1] sm:$0xff]  ;;  %v5338_v1 = vld [vmem:[%s7837_s1 + $0x8] sm:$0xff]  ;;  %4910 = vset.pattern.permute.xlu0 %v5292_v5  ;;  %4911 = vset.pattern.permute.xlu1 %v5292_v5  ;;  %v1956_v6 = vld [vmem:[%s7839_s3 + $0x18] sm:$0xff] }
   0x2   :  { %v1953_v2 = vld [vmem:[%s7839_s3] sm:$0xff]  ;;  %v234_v3 = vsel %vm72_vm0, %v5333_v0, 0  ;;  %v237_v4 = vsel %vm72_vm0, %v5338_v1, 0  ;;  %1971 = vperm.xlu1 %4911, %v1956_v6   ;;  %v5353_v9 = vld [vmem:[%s7837_s1 + $0x10] sm:$0xff]  ;;  %v5358_v10 = vld [vmem:[%s7837_s1 + $0x18] sm:$0xff] }
   0x3   :  { %v282_v7 = vand.u32 4294901760, %v234_v3  ;;  %v285_v8 = vand.u32 4294901760, %v237_v4  ;;  %1962 = vperm.xlu0 %4910, %v1953_v2   ;;  %v1954_v11 = vld [vmem:[%s7839_s3 + $0x8] sm:$0xff]  ;;  %v240_v12 = vsel %vm72_vm0, %v5353_v9, 0  ;;  %v243_v13 = vsel %vm72_vm0, %v5358_v10, 0  ;;  %v5370_v14 = vld [vmem:[%s7841_s5] sm:$0xff] }
   0x4   :  { %7993 = vst [vmem:[#allocation5_spill] sm:$0xff] %v5370_v14  ;;  %v5375_v15 = vld [vmem:[%s7841_s5 + $0x8] sm:$0xff]  ;;  %v288_v20 = vand.u32 4294901760, %v240_v12  ;;  %v5389_v21 = vld [vmem:[%s7837_s1 + $0x20] sm:$0xff]  ;;  %v291_v22 = vand.u32 4294901760, %v243_v13  ;;  %v1955_v29 = vld [vmem:[%s7839_s3 + $0x10] sm:$0xff] }
   0x5   :  { %7994 = vst [vmem:[#allocation6_spill] sm:$0xff] %v5375_v15  ;;  %v5377_v16 = vpack.c.bf16 %v285_v8, %v282_v7  ;;  %v5379_v17 = vsub.f32 %v234_v3, %v282_v7  ;;  %v5381_v18 = vsub.f32 %v237_v4, %v285_v8  ;;  %v1958_v19 = vld [vmem:[%s7839_s3 + $0x28] sm:$0xff]  ;;  %vm2018_vm1 = vcmp.gt.f32.partialorder %v5370_v14, 0.1  ;;  %v5427_v32 = vld [vmem:[%s7841_s5 + $0x10] sm:$0xff]  ;;  %v5432_v33 = vld [vmem:[%s7841_s5 + $0x18] sm:$0xff] }
   0x6   :  { %vm2019_vm2 = vcmp.gt.f32.partialorder %v5375_v15, 0.1  ;;  %v5396_v24 = vsub.f32 %v240_v12, %v288_v20  ;;  %v5401_v25 = vsel %vm2018_vm1, %v5370_v14, 0.0  ;;  %v5411_v27 = vld [vmem:[%s7837_s1 + $0x28] sm:$0xff]  ;;  %1977 = vperm.xlu1 %4911, %v1958_v19   ;;  %v5414_v28 = vpack.c.bf16 %v291_v22, %v288_v20  ;;  %7995 = vst [vmem:[#allocation7_spill] sm:$0xff] %v5427_v32  ;;  %7996 = vst [vmem:[#allocation8_spill] sm:$0xff] %v5432_v33 }
   0x7   :  { %4580 = vmatprep.subr.bf16.mxu1 %v5377_v16  ;;  %v4643_v23 = vpack.c.bf16 %v5381_v18, %v5379_v17  ;;  %1965 = vperm.xlu0 %4910, %v1954_v11   ;;  %v5406_v26 = vsel %vm2019_vm2, %v5375_v15, 0.0  ;;  %v5419_v30 = vsub.f32 %v243_v13, %v291_v22  ;;  %4952 = vrsqrt.f32 %v5401_v25  ;;  %v5438_v34 = vld [vmem:[%s7841_s5 + $0x20] sm:$0xff]  ;;  %v5448_v37 = vld [vmem:[%s7841_s5 + $0x28] sm:$0xff]  ;;  %v5478_v46 = vld [vmem:[%s7837_s1 + $0x30] sm:$0xff] }
   0x8   :  { %4582 = vmatpush3.bf16.xpose.msra.mxu1 %v5377_v16  ;;  %v246_v31 = vsel %vm72_vm0, %v5389_v21, 0  ;;  %4954 = vrsqrt.f32 %v5406_v26  ;;  %7997 = vst [vmem:[#allocation9_spill] sm:$0xff] %v5438_v34  ;;  %v249_v36 = vsel %vm72_vm0, %v5411_v27, 0  ;;  %7998 = vst [vmem:[#allocation10_spill] sm:$0xff] %v5448_v37  ;;  %vm7936_vm3 = vcmp.gt.f32.partialorder %v5427_v32, 0.1 }
   0x9   :  { %4644 = vmatprep.subr.bf16.mxu0 %v4643_v23  ;;  %4584 = vmatprep.subr.bf16.mxu1 %v5414_v28  ;;  %v4647_v35 = vpack.c.bf16 %v5419_v30, %v5396_v24  ;;  %v294_v38 = vand.u32 4294901760, %v246_v31  ;;  %v297_v39 = vand.u32 4294901760, %v249_v36  ;;  %vm7935_vm4 = vcmp.gt.f32.partialorder %v5432_v33, 0.1  ;;  %v1957_v40 = vld [vmem:[%s7839_s3 + $0x20] sm:$0xff]  ;;  %v5483_v47 = vld [vmem:[%s7837_s1 + $0x38] sm:$0xff] }
   0xa   :  { %4646 = vmatpush3.bf16.xpose.msra.mxu0 %v4643_v23  ;;  %v5458_v41 = vsel %vm7936_vm3, %v5427_v32, 0.0  ;;  %v5463_v42 = vsel %vm7935_vm4, %v5432_v33, 0.0  ;;  %vm2022_vm5 = vcmp.gt.f32.partialorder %v5438_v34, 0.1  ;;  %vm2023_vm6 = vcmp.gt.f32.partialorder %v5448_v37, 0.1 }
   0xb   :  { %1968 = vperm.xlu0 %4910, %v1955_v29   ;;  %4648 = vmatprep.subr.bf16.mxu0 %v4647_v35  ;;  %v5466_v43 = vpack.c.bf16 %v297_v39, %v294_v38  ;;  %4956 = vrsqrt.f32 %v5458_v41  ;;  %v5469_v44 = vsub.f32 %v246_v31, %v294_v38  ;;  %v5471_v45 = vsub.f32 %v249_v36, %v297_v39  ;;  %v5500_v51 = vld [vmem:[%s7841_s5 + $0x30] sm:$0xff]  ;;  %v5516_v55 = vld [vmem:[%s7841_s5 + $0x38] sm:$0xff]  ;;  %v5527_v62 = vld [vmem:[%s7837_s1 + $0x40] sm:$0xff] }
   0xc   :  { %4958 = vrsqrt.f32 %v5463_v42  ;;  %7999 = vst [vmem:[#allocation11_spill] sm:$0xff] %v5483_v47  ;;  %vm2036_vm7 = vcmp.eq.f32.partialorder %v5401_v25, inf  ;;  %v5489_v48 = vsel %vm2022_vm5, %v5438_v34, 0.0  ;;  %vm2038_vm8 = vcmp.eq.f32.partialorder %v5401_v25, 0.0  ;;  %8000 = vst [vmem:[#allocation12_spill] sm:$0xff] %v5500_v51  ;;  %v5549_v7 = vld [vmem:[%s7837_s1 + $0x48] sm:$0xff] }
   0xd   :  { %v2039_v49 = vand.u32 2147483648, %v5401_v25  ;;  %v4651_v50 = vpack.c.bf16 %v5471_v45, %v5469_v44  ;;  %4960 = vrsqrt.f32 %v5489_v48  ;;  %vm2043_vm9 = vcmp.eq.f32.partialorder %v5406_v26, inf  ;;  %8001 = vst [vmem:[#allocation13_spill] sm:$0xff] %v5516_v55  ;;  %8002 = vst [vmem:[#allocation14_spill] sm:$0xff] %v5527_v62 }
   0xe   :  { %v5507_v52 = vsel %vm2023_vm6, %v5448_v37, 0.0  ;;  %v252_v53 = vsel %vm72_vm0, %v5478_v46, 0  ;;  %v255_v54 = vsel %vm72_vm0, %v5483_v47, 0  ;;  %vm2045_vm10 = vcmp.eq.f32.partialorder %v5406_v26, 0.0  ;;  %8003 = vst [vmem:[#allocation15_spill] sm:$0xff] %v5549_v7 }
   0xf   :  { %1974 = vperm.xlu0 %4910, %v1957_v40   ;;  %v2046_v57 = vand.u32 2147483648, %v5406_v26  ;;  %vm2050_vm11 = vcmp.eq.f32.partialorder %v5458_v41, inf  ;;  %4962 = vrsqrt.f32 %v5507_v52  ;;  %v300_v60 = vand.u32 4294901760, %v252_v53 }
  0x10   :  { %4586 = vmatpush3.bf16.xpose.msra.mxu1 %v5414_v28  ;;  %v303_v61 = vand.u32 4294901760, %v255_v54  ;;  %vm2024_vm12 = vcmp.gt.f32.partialorder %v5500_v51, 0.1  ;;  %vm2052_vm13 = vcmp.eq.f32.partialorder %v5458_v41, 0.0  ;;  %vm7937_vm14 = vcmp.gt.f32.partialorder %v5516_v55, 0.1 }
  0x11   :  { %4588 = vmatprep.subr.bf16.mxu1 %v5466_v43  ;;  %v4953_v56 = vpop.eup %4952  ;;  %v5534_v2 = vsel %vm2024_vm12, %v5500_v51, 0.0  ;;  %v5542_v5 = vsub.f32 %v252_v53, %v300_v60 }
  0x12   :  { %4650 = vmatpush3.bf16.xpose.msra.mxu0 %v4647_v35  ;;  %v4955_v58 = vpop.eup %4954  ;;  %v2035_v59 = vmul.f32 %v4953_v56, %v5401_v25  ;;  %v5540_v4 = vpack.c.bf16 %v303_v61, %v300_v60  ;;  %v5544_v6 = vsub.f32 %v255_v54, %v303_v61 }
  0x13   :  { %4652 = vmatprep.subr.bf16.mxu0 %v4651_v50  ;;  %v2042_v63 = vmul.f32 %v4955_v58, %v5406_v26 }
  0x14   :  { %v2037_v3 = vsel %vm2036_vm7, %v5401_v25, %v2035_v59 }
  0x15   :  { %11 = vsyncpa [#allocation3], 0  ;;  %v2040_v8 = vsel %vm2038_vm8, %v2039_v49, %v2037_v3  ;;  %v2044_v11 = vsel %vm2043_vm9, %v5406_v26, %v2042_v63  ;;  %4964 = vrsqrt.f32 %v5534_v2  ;;  %v258_v12 = vsel %vm72_vm0, %v5527_v62, 0  ;;  %v4957_v13 = vpop.eup %4956  ;;  %s5294_s19 = smov [#allocation2]  }
  0x16   :  { %2451 = vperm.xlu1 %4911, %v2040_v8   ;;  %v2053_v19 = vand.u32 2147483648, %v5458_v41  ;;  %vm2057_vm15 = vcmp.eq.f32.partialorder %v5463_v42, inf  ;;  %v2060_v20 = vand.u32 2147483648, %v5463_v42  ;;  %v4655_v22 = vpack.c.bf16 %v5544_v6, %v5542_v5  ;;  %v4959_v23 = vpop.eup %4958  ;;  %s3842_s20 = sshll.u32 %s5294_s19, 4  ;;  %s3843_s20 = int_to_ptr.vmem [resolvable:$true] %s3842_s20 }
  0x17   :  { %v2047_v25 = vsel %vm2045_vm10, %v2046_v57, %v2044_v11  ;;  %v2049_v29 = vmul.f32 %v4957_v13, %v5458_v41  ;;  %v5571_v31 = vsel %vm7937_vm14, %v5516_v55, 0.0  ;;  %v261_v35 = vsel %vm72_vm0, %v5549_v7, 0  ;;  %v4961_v38 = vpop.eup %4960  ;;  %s5268_s21 = scalar_lea.vmem %s3843_s20, 16  ;;  %s5272_s22 = scalar_lea.vmem %s3843_s20, 32 }
  0x18   :  { %4590 = vmatpush3.bf16.xpose.msra.mxu1 %v5466_v43  ;;  %v2056_v36 = vmul.f32 %v4959_v23, %v5463_v42  ;;  %vm2059_vm7 = vcmp.eq.f32.partialorder %v5463_v42, 0.0  ;;  %4966 = vrsqrt.f32 %v5571_v31  ;;  %v306_v26 = vand.u32 4294901760, %v258_v12  ;;  %p5269_p0 = scmp.ne.s32.totalorder %s3843_s20, %s5268_s21  ;;  %p5273_p1 = scmp.lt.s32.totalorder %s3843_s20, %s3843_s20 }
  0x19   :  { %4592 = vmatprep.subr.bf16.mxu1 %v5540_v4  ;;  %v2051_v39 = vsel %vm2050_vm11, %v5458_v41, %v2049_v29  ;;  %vm2064_vm8 = vcmp.eq.f32.partialorder %v5489_v48, inf  ;;  %v2067_v40 = vand.u32 2147483648, %v5489_v48  ;;  %v309_v49 = vand.u32 4294901760, %v261_v35  ;;  %v4963_v57 = vpop.eup %4962  ;;  %p5274_p2 = scmp.lt.s32.totalorder %s5272_s22, %s5268_s21 }
  0x1a   :  { %4654 = vmatpush3.bf16.xpose.msra.mxu0 %v4651_v50  ;;  %2456 = vperm.xlu1 %4911, %v2047_v25   ;;  %v2054_v53 = vsel %vm2052_vm13, %v2053_v19, %v2051_v39  ;;  %v2058_v54 = vsel %vm2057_vm15, %v5463_v42, %v2056_v36  ;;  %v2063_v56 = vmul.f32 %v4961_v38, %v5489_v48  ;;  %vm2066_vm9 = vcmp.eq.f32.partialorder %v5489_v48, 0.0  ;;  %v5607_v42 = vld [vmem:[%s7837_s1 + $0x50] sm:$0xff]  ;;  %v5643_v38 = vld [vmem:[%s7837_s1 + $0x60] sm:$0xff] }
  0x1b   :  { %4656 = vmatprep.subr.bf16.mxu0 %v4655_v22  ;;  %2461 = vperm.xlu0 %4910, %v2054_v53   ;;  %v2061_v50 = vsel %vm2059_vm7, %v2060_v20, %v2058_v54  ;;  %vm2071_vm10 = vcmp.eq.f32.partialorder %v5507_v52, inf  ;;  %vm2073_vm11 = vcmp.eq.f32.partialorder %v5507_v52, 0.0  ;;  %v2074_v41 = vand.u32 2147483648, %v5507_v52  ;;  %8004 = vst [vmem:[#allocation16_spill] sm:$0xff] %v5607_v42  ;;  %v1959_v20 = vld [vmem:[%s7839_s3 + $0x30] sm:$0xff]  ;;  %8006 = vst [vmem:[#allocation18_spill] sm:$0xff] %v5643_v38  ;;  %p5275_p3 = por %p5274_p2, %p5273_p1 }
  0x1c   :  { %v2065_v58 = vsel %vm2064_vm8, %v5489_v48, %v2063_v56  ;;  %v2070_v59 = vmul.f32 %v4963_v57, %v5507_v52  ;;  %v5598_v60 = vpack.c.bf16 %v309_v49, %v306_v26  ;;  %v5600_v61 = vsub.f32 %v258_v12, %v306_v26  ;;  %v5616_v48 = vld [vmem:[%s7837_s1 + $0x58] sm:$0xff]  ;;  %v5655_v53 = vld [vmem:[%s7837_s1 + $0x68] sm:$0xff] }
  0x1d   :  { %v2068_v63 = vsel %vm2066_vm9, %v2067_v40, %v2065_v58  ;;  %v5602_v3 = vsub.f32 %v261_v35, %v309_v49  ;;  %vm2078_vm13 = vcmp.eq.f32.partialorder %v5534_v2, inf  ;;  %vm2080_vm15 = vcmp.eq.f32.partialorder %v5534_v2, 0.0  ;;  %8005 = vst [vmem:[#allocation17_spill] sm:$0xff] %v5616_v48  ;;  %8007 = vst [vmem:[#allocation19_spill] sm:$0xff] %v5655_v53  ;;  %v1960_v54 = vld [vmem:[%s7839_s3 + $0x38] sm:$0xff]  ;;  %p5276_p4 = pnand %p5275_p3, %p5269_p0 }
  0x1e   :  { %2466 = vperm.xlu1 %4911, %v2061_v50   ;;  %v2072_v8 = vsel %vm2071_vm10, %v5507_v52, %v2070_v59  ;;  %vm2098_vm7 = vcmp.ne.f32.partialorder %v5370_v14, 0.0  ;;  %v2081_v13 = vand.u32 2147483648, %v5534_v2  ;;  %vm2099_vm8 = vcmp.ne.f32.partialorder %v5375_v15, 0.0 }
  0x1f   :  { %v4965_v11 = vpop.eup %4964  ;;  %2471 = vperm.xlu0 %4910, %v2068_v63   ;;  %v2075_v12 = vsel %vm2073_vm11, %v2074_v41, %v2072_v8  ;;  %v4659_v19 = vpack.c.bf16 %v5602_v3, %v5600_v61  ;;  %vm2085_vm9 = vcmp.eq.f32.partialorder %v5571_v31, inf  ;;  %vm2087_vm10 = vcmp.eq.f32.partialorder %v5571_v31, 0.0  ;;  %v5676_v63 = vld [vmem:[%s7836_s0] sm:$0xff] }
  0x20   :  { %4594 = vmatpush3.bf16.xpose.msra.mxu1 %v5540_v4  ;;  %v2077_v23 = vmul.f32 %v4965_v11, %v5534_v2  ;;  %v264_v52 = vsel %vm72_vm0, %v5607_v42, 0  ;;  %v2088_v25 = vand.u32 2147483648, %v5571_v31  ;;  %v7843_v29 = vmov 0.0   ;;  %8009 = vst [vmem:[#allocation21_spill] sm:$0xff] %v5676_v63 }
  0x21   :  { %4596 = vmatprep.subr.bf16.mxu1 %v5598_v60  ;;  %v2106_v35 = vsel %vm2098_vm7, 1.0, %v7843_v29  ;;  %v267_v36 = vsel %vm72_vm0, %v5616_v48, 0  ;;  %v312_v26 = vand.u32 4294901760, %v264_v52  ;;  %v2107_v40 = vsel %vm2099_vm8, 1.0, %v7843_v29 }
  0x22   :  { %4658 = vmatpush3.bf16.xpose.msra.mxu0 %v4655_v22  ;;  %v4967_v39 = vpop.eup %4966  ;;  %2476 = vperm.xlu1 %4911, %v2075_v12   ;;  %v2079_v22 = vsel %vm2078_vm13, %v5534_v2, %v2077_v23  ;;  %vm2100_vm11 = vcmp.ne.f32.partialorder %v5427_v32, 0.0  ;;  %v315_v49 = vand.u32 4294901760, %v267_v36  ;;  %vm2101_vm13 = vcmp.ne.f32.partialorder %v5432_v33, 0.0 }
  0x23   :  { %4660 = vmatprep.subr.bf16.mxu0 %v4659_v19  ;;  %1980 = vperm.xlu0 %4910, %v1959_v20   ;;  %v2084_v56 = vmul.f32 %v4967_v39, %v5571_v31  ;;  %vm2102_vm7 = vcmp.ne.f32.partialorder %v5438_v34, 0.0  ;;  %v5663_v57 = vsub.f32 %v264_v52, %v312_v26  ;;  %v2082_v50 = vsel %vm2080_vm15, %v2081_v13, %v2079_v22  ;;  %v5691_v52 = vld [vmem:[%s7837_s1 + $0x70] sm:$0xff]  ;;  %v5702_v22 = vld [vmem:[%s7837_s1 + $0x78] sm:$0xff] }
  0x24   :  { %v5667_v41 = vpack.c.bf16 %v315_v49, %v312_v26  ;;  %v5669_v58 = vsub.f32 %v267_v36, %v315_v49  ;;  %v270_v59 = vsel %vm72_vm0, %v5643_v38, 0  ;;  %v2108_v11 = vsel %vm2100_vm11, 1.0, %v7843_v29  ;;  %8010 = vst [vmem:[#allocation22_spill] sm:$0xff] %v5691_v52  ;;  %8011 = vst [vmem:[#allocation23_spill] sm:$0xff] %v5702_v22 }
  0x25   :  { %v2086_v8 = vsel %vm2085_vm9, %v5571_v31, %v2084_v56  ;;  %vm2103_vm15 = vcmp.ne.f32.partialorder %v5448_v37, 0.0  ;;  %v273_v2 = vsel %vm72_vm0, %v5655_v53, 0  ;;  %v2109_v12 = vsel %vm2101_vm13, 1.0, %v7843_v29 }
  0x26   :  { %8008 = vst [vmem:[#allocation20_spill] sm:$0xff] %v5667_v41  ;;  %1983 = vperm.xlu1 %4911, %v1960_v54   ;;  %v4663_v13 = vpack.c.bf16 %v5669_v58, %v5663_v57  ;;  %v318_v20 = vand.u32 4294901760, %v270_v59  ;;  %v321_v23 = vand.u32 4294901760, %v273_v2  ;;  %v2089_v36 = vsel %vm2087_vm10, %v2088_v25, %v2086_v8 }
  0x27   :  { %2481 = vperm.xlu0 %4910, %v2082_v50   ;;  %v4912_v26 = vpack.i.bf16 %v2107_v40, %v2106_v35  ;;  %v2110_v39 = vsel %vm2102_vm7, 1.0, %v7843_v29  ;;  %v186_v49 = vsel %vm72_vm0, %v5676_v63, 0  ;;  %v2111_v54 = vsel %vm2103_vm15, 1.0, %v7843_v29 }
  0x28   :  { %4598 = vmatpush3.bf16.xpose.msra.mxu1 %v5598_v60  ;;  %vm2104_vm8 = vcmp.ne.f32.partialorder %v5500_v51, 0.0  ;;  %vm2105_vm9 = vcmp.ne.f32.partialorder %v5516_v55, 0.0  ;;  %v5710_v31 = vand.u32 4294901760, %v186_v49  ;;  %v4917_v25 = vpack.i.bf16 %v2109_v12, %v2108_v11 }
  0x29   :  { %4600 = vmatprep.subr.bf16.mxu1 %v5667_v41  ;;  %v276_v35 = vsel %vm72_vm0, %v5691_v52, 0  ;;  %v5714_v40 = vsub.f32 %v270_v59, %v318_v20  ;;  %v5716_v56 = vsub.f32 %v273_v2, %v321_v23  ;;  %v279_v50 = vsel %vm72_vm0, %v5702_v22, 0  ;;  %v5731_v59 = vld [vmem:[%s7836_s0 + $0x8] sm:$0xff] }
  0x2a   :  { %4662 = vmatpush3.bf16.xpose.msra.mxu0 %v4659_v19  ;;  %2486 = vperm.xlu1 %4911, %v2089_v36   ;;  %v5721_v8 = vsub.f32 %v186_v49, %v5710_v31  ;;  %v4922_v29 = vpack.i.bf16 %v2111_v54, %v2110_v39  ;;  %v8013_v33 = vmov 0.0   ;;  %v5725_v12 = vpack.c.bf16 %v321_v23, %v318_v20  ;;  %v5762_v54 = vld [vmem:[%s7836_s0 + $0x20] sm:$0xff] }
  0x2b   :  { %4664 = vmatprep.subr.bf16.mxu0 %v4663_v13  ;;  %4913 = vperm.xlu0 %4910, %v4912_v26   ;;  %v2112_v19 = vsel %vm2104_vm8, 1.0, %v8013_v33  ;;  %v2113_v11 = vsel %vm2105_vm9, 1.0, %v8013_v33  ;;  %8015 = vst [vmem:[#allocation26_spill] sm:$0xff] %v5731_v59  ;;  %v324_v2 = vand.u32 4294901760, %v276_v35  ;;  %v327_v49 = vand.u32 4294901760, %v279_v50  ;;  %8018 = vst [vmem:[#allocation29_spill] sm:$0xff] %v5762_v54 }
  0x2c   :  { %8012 = vst [vmem:[#allocation24_spill] sm:$0xff] %v5721_v8  ;;  %8014 = vst [vmem:[#allocation25_spill] sm:$0xff] %v5725_v12  ;;  %v7847_v36 = vand.u32 4294901760, %v5721_v8  ;;  %4307 = vmatprep.mubr.f32.mxu0 %v5721_v8  ;;  %v4927_v26 = vpack.i.bf16 %v2113_v11, %v2112_v19  ;;  %v4667_v39 = vpack.c.bf16 %v5716_v56, %v5714_v40  ;;  %v189_v32 = vsel %vm72_vm0, %v5731_v59, 0  ;;  %v5802_v33 = vld [vmem:[%s7836_s0 + $0x30] sm:$0xff] }
  0x2d   :  { %v5750_v11 = vsub.f32 %v276_v35, %v324_v2  ;;  %v5764_v23 = vand.u32 4294901760, %v189_v32  ;;  %v5768_v35 = vpack.c.bf16 %v327_v49, %v324_v2  ;;  %v8022_v55 = vand.u32 4294901760, %v5381_v18  ;;  %8026 = vst [vmem:[#allocation35_spill] sm:$0xff] %v5802_v33 }
  0x2e   :  { %4918 = vperm.xlu1 %4911, %v4917_v25   ;;  %v365_v20 = vsub.f32 %v5721_v8, %v7847_v36  ;;  %v5747_v25 = vld [vmem:[%s7836_s0 + $0x10] sm:$0xff]  ;;  %v5757_v36 = vld [vmem:[%s7836_s0 + $0x18] sm:$0xff] }
  0x2f   :  { %4923 = vperm.xlu0 %4910, %v4922_v29   ;;  %8016 = vst [vmem:[#allocation27_spill] sm:$0xff] %v5747_v25  ;;  %v5752_v29 = vsub.f32 %v279_v50, %v327_v49  ;;  %8017 = vst [vmem:[#allocation28_spill] sm:$0xff] %v5757_v36  ;;  %v8021_v50 = vand.u32 4294901760, %v5379_v17  ;;  %v533_v51 = vsub.f32 %v5381_v18, %v8022_v55  ;;  %v195_v2 = vsel %vm72_vm0, %v5757_v36, 0  ;;  %v5817_v36 = vld [vmem:[%s7836_s0 + $0x38] sm:$0xff] }
  0x30   :  { %4602 = vmatpush3.bf16.xpose.msra.mxu1 %v5667_v41  ;;  %v366_v19 = vand.u32 4294901760, %v365_v20  ;;  %8019 = vst [vmem:[#allocation30_spill] sm:$0xff] %v5764_v23  ;;  %8020 = vst [vmem:[#allocation31_spill] sm:$0xff] %v5768_v35  ;;  %v198_v49 = vsel %vm72_vm0, %v5762_v54, 0  ;;  %v5795_v14 = vand.u32 4294901760, %v195_v2 }
  0x31   :  { %4604 = vmatprep.subr.bf16.mxu1 %v5725_v12  ;;  %v526_v20 = vsub.f32 %v5379_v17, %v8021_v50  ;;  %v5792_v50 = vsub.f32 %v189_v32, %v5764_v23  ;;  %v5808_v55 = vand.u32 4294901760, %v198_v49  ;;  %v534_v15 = vand.u32 4294901760, %v533_v51  ;;  %8030 = vst [vmem:[#allocation38_spill] sm:$0xff] %v5817_v36 }
  0x32   :  { %4666 = vmatpush3.bf16.xpose.msra.mxu0 %v4663_v13  ;;  %4928 = vperm.xlu1 %4911, %v4927_v26   ;;  %v192_v13 = vsel %vm72_vm0, %v5747_v25, 0  ;;  %v5779_v26 = vld [vmem:[%s7836_s0 + $0x28] sm:$0xff]  ;;  %8025 = vst [vmem:[#allocation34_spill] sm:$0xff] %v5795_v14  ;;  %v8029_v23 = vand.u32 4294901760, %v5396_v24  ;;  %v8031_v25 = vand.u32 4294901760, %v5419_v30  ;;  %v204_v51 = vsel %vm72_vm0, %v5802_v33, 0 }
  0x33   :  { %4668 = vmatprep.subr.bf16.mxu0 %v4667_v39  ;;  %4195 = vmatprep.mubr.f32.mxu1 %v366_v19  ;;  %8023 = vst [vmem:[#allocation32_spill] sm:$0xff] %v5779_v26  ;;  %v5782_v34 = vand.u32 4294901760, %v192_v13  ;;  %v4671_v19 = vpack.c.bf16 %v5752_v29, %v5750_v11  ;;  %v201_v37 = vsel %vm72_vm0, %v5779_v26, 0  ;;  %8028 = vst [vmem:[#allocation37_spill] sm:$0xff] %v5808_v55  ;;  %v527_v32 = vand.u32 4294901760, %v526_v20 }
  0x34   :  { %v540_v26 = vsub.f32 %v5396_v24, %v8029_v23  ;;  %v5823_v59 = vand.u32 4294901760, %v201_v37  ;;  %v8033_v20 = vand.u32 4294901760, %v5469_v44  ;;  %v5841_v22 = vsub.f32 %v198_v49, %v5808_v55 }
  0x35   :  { %8024 = vst [vmem:[#allocation33_spill] sm:$0xff] %v5782_v34  ;;  %v5806_v54 = vsub.f32 %v192_v13, %v5782_v34  ;;  %v547_v13 = vsub.f32 %v5419_v30, %v8031_v25  ;;  %v5837_v25 = vld [vmem:[%s7836_s0 + $0x40] sm:$0xff]  ;;  %v5843_v33 = vand.u32 4294901760, %v204_v51  ;;  %v207_v23 = vsel %vm72_vm0, %v5817_v36, 0  ;;  %v5887_v36 = vld [vmem:[%s7836_s0 + $0x58] sm:$0xff] }
  0x36   :  { %8032 = vst [vmem:[#allocation39_spill] sm:$0xff] %v5823_v59  ;;  %v554_v63 = vsub.f32 %v5469_v44, %v8033_v20  ;;  %8034 = vst [vmem:[#allocation40_spill] sm:$0xff] %v5837_v25  ;;  %v4611_v52 = vpack.c.bf16 %v534_v15, %v527_v32  ;;  %v541_v20 = vand.u32 4294901760, %v540_v26  ;;  %v8038_v49 = vand.u32 4294901760, %v5471_v45 }
  0x37   :  { %8027 = vst [vmem:[#allocation36_spill] sm:$0xff] %v5806_v54  ;;  %8035 = vst [vmem:[#allocation41_spill] sm:$0xff] %v5843_v33  ;;  %v548_v34 = vand.u32 4294901760, %v547_v13  ;;  %v5859_v53 = vsub.f32 %v201_v37, %v5823_v59  ;;  %v210_v15 = vsel %vm72_vm0, %v5837_v25, 0  ;;  %v8039_v26 = vand.u32 4294901760, %v5792_v50  ;;  %v5872_v13 = vld [vmem:[%s7836_s0 + $0x50] sm:$0xff] }
  0x38   :  { %4606 = vmatpush3.bf16.xpose.msra.mxu1 %v5725_v12  ;;  %v5853_v12 = vld [vmem:[%s7836_s0 + $0x48] sm:$0xff]  ;;  %v561_v55 = vsub.f32 %v5471_v45, %v8038_v49  ;;  %v5867_v38 = vand.u32 4294901760, %v210_v15  ;;  %8041 = vst [vmem:[#allocation45_spill] sm:$0xff] %v5872_v13  ;;  %v8042_v37 = vand.u32 4294901760, %v5806_v54  ;;  %8043 = vst [vmem:[#allocation46_spill] sm:$0xff] %v5887_v36  ;;  %v8044_v25 = vand.u32 4294901760, %v5542_v5 }
  0x39   :  { %4608 = vmatprep.subr.bf16.mxu1 %v5768_v35  ;;  %8037 = vst [vmem:[#allocation43_spill] sm:$0xff] %v5853_v12  ;;  %v375_v32 = vsub.f32 %v5792_v50, %v8039_v26  ;;  %v5880_v26 = vsub.f32 %v204_v51, %v5843_v33  ;;  %v216_v42 = vsel %vm72_vm0, %v5872_v13, 0  ;;  %v219_v33 = vsel %vm72_vm0, %v5887_v36, 0 }
  0x3a   :  { %4670 = vmatpush3.bf16.xpose.msra.mxu0 %v4667_v39  ;;  %v5832_v39 = vsub.f32 %v195_v2, %v5795_v14  ;;  %v5848_v14 = vand.u32 4294901760, %v207_v23  ;;  %v555_v2 = vand.u32 4294901760, %v554_v63  ;;  %8040 = vst [vmem:[#allocation44_spill] sm:$0xff] %v5867_v38  ;;  %v385_v49 = vsub.f32 %v5806_v54, %v8042_v37 }
  0x3b   :  { %4672 = vmatprep.subr.bf16.mxu0 %v4671_v19  ;;  %v213_v63 = vsel %vm72_vm0, %v5853_v12, 0  ;;  %v5898_v51 = vsub.f32 %v210_v15, %v5867_v38  ;;  %v562_v12 = vand.u32 4294901760, %v561_v55  ;;  %v5912_v15 = vpack.c.bf16 %v548_v34, %v541_v20 }
  0x3c   :  { %8036 = vst [vmem:[#allocation42_spill] sm:$0xff] %v5848_v14  ;;  %v5895_v37 = vsub.f32 %v207_v23, %v5848_v14  ;;  %v5900_v59 = vand.u32 4294901760, %v213_v63  ;;  %v376_v23 = vand.u32 4294901760, %v375_v32  ;;  %v386_v48 = vand.u32 4294901760, %v385_v49  ;;  %v5935_v49 = vld [vmem:[%s7836_s0 + $0x68] sm:$0xff] }
  0x3d   :  { %v8048_v13 = vand.u32 4294901760, %v5841_v22  ;;  %v5923_v41 = vand.u32 4294901760, %v216_v42  ;;  %8050 = vst [vmem:[#allocation50_spill] sm:$0xff] %v5935_v49  ;;  %v8051_v36 = vand.u32 4294901760, %v5859_v53  ;;  %v5942_v34 = vand.u32 4294901760, %v219_v33 }
  0x3e   :  { %8045 = vst [vmem:[#allocation47_spill] sm:$0xff] %v5900_v59  ;;  %v5928_v20 = vsub.f32 %v213_v63, %v5900_v59  ;;  %v5947_v63 = vld [vmem:[%s7836_s0 + $0x70] sm:$0xff]  ;;  %v8054_v59 = vand.u32 4294901760, %v5544_v6  ;;  %v8055_v62 = vand.u32 4294901760, %v5880_v26 }
  0x3f   :  { %v405_v38 = vsub.f32 %v5841_v22, %v8048_v13  ;;  %8049 = vst [vmem:[#allocation49_spill] sm:$0xff] %v5923_v41  ;;  %v415_v32 = vsub.f32 %v5859_v53, %v8051_v36  ;;  %8052 = vst [vmem:[#allocation51_spill] sm:$0xff] %v5942_v34  ;;  %v5957_v7 = vsub.f32 %v216_v42, %v5923_v41 }
  0x40   :  { %4610 = vmatpush3.bf16.xpose.msra.mxu1 %v5768_v35  ;;  %v5892_v35 = vsub.f32 %v5542_v5, %v8044_v25  ;;  %v5909_v25 = vld [vmem:[%s7836_s0 + $0x60] sm:$0xff]  ;;  %8053 = vst [vmem:[#allocation52_spill] sm:$0xff] %v5947_v63  ;;  %v5954_v13 = vsub.f32 %v5544_v6, %v8054_v59  ;;  %v425_v8 = vsub.f32 %v5880_v26, %v8055_v62  ;;  %v8057_v59 = vand.u32 4294901760, %v5895_v37 }
  0x41   :  { %4612 = vmatprep.subr.bf16.mxu1 %v4611_v52  ;;  %8046 = vst [vmem:[#allocation48_spill] sm:$0xff] %v5909_v25  ;;  %v406_v36 = vand.u32 4294901760, %v405_v38  ;;  %v228_v62 = vsel %vm72_vm0, %v5947_v63, 0  ;;  %v8060_v63 = vand.u32 4294901760, %v5928_v20 }
  0x42   :  { %4674 = vmatpush3.bf16.xpose.msra.mxu0 %v4671_v19  ;;  %v8047_v19 = vand.u32 4294901760, %v5832_v39  ;;  %v435_v42 = vsub.f32 %v5895_v37, %v8057_v59  ;;  %v5994_v41 = vand.u32 4294901760, %v228_v62 }
  0x43   :  { %4676 = vmatprep.subr.bf16.mxu0 %v5377_v16 }
  0x44   :  { %v395_v55 = vsub.f32 %v5832_v39, %v8047_v19  ;;  %v222_v19 = vsel %vm72_vm0, %v5909_v25, 0  ;;  %v5949_v25 = vpack.c.bf16 %v562_v12, %v555_v2  ;;  %v225_v12 = vsel %vm72_vm0, %v5935_v49, 0  ;;  %v5980_v2 = vld [vmem:[%s7836_s0 + $0x78] sm:$0xff] }
  0x45   :  { %v5962_v47 = vand.u32 4294901760, %v222_v19  ;;  %8059 = vst [vmem:[#allocation54_spill] sm:$0xff] %v5980_v2  ;;  %v5992_v49 = vand.u32 4294901760, %v225_v12 }
  0x46   :  { %v396_v14 = vand.u32 4294901760, %v395_v55  ;;  %v8062_v55 = vand.u32 4294901760, %v5381_v18 }
  0x47   :  { %4196 = vmatmul.mubr.f32.vlgmr.msra.gmra.mrb[0].mxu1 %v376_v23  ;;  %8056 = vst [vmem:[#allocation53_spill] sm:$0xff] %v5962_v47  ;;  %v416_v23 = vand.u32 4294901760, %v415_v32  ;;  %v426_v32 = vand.u32 4294901760, %v425_v8  ;;  %v5998_v59 = vsub.f32 %v222_v19, %v5962_v47  ;;  %v630_v19 = vand.u32 4294901760, %v5752_v29 }
  0x48   :  { %4614 = vmatpush3.bf16.xpose.msra.mxu1 %v4611_v52  ;;  %4198 = vmatprep.mubr.f32.mxu1 %v386_v48  ;;  %v8058_v48 = vand.u32 4294901760, %v5898_v51  ;;  %v6026_v8 = vsub.f32 %v225_v12, %v5992_v49  ;;  %v8069_v12 = vand.u32 4294901760, %v5544_v6  ;;  %v8073_v6 = vand.u32 4294901760, %v5669_v58 }
  0x49   :  { %4308 = vmatmul.mubr.f32.vlgmr.msra.gmra.mrb[0].mxu0 %v5792_v50  ;;  %4616 = vmatprep.subr.bf16.mxu1 %v5912_v15 }
  0x4a   :  { %v445_v38 = vsub.f32 %v5898_v51, %v8058_v48  ;;  %4678 = vmatpush3.bf16.xpose.msra.mxu0 %v5377_v16  ;;  %4310 = vmatprep.mubr.f32.mxu0 %v5806_v54  ;;  %v5987_v48 = vsub.f32 %v219_v33, %v5942_v34  ;;  %v231_v33 = vsel %vm72_vm0, %v5980_v2, 0  ;;  %v455_v34 = vsub.f32 %v5928_v20, %v8060_v63 }
  0x4b   :  { %4680 = vmatprep.subr.bf16.mxu0 %v5414_v28  ;;  %4199 = vmatmul.mubr.f32.gmra.mrb[2].mxu1 %v396_v14  ;;  %v436_v14 = vand.u32 4294901760, %v435_v42  ;;  %v8063_v42 = vand.u32 4294901760, %v5396_v24  ;;  %v8065_v63 = vand.u32 4294901760, %v5957_v7  ;;  %v6031_v18 = vand.u32 4294901760, %v231_v33 }
  0x4c   :  { %4201 = vmatprep.mubr.f32.mxu1 %v406_v36  ;;  %v446_v52 = vand.u32 4294901760, %v445_v38  ;;  %v8061_v36 = vand.u32 4294901760, %v5379_v17  ;;  %v8064_v38 = vand.u32 4294901760, %v5419_v30  ;;  %v6029_v17 = vsub.f32 %v228_v62, %v5994_v41 }
  0x4d   :  { %4311 = vmatmul.mubr.f32.gmra.mrb[2].mxu0 %v5832_v39  ;;  %v465_v54 = vsub.f32 %v5957_v7, %v8065_v63  ;;  %v484_v24 = vand.u32 4294901760, %v5998_v59  ;;  %v8066_v30 = vand.u32 4294901760, %v5469_v44  ;;  %v8070_v62 = vand.u32 4294901760, %v5600_v61 }
  0x4e   :  { %4313 = vmatprep.mubr.f32.mxu0 %v5841_v22  ;;  %v6014_v2 = vpack.c.bf16 %v8062_v55, %v8061_v36  ;;  %v6020_v47 = vpack.c.bf16 %v8064_v38, %v8063_v42  ;;  %v8068_v36 = vand.u32 4294901760, %v5542_v5  ;;  %v8071_v38 = vand.u32 4294901760, %v5602_v3 }
  0x4f   :  { %4202 = vmatmul.mubr.f32.gmra.mrb[4].mxu1 %v416_v23  ;;  %v8067_v23 = vand.u32 4294901760, %v5471_v45  ;;  %v569_v44 = vand.u32 4294901760, %v5892_v35  ;;  %v576_v45 = vand.u32 4294901760, %v5954_v13  ;;  %v8072_v5 = vand.u32 4294901760, %v5663_v57 }
  0x50   :  { %4618 = vmatpush3.bf16.xpose.msra.mxu1 %v5912_v15  ;;  %4204 = vmatprep.mubr.f32.mxu1 %v426_v32  ;;  %v6045_v42 = vpack.c.bf16 %v8069_v12, %v8068_v36  ;;  %v6051_v15 = vpack.c.bf16 %v8071_v38, %v8070_v62  ;;  %v8074_v63 = vand.u32 4294901760, %v5714_v40  ;;  %v8076_v35 = vmov %v8070_v62 }
  0x51   :  { %v6039_v55 = vpack.c.bf16 %v8067_v23, %v8066_v30  ;;  %4620 = vmatprep.subr.bf16.mxu1 %v5949_v25  ;;  %4314 = vmatmul.mubr.f32.gmra.mrb[4].mxu0 %v5859_v53  ;;  %v6061_v32 = vpack.c.bf16 %v8073_v6, %v8072_v5  ;;  %v8075_v30 = vand.u32 4294901760, %v5716_v56  ;;  %v582_v13 = vsub.f32 %v5600_v61, %v8076_v35 }
  0x52   :  { %4682 = vmatpush3.bf16.xpose.msra.mxu0 %v5414_v28  ;;  %4316 = vmatprep.mubr.f32.mxu0 %v5880_v26  ;;  %v456_v36 = vand.u32 4294901760, %v455_v34  ;;  %v8077_v12 = vand.u32 4294901760, %v5750_v11  ;;  %v8078_v38 = vand.u32 4294901760, %v5987_v48  ;;  %v494_v6 = vand.u32 4294901760, %v6026_v8 }
  0x53   :  { %v6067_v23 = vpack.c.bf16 %v8075_v30, %v8074_v63  ;;  %4684 = vmatprep.subr.bf16.mxu0 %v5466_v43  ;;  %4205 = vmatmul.mubr.f32.gmra.mrb[6].mxu1 %v436_v14  ;;  %v6086_v61 = vsub.f32 %v231_v33, %v6031_v18  ;;  %v121_v34 = vmul.f32 %v5333_v0, %v5333_v0  ;;  %v8079_v63 = vand.u32 4294901760, %v5602_v3 }
  0x54   :  { %v6078_v62 = vpack.c.bf16 %v630_v19, %v8077_v12  ;;  %v475_v5 = vsub.f32 %v5987_v48, %v8078_v38  ;;  %4207 = vmatprep.mubr.f32.mxu1 %v446_v52  ;;  %v466_v35 = vand.u32 4294901760, %v465_v54  ;;  %v485_v14 = vsub.f32 %v5998_v59, %v484_v24 }
  0x55   :  { %v589_v30 = vsub.f32 %v5602_v3, %v8079_v63  ;;  %v504_v12 = vand.u32 4294901760, %v6029_v17  ;;  %v4623_v38 = vpack.c.bf16 %v576_v45, %v569_v44  ;;  %4317 = vmatmul.mubr.f32.gmra.mrb[6].mxu0 %v5895_v37  ;;  %v137_v33 = vsel %vm72_vm0, %v121_v34, 0.0 }
  0x56   :  { %4319 = vmatprep.mubr.f32.mxu0 %v5898_v51  ;;  %138 = vadd.xlane.f32.xlu0 %v137_v33  ;;  %v476_v0 = vand.u32 4294901760, %v475_v5  ;;  %v495_v3 = vsub.f32 %v6026_v8, %v494_v6  ;;  %v514_v54 = vand.u32 4294901760, %v6086_v61  ;;  %v123_v52 = vmul.f32 %v5353_v9, %v5353_v9 }
  0x57   :  { %4208 = vmatmul.mubr.f32.gmra.mrb[8].mxu1 %v456_v36  ;;  %v583_v44 = vand.u32 4294901760, %v582_v13  ;;  %v590_v45 = vand.u32 4294901760, %v589_v30  ;;  %v486_v34 = vand.u32 4294901760, %v485_v14  ;;  %v505_v36 = vsub.f32 %v6029_v17, %v504_v12 }
  0x58   :  { %4622 = vmatpush3.bf16.xpose.msra.mxu1 %v5949_v25  ;;  %4210 = vmatprep.mubr.f32.mxu1 %v466_v35  ;;  %v143_v5 = vsel %vm72_vm0, %v123_v52, 0.0  ;;  %v496_v9 = vand.u32 4294901760, %v495_v3  ;;  %v515_v25 = vsub.f32 %v6086_v61, %v514_v54  ;;  %v122_v13 = vmul.f32 %v5338_v1, %v5338_v1 }
  0x59   :  { %4624 = vmatprep.subr.bf16.mxu1 %v4623_v38  ;;  %4320 = vmatmul.mubr.f32.gmra.mrb[8].mxu0 %v5928_v20  ;;  %v4627_v63 = vpack.c.bf16 %v590_v45, %v583_v44  ;;  %v506_v30 = vand.u32 4294901760, %v505_v36  ;;  %v8080_v35 = vand.u32 4294901760, %v5663_v57  ;;  %v8081_v33 = vand.u32 4294901760, %v5669_v58 }
  0x5a   :  { %4686 = vmatpush3.bf16.xpose.msra.mxu0 %v5466_v43  ;;  %4322 = vmatprep.mubr.f32.mxu0 %v5957_v7  ;;  %v140_v3 = vsel %vm72_vm0, %v122_v13, 0.0  ;;  %v124_v52 = vmul.f32 %v5358_v10, %v5358_v10  ;;  %v516_v1 = vand.u32 4294901760, %v515_v25  ;;  %v125_v44 = vmul.f32 %v5389_v21, %v5389_v21  ;;  %v8084_v13 = vld [vmem:[#allocation11_spill] sm:$0xff] }
  0x5b   :  { %4688 = vmatprep.subr.bf16.mxu0 %v5540_v4  ;;  %4211 = vmatmul.mubr.f32.gmra.mrb[10].mxu1 %v476_v0  ;;  %v596_v14 = vsub.f32 %v5663_v57, %v8080_v35  ;;  %v603_v0 = vsub.f32 %v5669_v58, %v8081_v33  ;;  %v126_v10 = vmul.f32 %v5411_v27, %v5411_v27 }
  0x5c   :  { %4213 = vmatprep.mubr.f32.mxu1 %v486_v34  ;;  %144 = vadd.xlane.f32.xlu0 %v143_v5  ;;  %v146_v45 = vsel %vm72_vm0, %v124_v52, 0.0  ;;  %v149_v34 = vsel %vm72_vm0, %v125_v44, 0.0  ;;  %v127_v21 = vmul.f32 %v5478_v46, %v5478_v46  ;;  %v8083_v5 = vand.u32 4294901760, %v5716_v56  ;;  %v8088_v52 = vld [vmem:[#allocation15_spill] sm:$0xff] }
  0x5d   :  { %4323 = vmatmul.mubr.f32.gmra.mrb[10].mxu0 %v5987_v48  ;;  %141 = vadd.xlane.f32.xlu1 %v140_v3  ;;  %v597_v57 = vand.u32 4294901760, %v596_v14  ;;  %v604_v58 = vand.u32 4294901760, %v603_v0  ;;  %v152_v25 = vsel %vm72_vm0, %v126_v10, 0.0  ;;  %v128_v46 = vmul.f32 %v8084_v13, %v8084_v13  ;;  %v8087_v14 = vld [vmem:[#allocation14_spill] sm:$0xff] }
  0x5e   :  { %4325 = vmatprep.mubr.f32.mxu0 %v5998_v59  ;;  %v617_v27 = vsub.f32 %v5716_v56, %v8083_v5  ;;  %v129_v56 = vmul.f32 %v8087_v14, %v8087_v14  ;;  %v8091_v10 = vand.u32 4294901760, %v5750_v11  ;;  %v8096_v14 = vld [vmem:[#allocation22_spill] sm:$0xff] }
  0x5f   :  { %4214 = vmatmul.mubr.f32.gmra.mrb[12].mxu1 %v496_v9  ;;  %v4631_v9 = vpack.c.bf16 %v604_v58, %v597_v57  ;;  %v158_v3 = vsel %vm72_vm0, %v128_v46, 0.0  ;;  %v8089_v57 = vld [vmem:[#allocation20_spill] sm:$0xff] }
  0x60   :  { %4626 = vmatpush3.bf16.xpose.msra.mxu1 %v4623_v38  ;;  %4216 = vmatprep.mubr.f32.mxu1 %v506_v30  ;;  %v8082_v38 = vand.u32 4294901760, %v5714_v40  ;;  %v8085_v30 = vld [vmem:[#allocation24_spill] sm:$0xff]  ;;  %v618_v0 = vand.u32 4294901760, %v617_v27  ;;  %v161_v44 = vsel %vm72_vm0, %v129_v56, 0.0  ;;  %v135_v56 = vmul.f32 %v8096_v14, %v8096_v14  ;;  %v8105_v14 = vld [vmem:[#allocation35_spill] sm:$0xff] }
  0x61   :  { %4628 = vmatprep.subr.bf16.mxu1 %v4627_v63  ;;  %4326 = vmatmul.mubr.f32.gmra.mrb[12].mxu0 %v6026_v8  ;;  %v8086_v35 = vand.u32 4294901760, %v8085_v30  ;;  %v8090_v58 = vld [vmem:[#allocation16_spill] sm:$0xff] }
  0x62   :  { %4690 = vmatpush3.bf16.xpose.msra.mxu0 %v5540_v4  ;;  %4328 = vmatprep.mubr.f32.mxu0 %v6029_v17  ;;  %v610_v36 = vsub.f32 %v5714_v40, %v8082_v38  ;;  %v155_v40 = vsel %vm72_vm0, %v127_v21, 0.0  ;;  %v631_v21 = vsub.f32 %v5752_v29, %v630_v19  ;;  %v8094_v29 = vld [vmem:[#allocation19_spill] sm:$0xff] }
  0x63   :  { %4692 = vmatprep.subr.bf16.mxu0 %v5598_v60  ;;  %4217 = vmatmul.mubr.f32.gmra.mrb[14].mxu1 %v516_v1  ;;  %v130_v1 = vmul.f32 %v8088_v52, %v8088_v52  ;;  %v134_v19 = vmul.f32 %v8094_v29, %v8094_v29  ;;  %v179_v52 = vsel %vm72_vm0, %v135_v56, 0.0  ;;  %v62_v56 = vmul.f32 %v8105_v14, %v8105_v14 }
  0x64   :  { %4251 = vmatprep.mubr.f32.mxu1 %v5710_v31  ;;  %147 = vadd.xlane.f32.xlu0 %v146_v45  ;;  %v611_v33 = vand.u32 4294901760, %v610_v36  ;;  %v131_v45 = vmul.f32 %v8090_v58, %v8090_v58  ;;  %v8092_v36 = vld [vmem:[#allocation17_spill] sm:$0xff] }
  0x65   :  { %4329 = vmatmul.mubr.f32.gmra.mrb[14].mxu0 %v6086_v61  ;;  %150 = vadd.xlane.f32.xlu1 %v149_v34  ;;  %v624_v34 = vsub.f32 %v5750_v11, %v8091_v10  ;;  %v164_v38 = vsel %vm72_vm0, %v130_v1, 0.0  ;;  %v132_v5 = vmul.f32 %v8092_v36, %v8092_v36  ;;  %v632_v11 = vand.u32 4294901760, %v631_v21  ;;  %v8098_v1 = vld [vmem:[#allocation21_spill] sm:$0xff]  ;;  %v8100_v21 = vld [vmem:[#allocation31_spill] sm:$0xff] }
  0x66   :  { %4363 = vmatprep.mubr.f32.mxu0 %v8086_v35  ;;  %v167_v27 = vsel %vm72_vm0, %v131_v45, 0.0  ;;  %v8099_v45 = vld [vmem:[#allocation26_spill] sm:$0xff] }
  0x67   :  { %v625_v46 = vand.u32 4294901760, %v624_v34  ;;  %v170_v30 = vsel %vm72_vm0, %v132_v5, 0.0  ;;  %v57_v10 = vmul.f32 %v8099_v45, %v8099_v45  ;;  %v8102_v5 = vld [vmem:[#allocation28_spill] sm:$0xff]  ;;  %v91_v45 = vsel %vm72_vm0, %v62_v56, 0.0  ;;  %v8124_v56 = vld [vmem:[#allocation43_spill] sm:$0xff] }
  0x68   :  { %4630 = vmatpush3.bf16.xpose.msra.mxu1 %v4627_v63  ;;  %153 = vadd.xlane.f32.xlu0 %v152_v25  ;;  %v4635_v63 = vpack.c.bf16 %v618_v0, %v611_v33  ;;  %v8093_v25 = vld [vmem:[#allocation18_spill] sm:$0xff]  ;;  %v176_v33 = vsel %vm72_vm0, %v134_v19, 0.0  ;;  %v8097_v0 = vld [vmem:[#allocation23_spill] sm:$0xff]  ;;  %v8104_v19 = vld [vmem:[#allocation32_spill] sm:$0xff] }
  0x69   :  { %4632 = vmatprep.subr.bf16.mxu1 %v4631_v9  ;;  %156 = vadd.xlane.f32.xlu1 %v155_v40  ;;  %v133_v13 = vmul.f32 %v8093_v25, %v8093_v25  ;;  %v8095_v40 = vld [vmem:[#allocation25_spill] sm:$0xff] }
  0x6a   :  { %4694 = vmatpush3.bf16.xpose.msra.mxu0 %v5598_v60 }
  0x6b   :  { %4696 = vmatprep.subr.bf16.mxu0 %v8089_v57  ;;  %v173_v35 = vsel %vm72_vm0, %v133_v13, 0.0  ;;  %v8103_v13 = vld [vmem:[#allocation29_spill] sm:$0xff] }
  0x6c   :  { %159 = vadd.xlane.f32.xlu0 %v158_v3  ;;  %v136_v3 = vmul.f32 %v8097_v0, %v8097_v0  ;;  %v8108_v0 = vand.u32 4294901760, %v5792_v50  ;;  %v8112_v50 = vld [vmem:[#allocation37_spill] sm:$0xff] }
  0x6d   :  { %162 = vadd.xlane.f32.xlu1 %v161_v44  ;;  %v56_v44 = vmul.f32 %v8098_v1, %v8098_v1 }
  0x6e   :  { %v182_v58 = vsel %vm72_vm0, %v136_v3, 0.0 }
  0x6f   :  { %v73_v34 = vsel %vm72_vm0, %v56_v44, 0.0  ;;  %v8109_v44 = vld [vmem:[#allocation36_spill] sm:$0xff] }
  0x70   :  { %4634 = vmatpush3.bf16.xpose.msra.mxu1 %v4631_v9  ;;  %165 = vadd.xlane.f32.xlu0 %v164_v38  ;;  %v4639_v9 = vpack.c.bf16 %v632_v11, %v625_v46  ;;  %v8101_v38 = vld [vmem:[#allocation27_spill] sm:$0xff]  ;;  %v60_v46 = vmul.f32 %v8103_v13, %v8103_v13 }
  0x71   :  { %4636 = vmatprep.subr.bf16.mxu1 %v4635_v63  ;;  %168 = vadd.xlane.f32.xlu1 %v167_v27  ;;  %v58_v36 = vmul.f32 %v8101_v38, %v8101_v38  ;;  %v59_v27 = vmul.f32 %v8102_v5, %v8102_v5  ;;  %v8114_v38 = vld [vmem:[#allocation38_spill] sm:$0xff] }
  0x72   :  { %4698 = vmatpush3.bf16.xpose.msra.mxu0 %v8089_v57 }
  0x73   :  { %4700 = vmatprep.subr.bf16.mxu0 %v8095_v40  ;;  %v79_v25 = vsel %vm72_vm0, %v58_v36, 0.0  ;;  %v82_v11 = vsel %vm72_vm0, %v59_v27, 0.0  ;;  %v63_v36 = vmul.f32 %v8114_v38, %v8114_v38  ;;  %v8117_v27 = vld [vmem:[#allocation39_spill] sm:$0xff] }
  0x74   :  { %171 = vadd.xlane.f32.xlu0 %v170_v30  ;;  %v85_v30 = vsel %vm72_vm0, %v60_v46, 0.0  ;;  %v8119_v46 = vand.u32 4294901760, %v5859_v53  ;;  %v8123_v53 = vand.u32 4294901760, %v5895_v37  ;;  %v8129_v37 = vand.u32 4294901760, %v5928_v20 }
  0x75   :  { %174 = vadd.xlane.f32.xlu1 %v173_v35  ;;  %v61_v35 = vmul.f32 %v8104_v19, %v8104_v19  ;;  %v8121_v19 = vld [vmem:[#allocation42_spill] sm:$0xff]  ;;  %v8133_v20 = vand.u32 4294901760, %v5987_v48 }
  0x76   :  { %v8136_v48 = vld [vmem:[#allocation50_spill] sm:$0xff] }
  0x78   :  { %4638 = vmatpush3.bf16.xpose.msra.mxu1 %v4635_v63  ;;  %177 = vadd.xlane.f32.xlu0 %v176_v33  ;;  %v76_v63 = vsel %vm72_vm0, %v57_v10, 0.0  ;;  %v8107_v33 = vld [vmem:[#allocation33_spill] sm:$0xff]  ;;  %v8111_v10 = vld [vmem:[#allocation34_spill] sm:$0xff] }
  0x79   :  { %4640 = vmatprep.subr.bf16.mxu1 %v4639_v9  ;;  %180 = vadd.xlane.f32.xlu1 %v179_v52  ;;  %v88_v52 = vsel %vm72_vm0, %v61_v35, 0.0  ;;  %v8122_v35 = vld [vmem:[#allocation44_spill] sm:$0xff] }
  0x7a   :  { %4702 = vmatpush3.bf16.xpose.msra.mxu0 %v8095_v40 }
  0x7b   :  { %4704 = vmatprep.subr.bf16.mxu0 %v8100_v21 }
  0x7c   :  { %183 = vadd.xlane.f32.xlu0 %v182_v58  ;;  %v8110_v58 = vand.u32 4294901760, %v8109_v44 }
  0x7d   :  { %74 = vadd.xlane.f32.xlu1 %v73_v34  ;;  %v8113_v34 = vand.u32 4294901760, %v5832_v39  ;;  %v8118_v39 = vld [vmem:[#allocation41_spill] sm:$0xff] }
  0x80   :  { %4642 = vmatpush3.bf16.xpose.msra.mxu1 %v4639_v9  ;;  %77 = vadd.xlane.f32.xlu0 %v76_v63  ;;  %v8106_v9 = vld [vmem:[#allocation30_spill] sm:$0xff]  ;;  %v8116_v63 = vld [vmem:[#allocation40_spill] sm:$0xff] }
  0x81   :  { %4803 = vmatprep.subr.bf16.mxu1 %v5377_v16  ;;  %80 = vadd.xlane.f32.xlu1 %v79_v25  ;;  %v6227_v1 = vpop.permute.xlu1 %1971  ;;  %v64_v5 = vmul.f32 %v8116_v63, %v8116_v63  ;;  %v8131_v63 = vld [vmem:[#allocation51_spill] sm:$0xff] }
  0x82   :  { %4706 = vmatpush3.bf16.xpose.msra.mxu0 %v8100_v21  ;;  %v6211_v29 = vpop.permute.xlu0 %1962 }
  0x83   :  { %4708 = vmatprep.subr.bf16.mxu0 %v6014_v2 }
  0x84   :  { %83 = vadd.xlane.f32.xlu0 %v82_v11  ;;  %v8120_v11 = vand.u32 4294901760, %v5880_v26 }
  0x85   :  { %86 = vadd.xlane.f32.xlu1 %v85_v30  ;;  %v6247_v13 = vpop.permute.xlu1 %1977  ;;  %v97_v30 = vsel %vm72_vm0, %v64_v5, 0.0  ;;  %v8132_v5 = vld [vmem:[#allocation53_spill] sm:$0xff] }
  0x86   :  { %v6223_v3 = vpop.permute.xlu0 %1965 }
  0x87   :  { %4252 = vmatmul.mubr.f32.vlgmr.msra.gmra.mrb[0].mxu1 %v8106_v9 }
  0x88   :  { %4811 = vmatpush3.bf16.xpose.msra.mxu1 %v5377_v16  ;;  %4254 = vmatprep.mubr.f32.mxu1 %v8107_v33 }
  0x89   :  { %4364 = vmatmul.mubr.f32.vlgmr.msra.gmra.mrb[0].mxu0 %v8108_v0  ;;  %4804 = vmatprep.subr.bf16.mxu1 %v5414_v28  ;;  %v8125_v0 = vand.u32 4294901760, %v5898_v51  ;;  %v8130_v51 = vand.u32 4294901760, %v5957_v7 }
  0x8a   :  { %4710 = vmatpush3.bf16.xpose.msra.mxu0 %v6014_v2  ;;  %4366 = vmatprep.mubr.f32.mxu0 %v8110_v58  ;;  %v8115_v2 = vand.u32 4294901760, %v5841_v22  ;;  %v6245_v25 = vpop.permute.xlu0 %1968  ;;  %v94_v22 = vsel %vm72_vm0, %v63_v36, 0.0  ;;  %v8127_v58 = vld [vmem:[#allocation47_spill] sm:$0xff] }
  0x8b   :  { %4255 = vmatmul.mubr.f32.gmra.mrb[2].mxu1 %v8111_v10  ;;  %4712 = vmatprep.subr.bf16.mxu0 %v6020_v47 }
  0x8c   :  { %4257 = vmatprep.mubr.f32.mxu1 %v8112_v50  ;;  %89 = vadd.xlane.f32.xlu0 %v88_v52  ;;  %v8126_v52 = vld [vmem:[#allocation45_spill] sm:$0xff] }
  0x8d   :  { %4367 = vmatmul.mubr.f32.gmra.mrb[2].mxu0 %v8113_v34  ;;  %92 = vadd.xlane.f32.xlu1 %v91_v45  ;;  %v66_v44 = vmul.f32 %v8126_v52, %v8126_v52  ;;  %v8128_v45 = vld [vmem:[#allocation49_spill] sm:$0xff] }
  0x8e   :  { %4369 = vmatprep.mubr.f32.mxu0 %v8115_v2  ;;  %v6262_v14 = vpop.permute.xlu0 %1974 }
  0x8f   :  { %4258 = vmatmul.mubr.f32.gmra.mrb[4].mxu1 %v8117_v27  ;;  %v103_v36 = vsel %vm72_vm0, %v66_v44, 0.0 }
  0x90   :  { %4812 = vmatpush3.bf16.xpose.msra.mxu1 %v5414_v28  ;;  %4260 = vmatprep.mubr.f32.mxu1 %v8118_v39 }
  0x91   :  { %4805 = vmatprep.subr.bf16.mxu1 %v5466_v43  ;;  %4370 = vmatmul.mubr.f32.gmra.mrb[4].mxu0 %v8119_v46  ;;  %v8134_v46 = vld [vmem:[#allocation46_spill] sm:$0xff] }
  0x92   :  { %4714 = vmatpush3.bf16.xpose.msra.mxu0 %v6020_v47  ;;  %4372 = vmatprep.mubr.f32.mxu0 %v8120_v11  ;;  %v65_v47 = vmul.f32 %v8124_v56, %v8124_v56 }
  0x93   :  { %4261 = vmatmul.mubr.f32.gmra.mrb[6].mxu1 %v8121_v19  ;;  %4716 = vmatprep.subr.bf16.mxu0 %v6039_v55 }
  0x94   :  { %4263 = vmatprep.mubr.f32.mxu1 %v8122_v35  ;;  %95 = vadd.xlane.f32.xlu0 %v94_v22  ;;  %v100_v34 = vsel %vm72_vm0, %v65_v47, 0.0  ;;  %v8135_v22 = vld [vmem:[#allocation48_spill] sm:$0xff] }
  0x95   :  { %4373 = vmatmul.mubr.f32.gmra.mrb[6].mxu0 %v8123_v53  ;;  %98 = vadd.xlane.f32.xlu1 %v97_v30  ;;  %v6268_v26 = vpop.permute.xlu1 %2451  ;;  %v68_v11 = vmul.f32 %v8135_v22, %v8135_v22  ;;  %v1583_v53 = vlaneseq }
  0x96   :  { %4375 = vmatprep.mubr.f32.mxu0 %v8125_v0  ;;  %v8137_v0 = vld [vmem:[#allocation52_spill] sm:$0xff] }
  0x97   :  { %4264 = vmatmul.mubr.f32.gmra.mrb[8].mxu1 %v8127_v58  ;;  %v109_v47 = vsel %vm72_vm0, %v68_v11, 0.0  ;;  %v70_v52 = vmul.f32 %v8137_v0, %v8137_v0  ;;  %v6324_v8 = vand.u32 127, %v1583_v53 }
  0x98   :  { %4813 = vmatpush3.bf16.xpose.msra.mxu1 %v5466_v43  ;;  %4266 = vmatprep.mubr.f32.mxu1 %v8128_v45 }
  0x99   :  { %4806 = vmatprep.subr.bf16.mxu1 %v5540_v4  ;;  %4376 = vmatmul.mubr.f32.gmra.mrb[8].mxu0 %v8129_v37  ;;  %v6281_v38 = vpop.permute.xlu1 %2456  ;;  %v115_v37 = vsel %vm72_vm0, %v70_v52, 0.0  ;;  %vm1985_vm10 = vcmp.eq.s32.totalorder %v6324_v8, %v6211_v29  ;;  %vm1986_vm11 = vcmp.eq.s32.totalorder %v6324_v8, %v6223_v3  ;;  %vm1988_vm13 = vcmp.eq.s32.totalorder %v6324_v8, %v6227_v1 }
  0x9a   :  { %4718 = vmatpush3.bf16.xpose.msra.mxu0 %v6039_v55  ;;  %4378 = vmatprep.mubr.f32.mxu0 %v8130_v51  ;;  %v6287_v2 = vpop.permute.xlu0 %2461  ;;  %v67_v55 = vmul.f32 %v8134_v46, %v8134_v46  ;;  %v8139_v51 = vmov 0.0   ;;  %vm1987_vm7 = vcmp.eq.s32.totalorder %v6324_v8, %v6245_v25  ;;  %vm1990_vm15 = vcmp.eq.s32.totalorder %v6324_v8, %v6247_v13 }
  0x9b   :  { %4267 = vmatmul.mubr.f32.gmra.mrb[10].mxu1 %v8131_v63  ;;  %4720 = vmatprep.subr.bf16.mxu0 %v6045_v42  ;;  %v6352_v29 = vsel %vm1986_vm11, 1.0, %v8139_v51  ;;  %v6363_v1 = vsel %vm1987_vm7, 1.0, %v8139_v51  ;;  %v6387_v13 = vsel %vm1990_vm15, 1.0, %v8139_v51  ;;  %vm2140_vm11 = vcmask 523264  }
  0x9c   :  { %4269 = vmatprep.mubr.f32.mxu1 %v8132_v5  ;;  %101 = vadd.xlane.f32.xlu0 %v100_v34  ;;  %v106_v59 = vsel %vm72_vm0, %v67_v55, 0.0  ;;  %8141 = vst [vmem:[#allocation24_spill] sm:$0xff] %v6352_v29  ;;  %8143 = vst [vmem:[#allocation15_spill] sm:$0xff] %v6363_v1 }
  0x9d   :  { %4379 = vmatmul.mubr.f32.gmra.mrb[10].mxu0 %v8133_v20  ;;  %104 = vadd.xlane.f32.xlu1 %v103_v36  ;;  %v6296_v7 = vpop.permute.xlu1 %2466  ;;  %v6347_v36 = vsel %vm1985_vm10, 1.0, %v8139_v51  ;;  %8145 = vst [vmem:[#allocation16_spill] sm:$0xff] %v6387_v13 }
  0x9e   :  { %4381 = vmatprep.mubr.f32.mxu0 %v484_v24  ;;  %v6302_v30 = vpop.permute.xlu0 %2471  ;;  %v69_v24 = vmul.f32 %v8136_v48, %v8136_v48  ;;  %8140 = vst [vmem:[#allocation11_spill] sm:$0xff] %v6347_v36 }
  0x9f   :  { %4270 = vmatmul.mubr.f32.gmra.mrb[12].mxu1 %v5992_v49 }
  0xa0   :  { %4814 = vmatpush3.bf16.xpose.msra.mxu1 %v5540_v4  ;;  %4272 = vmatprep.mubr.f32.mxu1 %v5994_v41  ;;  %v112_v17 = vsel %vm72_vm0, %v69_v24, 0.0 }
  0xa1   :  { %4807 = vmatprep.subr.bf16.mxu1 %v5598_v60  ;;  %4382 = vmatmul.mubr.f32.gmra.mrb[12].mxu0 %v494_v6  ;;  %v6313_v56 = vpop.permute.xlu1 %2476 }
  0xa2   :  { %4722 = vmatpush3.bf16.xpose.msra.mxu0 %v6045_v42  ;;  %4384 = vmatprep.mubr.f32.mxu0 %v504_v12  ;;  %v1981_v44 = vpop.permute.xlu0 %1980  ;;  %v8138_v42 = vld [vmem:[#allocation54_spill] sm:$0xff] }
  0xa3   :  { %4273 = vmatmul.mubr.f32.gmra.mrb[14].mxu1 %v6031_v18  ;;  %4724 = vmatprep.subr.bf16.mxu0 %v6051_v15  ;;  %v71_v6 = vmul.f32 %v8138_v42, %v8138_v42  ;;  %vm1991_vm8 = vcmp.eq.s32.totalorder %v6324_v8, %v1981_v44 }
  0xa4   :  { %4487 = vmatprep.mubr.f32.mxu1 %v8122_v35  ;;  %107 = vadd.xlane.f32.xlu0 %v106_v59 }
  0xa5   :  { %4385 = vmatmul.mubr.f32.gmra.mrb[14].mxu0 %v514_v54  ;;  %110 = vadd.xlane.f32.xlu1 %v109_v47  ;;  %v1984_v12 = vpop.permute.xlu1 %1983  ;;  %v118_v61 = vsel %vm72_vm0, %v71_v6, 0.0  ;;  %vm1989_vm0 = vcmp.eq.s32.totalorder %v6324_v8, %v6262_v14 }
  0xa6   :  { %4419 = vmatprep.mubr.f32.mxu0 %v5710_v31  ;;  %v6334_v34 = vpop.permute.xlu0 %2481  ;;  %v6374_v14 = vsel %vm1989_vm0, 1.0, %v8139_v51  ;;  %vm1992_vm9 = vcmp.eq.s32.totalorder %v6324_v8, %v1984_v12  ;;  %v2489_v12 = vmul.f32 %v6347_v36, %v6268_v26 }
  0xa7   :  { %8144 = vst [vmem:[#allocation20_spill] sm:$0xff] %v6374_v14 }
  0xa8   :  { %4815 = vmatpush3.bf16.xpose.msra.mxu1 %v5598_v60  ;;  %113 = vadd.xlane.f32.xlu0 %v112_v17 }
  0xa9   :  { %4808 = vmatprep.subr.bf16.mxu1 %v8089_v57  ;;  %116 = vadd.xlane.f32.xlu1 %v115_v37  ;;  %v6343_v54 = vpop.permute.xlu1 %2486 }
  0xaa   :  { %4726 = vmatpush3.bf16.xpose.msra.mxu0 %v6051_v15  ;;  %v4914_v3 = vpop.permute.xlu0 %4913  ;;  %v6360_v15 = vsel %vm1988_vm13, 1.0, %v8139_v51 }
  0xab   :  { %4728 = vmatprep.subr.bf16.mxu0 %v6061_v32  ;;  %v4916_v20 = vunpack.i.h.bf16 %v4914_v3  ;;  %v4915_v46 = vunpack.i.l.bf16 %v4914_v3  ;;  %8142 = vst [vmem:[#allocation14_spill] sm:$0xff] %v6360_v15  ;;  %v2492_v26 = vmul.f32 %v6360_v15, %v6296_v7 }
  0xac   :  { %119 = vadd.xlane.f32.xlu0 %v118_v61 }
  0xad   :  { %v6366_v55 = vmul.f32 %v4915_v46, %v6347_v36  ;;  %v6369_v25 = vmul.f32 %v4916_v20, %v6352_v29  ;;  %v4919_v22 = vpop.permute.xlu1 %4918  ;;  %v6401_v46 = vsel %vm1991_vm8, 1.0, %v8139_v51 }
  0xae   :  { %v4921_v11 = vunpack.i.h.bf16 %v4919_v22  ;;  %v4920_v59 = vunpack.i.l.bf16 %v4919_v22  ;;  %v4924_v48 = vpop.permute.xlu0 %4923  ;;  %8146 = vst [vmem:[#allocation17_spill] sm:$0xff] %v6401_v46  ;;  %v2495_v7 = vmul.f32 %v6401_v46, %v6334_v34 }
  0xaf   :  { %v2368_v24 = vadd.f32 %v6369_v25, %v6366_v55  ;;  %v4925_v47 = vunpack.i.l.bf16 %v4924_v48  ;;  %v4926_v17 = vunpack.i.h.bf16 %v4924_v48  ;;  %v2490_v48 = vmul.f32 %v6352_v29, %v6281_v38 }
  0xb0   :  { %4816 = vmatpush3.bf16.xpose.msra.mxu1 %v8089_v57  ;;  %v6380_v0 = vmul.f32 %v4920_v59, %v6363_v1  ;;  %v6383_v52 = vmul.f32 %v4921_v11, %v6360_v15  ;;  %v6412_v59 = vsel %vm1992_vm9, 1.0, %v8139_v51 }
  0xb1   :  { %4809 = vmatprep.subr.bf16.mxu1 %v8095_v40  ;;  %v4929_v42 = vpop.permute.xlu1 %4928  ;;  %v6393_v37 = vmul.f32 %v4925_v47, %v6374_v14  ;;  %v6398_v20 = vmul.f32 %v4926_v17, %v6387_v13  ;;  %8147 = vst [vmem:[#allocation18_spill] sm:$0xff] %v6412_v59 }
  0xb2   :  { %4730 = vmatpush3.bf16.xpose.msra.mxu0 %v6061_v32  ;;  %v2369_v6 = vadd.f32 %v2368_v24, %v6380_v0  ;;  %v4930_v61 = vunpack.i.l.bf16 %v4929_v42  ;;  %v4931_v44 = vunpack.i.h.bf16 %v4929_v42  ;;  %v4771_v42 = vpack.c.bf16 %v2490_v48, %v2489_v12 }
  0xb3   :  { %4732 = vmatprep.subr.bf16.mxu0 %v6067_v23 }
  0xb4   :  { %v2370_v3 = vadd.f32 %v2369_v6, %v6383_v52  ;;  %v6406_v22 = vmul.f32 %v4930_v61, %v6401_v46  ;;  %v6420_v24 = vmul.f32 %v4931_v44, %v6412_v59  ;;  %v2493_v6 = vmul.f32 %v6374_v14, %v6302_v30 }
  0xb5   :  { %v2494_v61 = vmul.f32 %v6387_v13, %v6313_v56  ;;  %v2496_v30 = vmul.f32 %v6412_v59, %v6343_v54  ;;  %v4787_v44 = vpack.c.bf16 %v6369_v25, %v6366_v55  ;;  %v4791_v25 = vpack.c.bf16 %v6383_v52, %v6380_v0 }
  0xb6   :  { %v2371_v32 = vadd.f32 %v2370_v3, %v6393_v37  ;;  %v1617_v13 = vadd.s32 4294967256, %v6324_v8 }
  0xb7   :  { %v4783_v34 = vpack.c.bf16 %v2496_v30, %v2495_v7 }
  0xb8   :  { %4817 = vmatpush3.bf16.xpose.msra.mxu1 %v8095_v40  ;;  %v2372_v11 = vadd.f32 %v2371_v32, %v6398_v20 }
  0xb9   :  { %4810 = vmatprep.subr.bf16.mxu1 %v8100_v21 }
  0xba   :  { %4734 = vmatpush3.bf16.xpose.msra.mxu0 %v6067_v23  ;;  %v2373_v47 = vadd.f32 %v2372_v11, %v6406_v22  ;;  %v2491_v23 = vmul.f32 %v6363_v1, %v6287_v2  ;;  %v4779_v2 = vpack.c.bf16 %v2494_v61, %v2493_v6 }
  0xbb   :  { %4736 = vmatprep.subr.bf16.mxu0 %v6078_v62 }
  0xbc   :  { %v6425_v17 = vadd.f32 %v2373_v47, %v6420_v24  ;;  %v4775_v38 = vpack.c.bf16 %v2492_v26, %v2491_v23 }
  0xbe   :  { %8148 = vst [vmem:[#allocation19_spill] sm:$0xff] %v6425_v17 }
  0xc0   :  { %4818 = vmatpush3.bf16.xpose.msra.mxu1 %v8100_v21 }
  0xc1   :  { %4772 = vmatprep.subr.bf16.mxu1 %v4771_v42 }
  0xc2   :  { %4738 = vmatpush3.bf16.xpose.msra.mxu0 %v6078_v62  ;;  %v6441_v62 = vshrl.u32 %v1583_v53, 7  ;;  %v6455_v53 = vld [vmem:[%s7838_s2] ss:$0 sm:$0xff] }
  0xc3   :  { %4740 = vmatprep.subr.bf16.mxu0 %v5377_v16 }
  0xc4   :  { %vm1905_vm10 = vcmp.eq.s32.totalorder %v6441_v62, %v6455_v53  ;;  %v1886_v56 = vadd.s32 16, %v6441_v62  ;;  %v1887_v3 = vadd.s32 24, %v6441_v62  ;;  %v1888_v32 = vadd.s32 32, %v6441_v62 }
  0xc5   :  { %v6468_v54 = vsel %vm1905_vm10, 1.0, %v8139_v51  ;;  %v1889_v12 = vadd.s32 40, %v6441_v62  ;;  %v1890_v55 = vadd.s32 48, %v6441_v62  ;;  %v1891_v47 = vadd.s32 56, %v6441_v62 }
  0xc6   :  { %vm1907_vm7 = vcmp.eq.s32.totalorder %v1886_v56, %v6455_v53  ;;  %vm1908_vm0 = vcmp.eq.s32.totalorder %v1887_v3, %v6455_v53  ;;  %vm1909_vm15 = vcmp.eq.s32.totalorder %v1888_v32, %v6455_v53  ;;  %v1892_v0 = vadd.s32 64, %v6441_v62 }
  0xc7   :  { %4488 = vmatmul.mubr.f32.vlgmr.msra.gmra.mrb[16].mxu1 %v8127_v58  ;;  %v6501_v48 = vsel %vm1908_vm0, 1.0, %v8139_v51  ;;  %vm1910_vm8 = vcmp.eq.s32.totalorder %v1889_v12, %v6455_v53  ;;  %vm1911_vm9 = vcmp.eq.s32.totalorder %v1890_v55, %v6455_v53  ;;  %vm1912_vm10 = vcmp.eq.s32.totalorder %v1891_v47, %v6455_v53 }
  0xc8   :  { %4774 = vmatpush3.bf16.msra.mxu1 %v4771_v42  ;;  %4490 = vmatprep.mubr.f32.mxu1 %v8128_v45  ;;  %8149 = vst [vmem:[#allocation25_spill] sm:$0xff] %v6501_v48  ;;  %v1893_v52 = vadd.s32 72, %v6441_v62  ;;  %v1895_v42 = vadd.s32 88, %v6441_v62  ;;  %v1899_v26 = vadd.s32 120, %v6441_v62 }
  0xc9   :  { %4420 = vmatmul.mubr.f32.vlgmr.msra.gmra.mrb[0].mxu0 %v8106_v9  ;;  %4776 = vmatprep.subr.bf16.mxu1 %v4775_v38 }
  0xca   :  { %4742 = vmatpush3.bf16.xpose.msra.mxu0 %v5377_v16  ;;  %4422 = vmatprep.mubr.f32.mxu0 %v8107_v33  ;;  %v1885_v16 = vadd.s32 8, %v6441_v62 }
  0xcb   :  { %4491 = vmatmul.mubr.f32.gmra.mrb[18].mxu1 %v8131_v63  ;;  %4744 = vmatprep.subr.bf16.mxu0 %v5414_v28 }
  0xcc   :  { %4778 = vmatpush3.bf16.msra.mxu1 %v4775_v38  ;;  %4493 = vmatprep.mubr.f32.mxu1 %v8132_v5  ;;  %vm1906_vm13 = vcmp.eq.s32.totalorder %v1885_v16, %v6455_v53 }
  0xcd   :  { %4423 = vmatmul.mubr.f32.gmra.mrb[2].mxu0 %v8111_v10  ;;  %4780 = vmatprep.subr.bf16.mxu1 %v4779_v2  ;;  %v6483_v11 = vsel %vm1906_vm13, 1.0, %v8139_v51  ;;  %vm1913_vm13 = vcmp.eq.s32.totalorder %v1892_v0, %v6455_v53 }
  0xce   :  { %4425 = vmatprep.mubr.f32.mxu0 %v8112_v50 }
  0xcf   :  { %4494 = vmatmul.mubr.f32.gmra.mrb[20].mxu1 %v5992_v49 }
  0xd0   :  { %4782 = vmatpush3.bf16.msra.mxu1 %v4779_v2  ;;  %4496 = vmatprep.mubr.f32.mxu1 %v5994_v41 }
  0xd1   :  { %4426 = vmatmul.mubr.f32.gmra.mrb[4].mxu0 %v8117_v27  ;;  %4784 = vmatprep.subr.bf16.mxu1 %v4783_v34 }
  0xd2   :  { %4746 = vmatpush3.bf16.xpose.msra.mxu0 %v5414_v28  ;;  %4428 = vmatprep.mubr.f32.mxu0 %v8118_v39  ;;  %v6487_v28 = vsel %vm1907_vm7, 1.0, %v8139_v51  ;;  %vm1914_vm7 = vcmp.eq.s32.totalorder %v1893_v52, %v6455_v53 }
  0xd3   :  { %4497 = vmatmul.mubr.f32.gmra.mrb[22].mxu1 %v6031_v18  ;;  %4748 = vmatprep.subr.bf16.mxu0 %v5466_v43 }
  0xd4   :  { %4786 = vmatpush3.bf16.msra.mxu1 %v4783_v34  ;;  %4515 = vmatprep.mubr.msk.f32.mxu1 %vm2140_vm11, %v6468_v54 }
  0xd5   :  { %4429 = vmatmul.mubr.f32.gmra.mrb[6].mxu0 %v8121_v19  ;;  %4788 = vmatprep.subr.bf16.mxu1 %v4787_v44 }
  0xd6   :  { %4431 = vmatprep.mubr.f32.mxu0 %v8122_v35  ;;  %v6505_v35 = vsel %vm1909_vm15, 1.0, %v8139_v51  ;;  %vm1916_vm15 = vcmp.eq.s32.totalorder %v1895_v42, %v6455_v53 }
  0xd7   :  { %4516 = vmatmul.mubr.msk.f32.vlgmr.msra.gmra.mrb[24].mxu1 %vm2140_vm11, %v6483_v11  ;;  %8150 = vst [vmem:[#allocation22_spill] sm:$0xff] %v6505_v35 }
  0xd8   :  { %4790 = vmatpush3.bf16.msra.mxu1 %v4787_v44  ;;  %4518 = vmatprep.mubr.msk.f32.mxu1 %vm2140_vm11, %v6487_v28 }
  0xd9   :  { %4432 = vmatmul.mubr.f32.gmra.mrb[8].mxu0 %v8127_v58  ;;  %4792 = vmatprep.subr.bf16.mxu1 %v4791_v25  ;;  %v4795_v58 = vpack.c.bf16 %v6398_v20, %v6393_v37  ;;  %v1894_v37 = vadd.s32 80, %v6441_v62  ;;  %v6539_v20 = vsel %vm1912_vm10, 1.0, %v8139_v51 }
  0xda   :  { %4750 = vmatpush3.bf16.xpose.msra.mxu0 %v5466_v43  ;;  %4434 = vmatprep.mubr.f32.mxu0 %v8128_v45  ;;  %v6521_v43 = vsel %vm1910_vm8, 1.0, %v8139_v51  ;;  %v6525_v45 = vsel %vm1911_vm9, 1.0, %v8139_v51  ;;  %8153 = vst [vmem:[#allocation26_spill] sm:$0xff] %v6539_v20 }
  0xdb   :  { %4519 = vmatmul.mubr.msk.f32.gmra.mrb[26].mxu1 %vm2140_vm11, %v6501_v48  ;;  %4752 = vmatprep.subr.bf16.mxu0 %v5540_v4  ;;  %8151 = vst [vmem:[#allocation23_spill] sm:$0xff] %v6521_v43  ;;  %8152 = vst [vmem:[#allocation21_spill] sm:$0xff] %v6525_v45  ;;  %vm1915_vm0 = vcmp.eq.s32.totalorder %v1894_v37, %v6455_v53 }
  0xdc   :  { %4794 = vmatpush3.bf16.msra.mxu1 %v4791_v25  ;;  %4521 = vmatprep.mubr.msk.f32.mxu1 %vm2140_vm11, %v6505_v35 }
  0xdd   :  { %4435 = vmatmul.mubr.f32.gmra.mrb[10].mxu0 %v8131_v63  ;;  %4796 = vmatprep.subr.bf16.mxu1 %v4795_v58  ;;  %v4799_v63 = vpack.c.bf16 %v6420_v24, %v6406_v22  ;;  %v1896_v22 = vadd.s32 96, %v6441_v62  ;;  %v1898_v24 = vadd.s32 112, %v6441_v62 }
  0xde   :  { %4437 = vmatprep.mubr.f32.mxu0 %v8132_v5  ;;  %v6543_v5 = vsel %vm1913_vm13, 1.0, %v8139_v51  ;;  %vm1920_vm13 = vcmp.eq.s32.totalorder %v1899_v26, %v6455_v53 }
  0xdf   :  { %4522 = vmatmul.mubr.msk.f32.gmra.mrb[28].mxu1 %vm2140_vm11, %v6521_v43  ;;  %8154 = vst [vmem:[#allocation31_spill] sm:$0xff] %v6543_v5  ;;  %vm1917_vm8 = vcmp.eq.s32.totalorder %v1896_v22, %v6455_v53  ;;  %vm1919_vm10 = vcmp.eq.s32.totalorder %v1898_v24, %v6455_v53 }
  0xe0   :  { %4798 = vmatpush3.bf16.msra.mxu1 %v4795_v58  ;;  %4524 = vmatprep.mubr.msk.f32.mxu1 %vm2140_vm11, %v6525_v45  ;;  %v6576_v23 = vsel %vm1917_vm8, 1.0, %v8139_v51  ;;  %v6591_v38 = vsel %vm1919_vm10, 1.0, %v8139_v51  ;;  %vm1601_vm8 = vcmask 195712   ;;  %vm1615_vm10 = vcmask 326912  }
  0xe1   :  { %4438 = vmatmul.mubr.f32.gmra.mrb[12].mxu0 %v5992_v49  ;;  %4800 = vmatprep.subr.bf16.mxu1 %v4799_v63  ;;  %v6557_v49 = vsel %vm1914_vm7, 1.0, %v8139_v51  ;;  %8158 = vst [vmem:[#allocation32_spill] sm:$0xff] %v6576_v23  ;;  %8160 = vst [vmem:[#allocation30_spill] sm:$0xff] %v6591_v38 }
  0xe2   :  { %4754 = vmatpush3.bf16.xpose.msra.mxu0 %v5540_v4  ;;  %4440 = vmatprep.mubr.f32.mxu0 %v5994_v41  ;;  %8155 = vst [vmem:[#allocation27_spill] sm:$0xff] %v6557_v49  ;;  %v6561_v4 = vsel %vm1915_vm0, 1.0, %v8139_v51  ;;  %v1897_v41 = vadd.s32 104, %v6441_v62 }
  0xe3   :  { %4525 = vmatmul.mubr.msk.f32.gmra.mrb[30].mxu1 %vm2140_vm11, %v6539_v20  ;;  %4756 = vmatprep.subr.bf16.mxu0 %v5598_v60  ;;  %8156 = vst [vmem:[#allocation28_spill] sm:$0xff] %v6561_v4  ;;  %v139_v56 = vpop.xlane.xlu0 %138 }
  0xe4   :  { %4802 = vmatpush3.bf16.msra.mxu1 %v4799_v63  ;;  %4527 = vmatprep.mubr.msk.f32.mxu1 %vm2140_vm11, %v6543_v5  ;;  %vm1918_vm9 = vcmp.eq.s32.totalorder %v1897_v41, %v6455_v53 }
  0xe5   :  { %4441 = vmatmul.mubr.f32.gmra.mrb[14].mxu0 %v6031_v18  ;;  %v6573_v18 = vsel %vm1916_vm15, 1.0, %v8139_v51  ;;  %vm1594_vm15 = vcmask 130112  }
  0xe6   :  { %4475 = vmatprep.mubr.f32.mxu0 %v5710_v31  ;;  %8157 = vst [vmem:[#allocation29_spill] sm:$0xff] %v6573_v18  ;;  %v6588_v31 = vsel %vm1918_vm9, 1.0, %v8139_v51  ;;  %vm1608_vm9 = vcmask 261312  }
  0xe7   :  { %4528 = vmatmul.mubr.msk.f32.gmra.mrb[32].mxu1 %vm2140_vm11, %v6557_v49  ;;  %8159 = vst [vmem:[#allocation35_spill] sm:$0xff] %v6588_v31 }
  0xe8   :  { %4530 = vmatprep.mubr.msk.f32.mxu1 %vm2140_vm11, %v6561_v4 }
  0xe9   :  { %v145_v12 = vpop.xlane.xlu0 %144 }
  0xea   :  { %4758 = vmatpush3.bf16.xpose.msra.mxu0 %v5598_v60  ;;  %v6599_v60 = vsel %vm1920_vm13, 1.0, %v8139_v51  ;;  %vm1622_vm13 = vcmask 392512  }
  0xeb   :  { %4531 = vmatmul.mubr.msk.f32.gmra.mrb[34].mxu1 %vm2140_vm11, %v6573_v18  ;;  %4760 = vmatprep.subr.bf16.mxu0 %v8089_v57  ;;  %8161 = vst [vmem:[#allocation33_spill] sm:$0xff] %v6599_v60 }
  0xec   :  { %4533 = vmatprep.mubr.msk.f32.mxu1 %vm2140_vm11, %v6576_v23 }
  0xef   :  { %4534 = vmatmul.mubr.msk.f32.gmra.mrb[36].mxu1 %vm2140_vm11, %v6588_v31 }
  0xf0   :  { %4536 = vmatprep.mubr.msk.f32.mxu1 %vm2140_vm11, %v6591_v38 }
  0xf1   :  { %v148_v47 = vpop.xlane.xlu0 %147 }
  0xf2   :  { %4762 = vmatpush3.bf16.xpose.msra.mxu0 %v8089_v57  ;;  %v2009_v57 = vld [vmem:[%s7840_s4] sm:$0x1] }
  0xf3   :  { %4537 = vmatmul.mubr.msk.f32.gmra.mrb[38].mxu1 %vm2140_vm11, %v6599_v60  ;;  %4764 = vmatprep.subr.bf16.mxu0 %v8095_v40  ;;  %vm2114_vm7 = vcmp.gt.f32.partialorder %v2009_v57, 0.1  ;;  %vm2116_vm0 = vcmp.ne.f32.partialorder %v2009_v57, 0.0 }
  0xf4   :  { %4555 = vmatprep.mubr.msk.f32.mxu1 %vm2140_vm11, %v6468_v54 }
  0xf5   :  { %v154_v37 = vpop.xlane.xlu0 %153 }
  0xf7   :  { %4556 = vmatmul.mubr.msk.f32.vlgmr.msra.gmra.mrb[40].mxu1 %vm2140_vm11, %v6483_v11 }
  0xf8   :  { %4558 = vmatprep.mubr.msk.f32.mxu1 %vm2140_vm11, %v6487_v28 }
  0xf9   :  { %v160_v41 = vpop.xlane.xlu0 %159 }
  0xfa   :  { %4766 = vmatpush3.bf16.xpose.msra.mxu0 %v8095_v40  ;;  %v2121_v40 = vsub.s32 0, %v6441_v62 }
  0xfb   :  { %4559 = vmatmul.mubr.msk.f32.gmra.mrb[42].mxu1 %vm2140_vm11, %v6501_v48  ;;  %4768 = vmatprep.subr.bf16.mxu0 %v8100_v21 }
  0xfc   :  { %4561 = vmatprep.mubr.msk.f32.mxu1 %vm2140_vm11, %v6505_v35 }
  0xff   :  { %4562 = vmatmul.mubr.msk.f32.gmra.mrb[44].mxu1 %vm2140_vm11, %v6521_v43 }
 0x100   :  { %4564 = vmatprep.mubr.msk.f32.mxu1 %vm2140_vm11, %v6525_v45 }
 0x102   :  { %4770 = vmatpush3.bf16.xpose.msra.mxu0 %v8100_v21  ;;  %v2115_v21 = vsel %vm2114_vm7, 1.0, %v8139_v51  ;;  %vm1629_vm7 = vcmask 458112  }
 0x103   :  { %4565 = vmatmul.mubr.msk.f32.gmra.mrb[46].mxu1 %vm2140_vm11, %v6539_v20 }
 0x104   :  { %4567 = vmatprep.mubr.msk.f32.mxu1 %vm2140_vm11, %v6543_v5 }
 0x107   :  { %4568 = vmatmul.mubr.msk.f32.gmra.mrb[48].mxu1 %vm2140_vm11, %v6557_v49 }
 0x108   :  { %4570 = vmatprep.mubr.msk.f32.mxu1 %vm2140_vm11, %v6561_v4 }
 0x109   :  { %4476 = vmatmul.mubr.f32.vlgmr.msra.gmra.mrb[0].mxu0 %v8106_v9  ;;  %v6652_v9 = vrot.slane %v2115_v21, %v2121_v40 }
 0x10a   :  { %4478 = vmatprep.mubr.f32.mxu0 %v8107_v33 }
 0x10b   :  { %4571 = vmatmul.mubr.msk.f32.gmra.mrb[50].mxu1 %vm2140_vm11, %v6573_v18  ;;  %8162 = vst [vmem:[#allocation36_spill] sm:$0xff] %v6652_v9  ;;  %v2124_v33 = vmul.f32 %v6468_v54, %v6652_v9  ;;  %v2126_v6 = vmul.f32 %v6487_v28, %v6652_v9  ;;  %v2125_v2 = vmul.f32 %v6483_v11, %v6652_v9 }
 0x10c   :  { %4573 = vmatprep.mubr.msk.f32.mxu1 %vm2140_vm11, %v6576_v23 }
 0x10d   :  { %4479 = vmatmul.mubr.f32.gmra.mrb[2].mxu0 %v8111_v10  ;;  %v2117_v10 = vsel %vm2116_vm0, 1.0, %v8139_v51  ;;  %v2147_v61 = vsel %vm2140_vm11, %v2126_v6, 0.0  ;;  %v2144_v7 = vsel %vm2140_vm11, %v2125_v2, 0.0  ;;  %vm1636_vm0 = vcmask 523712  }
 0x10e   :  { %4481 = vmatprep.mubr.f32.mxu0 %v8112_v50  ;;  %v2141_v50 = vsel %vm2140_vm11, %v2124_v33, 0.0  ;;  %2145 = vadd.xlane.f32.xlu0 %v2144_v7  ;;  %v1589_v33 = vadd.s32 4294967288, %v6324_v8 }
 0x10f   :  { %4574 = vmatmul.mubr.msk.f32.gmra.mrb[52].mxu1 %vm2140_vm11, %v6588_v31  ;;  %2142 = vadd.xlane.f32.xlu1 %v2141_v50 }
 0x110   :  { %4576 = vmatprep.mubr.msk.f32.mxu1 %vm2140_vm11, %v6591_v38  ;;  %v1592_v6 = vsub.s32 %v1589_v33, %v6441_v62 }
 0x111   :  { %4482 = vmatmul.mubr.f32.gmra.mrb[4].mxu0 %v8117_v27  ;;  %v6658_v27 = vrot.slane %v2117_v10, %v2121_v40  ;;  %v166_v10 = vpop.xlane.xlu0 %165 }
 0x112   :  { %4484 = vmatprep.mubr.f32.mxu0 %v8118_v39 }
 0x113   :  { %4577 = vmatmul.mubr.msk.f32.gmra.mrb[54].mxu1 %vm2140_vm11, %v6599_v60  ;;  %8163 = vst [vmem:[#allocation34_spill] sm:$0xff] %v6658_v27  ;;  %v2195_v39 = vmul.f32 %v6468_v54, %v6658_v27  ;;  %v2196_v30 = vmul.f32 %v6483_v11, %v6658_v27  ;;  %v2197_v34 = vmul.f32 %v6487_v28, %v6658_v27  ;;  %v142_v28 = vpop.xlane.xlu1 %141 }
 0x115   :  { %4485 = vmatmul.mubr.f32.gmra.mrb[6].mxu0 %v8121_v19  ;;  %v2211_v19 = vsel %vm2140_vm11, %v2195_v39, 0.0  ;;  %v2214_v53 = vsel %vm2140_vm11, %v2196_v30, 0.0  ;;  %v2217_v3 = vsel %vm2140_vm11, %v2197_v34, 0.0  ;;  %v1596_v39 = vadd.s32 4294967280, %v6324_v8  ;;  %v6713_v2 = vpop.xlane.xlu0 %171 }
 0x116   :  { %2212 = vadd.xlane.f32.xlu1 %v2211_v19  ;;  %2215 = vadd.xlane.f32.xlu0 %v2214_v53  ;;  %v1587_v19 = vsub.s32 %v6324_v8, %v6441_v62  ;;  %v1593_v34 = vrot.slane %v142_v28, %v1592_v6  ;;  %v1620_v28 = vsub.s32 %v1617_v13, %v6441_v62 }
 0x117   :  { %v151_v63 = vpop.xlane.xlu1 %150  ;;  %v1599_v7 = vsub.s32 %v1596_v39, %v6441_v62 }
 0x118   :  { %v1588_v53 = vrot.slane %v139_v56, %v1587_v19  ;;  %v1624_v56 = vadd.s32 4294967248, %v6324_v8 }
 0x119   :  { %v1600_v59 = vrot.slane %v145_v12, %v1599_v7  ;;  %v6719_v33 = vpop.xlane.xlu0 %177  ;;  %v1631_v12 = vadd.s32 4294967240, %v6324_v8 }
 0x11a   :  { %2148 = vadd.xlane.f32.xlu1 %v2147_v61  ;;  %2218 = vadd.xlane.f32.xlu0 %v2217_v3  ;;  %v1603_v61 = vadd.s32 4294967272, %v6324_v8  ;;  %v1610_v3 = vadd.s32 4294967264, %v6324_v8  ;;  %v1595_v46 = vsel %vm1594_vm15, %v1593_v34, %v1588_v53  ;;  %v1627_v7 = vsub.s32 %v1624_v56, %v6441_v62 }
 0x11b   :  { %v157_v26 = vpop.xlane.xlu1 %156  ;;  %v1602_v39 = vsel %vm1601_vm8, %v1600_v59, %v1595_v46  ;;  %v1621_v34 = vrot.slane %v154_v37, %v1620_v28  ;;  %v1638_v46 = vadd.s32 4294967232, %v6324_v8  ;;  %v1634_v59 = vsub.s32 %v1631_v12, %v6441_v62 }
 0x11c   :  { %v1606_v17 = vsub.s32 %v1603_v61, %v6441_v62  ;;  %v1613_v14 = vsub.s32 %v1610_v3, %v6441_v62  ;;  %v1652_v37 = vadd.s32 4294967216, %v6324_v8  ;;  %vm1643_vm15 = vcmask 589312  }
 0x11d   :  { %v6725_v61 = vpop.xlane.xlu0 %183  ;;  %v1641_v13 = vsub.s32 %v1638_v46, %v6441_v62  ;;  %vm1650_vm8 = vcmask 654912  }
 0x11e   :  { %v1607_v1 = vrot.slane %v148_v47, %v1606_v17  ;;  %v1614_v19 = vrot.slane %v151_v63, %v1613_v14  ;;  %v1628_v17 = vrot.slane %v157_v26, %v1627_v7  ;;  %v1659_v26 = vadd.s32 4294967208, %v6324_v8 }
 0x11f   :  { %v163_v50 = vpop.xlane.xlu1 %162  ;;  %v1655_v7 = vsub.s32 %v1652_v37, %v6441_v62 }
 0x120   :  { %v1609_v6 = vsel %vm1608_vm9, %v1607_v1, %v1602_v39  ;;  %v1645_v1 = vadd.s32 4294967224, %v6324_v8  ;;  %v1635_v39 = vrot.slane %v160_v41, %v1634_v59  ;;  %v1666_v41 = vadd.s32 4294967200, %v6324_v8 }
 0x121   :  { %v1616_v3 = vsel %vm1615_vm10, %v1614_v19, %v1609_v6  ;;  %v6731_v14 = vpop.xlane.xlu0 %77  ;;  %v1642_v19 = vrot.slane %v163_v50, %v1641_v13  ;;  %v1662_v59 = vsub.s32 %v1659_v26, %v6441_v62  ;;  %vm1657_vm9 = vcmask 720512  }
 0x122   :  { %v1623_v47 = vsel %vm1622_vm13, %v1621_v34, %v1616_v3  ;;  %v1648_v28 = vsub.s32 %v1645_v1, %v6441_v62  ;;  %v1673_v13 = vadd.s32 4294967192, %v6324_v8  ;;  %vm1664_vm10 = vcmask 786112  }
 0x123   :  { %v169_v30 = vpop.xlane.xlu1 %168  ;;  %v1630_v56 = vsel %vm1629_vm7, %v1628_v17, %v1623_v47  ;;  %vm1671_vm13 = vcmask 851712   ;;  %vm1678_vm7 = vcmask 917312  }
 0x124   :  { %v1637_v6 = vsel %vm1636_vm0, %v1635_v39, %v1630_v56  ;;  %v1649_v3 = vrot.slane %v166_v10, %v1648_v28  ;;  %v1656_v47 = vrot.slane %v169_v30, %v1655_v7  ;;  %v1669_v56 = vsub.s32 %v1666_v41, %v6441_v62 }
 0x125   :  { %v6739_v12 = vpop.xlane.xlu0 %83  ;;  %v1644_v46 = vsel %vm1643_vm15, %v1642_v19, %v1637_v6  ;;  %v1663_v10 = vrot.slane %v6713_v2, %v1662_v59  ;;  %v1680_v6 = vadd.s32 4294967184, %v6324_v8  ;;  %v1676_v30 = vsub.s32 %v1673_v13, %v6441_v62 }
 0x126   :  { %v1651_v1 = vsel %vm1650_vm8, %v1649_v3, %v1644_v46  ;;  %v1687_v46 = vadd.s32 4294967176, %v6324_v8  ;;  %vm1685_vm0 = vcmask 982912   ;;  %vm1692_vm15 = vcmask 1048512  }
 0x127   :  { %v175_v15 = vpop.xlane.xlu1 %174  ;;  %v1658_v19 = vsel %vm1657_vm9, %v1656_v47, %v1651_v1  ;;  %v1683_v29 = vsub.s32 %v1680_v6, %v6441_v62  ;;  %v1677_v59 = vrot.slane %v6719_v33, %v1676_v30 }
 0x128   :  { %v1670_v7 = vrot.slane %v175_v15, %v1669_v56  ;;  %v1665_v3 = vsel %vm1664_vm10, %v1663_v10, %v1658_v19  ;;  %v1690_v1 = vsub.s32 %v1687_v46, %v6441_v62 }
 0x129   :  { %v6747_v39 = vpop.xlane.xlu0 %89 }
 0x12a   :  { %v1672_v47 = vsel %vm1671_vm13, %v1670_v7, %v1665_v3  ;;  %v1691_v6 = vrot.slane %v6725_v61, %v1690_v1 }
 0x12b   :  { %v181_v53 = vpop.xlane.xlu1 %180  ;;  %v1679_v8 = vsel %vm1678_vm7, %v1677_v59, %v1672_v47 }
 0x12c   :  { %v1684_v15 = vrot.slane %v181_v53, %v1683_v29 }
 0x12d   :  { %v6756_v36 = vpop.xlane.xlu0 %95 }
 0x12e   :  { %v1686_v31 = vsel %vm1685_vm0, %v1684_v15, %v1679_v8 }
 0x12f   :  { %v6734_v63 = vpop.xlane.xlu1 %74  ;;  %v6773_v3 = vsel %vm1692_vm15, %v1691_v6, %v1686_v31 }
 0x131   :  { %v102_v10 = vpop.xlane.xlu0 %101 }
 0x132   :  { %v1716_v8 = vadd.f32 %v6773_v3, %v102_v10 }
 0x133   :  { %v6742_v34 = vpop.xlane.xlu1 %80 }
 0x135   :  { %v108_v29 = vpop.xlane.xlu0 %107 }
 0x136   :  { %v1718_v10 = vadd.f32 %v6773_v3, %v108_v29 }
 0x137   :  { %v6750_v37 = vpop.xlane.xlu1 %86 }
 0x13b   :  { %v6759_v60 = vpop.xlane.xlu1 %92 }
 0x13f   :  { %v99_v19 = vpop.xlane.xlu1 %98 }
 0x140   :  { %v1715_v31 = vadd.f32 %v6773_v3, %v99_v19 }
 0x143   :  { %v105_v59 = vpop.xlane.xlu1 %104 }
 0x15a   :  { %v6672_v16 = vpop.f32.mrb[0].mxu1 }
 0x15b   :  { %v6676_v54 = vpop.f32.mrb[1].mxu1 }
 0x15e   :  { %v6679_v32 = vpop.f32.mrb[2].mxu1 }
 0x15f   :  { %v6681_v44 = vpop.f32.mrb[3].mxu1 }
 0x162   :  { %v6683_v11 = vpop.f32.mrb[4].mxu1 }
 0x163   :  { %v6685_v55 = vpop.f32.mrb[5].mxu1 }
 0x166   :  { %v6687_v25 = vpop.f32.mrb[6].mxu1 }
 0x167   :  { %v6689_v0 = vpop.f32.mrb[7].mxu1 }
 0x16a   :  { %v6691_v58 = vpop.f32.mrb[8].mxu1 }
 0x16b   :  { %v6693_v52 = vpop.f32.mrb[9].mxu1 }
 0x16e   :  { %v6695_v42 = vpop.f32.mrb[10].mxu1 }
 0x16f   :  { %v6697_v22 = vpop.f32.mrb[11].mxu1 }
 0x172   :  { %v6699_v24 = vpop.f32.mrb[12].mxu1 }
 0x173   :  { %v6701_v57 = vpop.f32.mrb[13].mxu1 }
 0x176   :  { %v6703_v40 = vpop.f32.mrb[14].mxu1 }
 0x177   :  { %v6705_v21 = vpop.f32.mrb[15].mxu1 }
 0x19a   :  { %v4489_v17 = vpop.f32.mrb[16].mxu1 }
 0x19b   :  { %v1521_v50 = vpop.f32.mrb[17].mxu1 }
 0x19e   :  { %v4492_v28 = vpop.f32.mrb[18].mxu1 }
 0x19f   :  { %v1533_v26 = vpop.f32.mrb[19].mxu1 }
 0x1a2   :  { %v4495_v41 = vpop.f32.mrb[20].mxu1 }
 0x1a3   :  { %v1545_v2 = vpop.f32.mrb[21].mxu1 }
 0x1a6   :  { %v6763_v13 = vpop.f32.mrb[22].mxu1 }
 0x1a7   :  { %v6765_v56 = vpop.f32.mrb[23].mxu1 }
 0x1aa   :  { %v6768_v38 = vpop.f32.mrb[24].mxu1 }
 0x1ab   :  { %v6770_v33 = vpop.f32.mrb[25].mxu1 }
 0x1ac   :  { %v4433_v30 = vpop.f32.mrb[8].mxu0 }
 0x1ad   :  { %v4827_v62 = vadd.f32 %v4433_v30, %v6691_v58  ;;  %v1344_v7 = vpop.f32.mrb[9].mxu0 }
 0x1ae   :  { %v4829_v53 = vadd.f32 %v1344_v7, %v6693_v52  ;;  %v6776_v46 = vpop.f32.mrb[26].mxu1 }
 0x1af   :  { %v4828_v47 = vadd.f32 %v4827_v62, %v4489_v17  ;;  %v6778_v61 = vpop.f32.mrb[27].mxu1  ;;  %v114_v62 = vpop.xlane.xlu0 %113 }
 0x1b0   :  { %v4830_v1 = vadd.f32 %v4829_v53, %v1521_v50  ;;  %v4436_v15 = vpop.f32.mrb[10].mxu0 }
 0x1b1   :  { %v1732_v23 = vmul.f32 2.0, %v4828_v47  ;;  %v4831_v4 = vadd.f32 %v4436_v15, %v6695_v42  ;;  %v1356_v58 = vpop.f32.mrb[11].mxu0  ;;  %v111_v47 = vpop.xlane.xlu1 %110 }
 0x1b2   :  { %v1731_v6 = vmul.f32 2.0, %v4830_v1  ;;  %v4833_v30 = vadd.f32 %v1356_v58, %v6697_v22  ;;  %v6784_v52 = vpop.f32.mrb[28].mxu1  ;;  %v1717_v22 = vadd.f32 %v6773_v3, %v105_v59 }
 0x1b3   :  { %v1748_v7 = vsub.f32 %v1716_v8, %v1732_v23  ;;  %v4832_v49 = vadd.f32 %v4831_v4, %v4492_v28  ;;  %v6786_v17 = vpop.f32.mrb[29].mxu1 }
 0x1b4   :  { %v1747_v50 = vsub.f32 %v1715_v31, %v1731_v6  ;;  %v4834_v53 = vadd.f32 %v4833_v30, %v1533_v26  ;;  %v4439_v18 = vpop.f32.mrb[12].mxu0 }
 0x1b5   :  { %v6789_v42 = vmax.f32 %v1748_v7, 1e-12  ;;  %v1734_v15 = vmul.f32 2.0, %v4832_v49  ;;  %v4835_v19 = vadd.f32 %v4439_v18, %v6699_v24  ;;  %v1368_v1 = vpop.f32.mrb[13].mxu0  ;;  %v1720_v49 = vadd.f32 %v6773_v3, %v114_v62 }
 0x1b6   :  { %v6793_v58 = vmax.f32 %v1747_v50, 1e-12  ;;  %v1733_v4 = vmul.f32 2.0, %v4834_v53  ;;  %v4837_v23 = vadd.f32 %v1368_v1, %v6701_v57  ;;  %v6796_v28 = vpop.f32.mrb[30].mxu1  ;;  %v1719_v57 = vadd.f32 %v6773_v3, %v111_v47 }
 0x1b7   :  { %v1750_v26 = vsub.f32 %v1718_v10, %v1734_v15  ;;  %v4836_v8 = vadd.f32 %v4835_v19, %v4495_v41  ;;  %v6798_v31 = vpop.f32.mrb[31].mxu1  ;;  %4968 = vrsqrt.f32 %v6789_v42  ;;  %v120_v41 = vpop.xlane.xlu0 %119  ;;  %vm1836_vm8 = vcmp.eq.f32.partialorder %v6789_v42, inf }
 0x1b8   :  { %v1749_v29 = vsub.f32 %v1717_v22, %v1733_v4  ;;  %v4838_v18 = vadd.f32 %v4837_v23, %v1545_v2  ;;  %v4442_v24 = vpop.f32.mrb[14].mxu0  ;;  %4970 = vrsqrt.f32 %v6793_v58  ;;  %v117_v2 = vpop.xlane.xlu1 %116  ;;  %v1722_v47 = vadd.f32 %v6773_v3, %v120_v41 }
 0x1b9   :  { %v6802_v6 = vmax.f32 %v1750_v26, 1e-12  ;;  %v1736_v59 = vmul.f32 2.0, %v4836_v8  ;;  %v4839_v30 = vadd.f32 %v4442_v24, %v6703_v40  ;;  %v1380_v7 = vpop.f32.mrb[15].mxu0  ;;  %vm1838_vm9 = vcmp.eq.f32.partialorder %v6789_v42, 0.0 }
 0x1ba   :  { %v6807_v50 = vmax.f32 %v1749_v29, 1e-12  ;;  %v1735_v53 = vmul.f32 2.0, %v4838_v18  ;;  %v4841_v10 = vadd.f32 %v1380_v7, %v6705_v21  ;;  %v6810_v62 = vpop.f32.mrb[32].mxu1  ;;  %v1721_v21 = vadd.f32 %v6773_v3, %v117_v2 }
 0x1bb   :  { %v1752_v15 = vsub.f32 %v1720_v49, %v1736_v59  ;;  %v4840_v19 = vadd.f32 %v4839_v30, %v6763_v13  ;;  %v6813_v1 = vpop.f32.mrb[33].mxu1  ;;  %4972 = vrsqrt.f32 %v6802_v6  ;;  %v1839_v59 = vand.u32 2147483648, %v6789_v42 }
 0x1bc   :  { %v1751_v40 = vsub.f32 %v1719_v57, %v1735_v53  ;;  %v4842_v22 = vadd.f32 %v4841_v10, %v6765_v56  ;;  %4974 = vrsqrt.f32 %v6807_v50  ;;  %vm1829_vm10 = vcmp.eq.f32.partialorder %v6793_v58, inf }
 0x1bd   :  { %v6818_v4 = vmax.f32 %v1752_v15, 1e-12  ;;  %v1738_v23 = vmul.f32 2.0, %v4840_v19  ;;  %vm1831_vm13 = vcmp.eq.f32.partialorder %v6793_v58, 0.0  ;;  %v1832_v57 = vand.u32 2147483648, %v6793_v58 }
 0x1be   :  { %v6821_v26 = vmax.f32 %v1751_v40, 1e-12  ;;  %v1737_v8 = vmul.f32 2.0, %v4842_v22  ;;  %v6823_v49 = vpop.f32.mrb[34].mxu1  ;;  %vm1850_vm7 = vcmp.eq.f32.partialorder %v6802_v6, inf  ;;  %vm1852_vm0 = vcmp.eq.f32.partialorder %v6802_v6, 0.0 }
 0x1bf   :  { %v1754_v13 = vsub.f32 %v1722_v47, %v1738_v23  ;;  %v6826_v29 = vpop.f32.mrb[35].mxu1  ;;  %4976 = vrsqrt.f32 %v6818_v4  ;;  %v1853_v10 = vand.u32 2147483648, %v6802_v6  ;;  %vm1843_vm15 = vcmp.eq.f32.partialorder %v6807_v50, inf }
 0x1c0   :  { %v1753_v56 = vsub.f32 %v1721_v21, %v1737_v8  ;;  %4978 = vrsqrt.f32 %v6821_v26  ;;  %vm1845_vm4 = vcmp.eq.f32.partialorder %v6807_v50, 0.0  ;;  %v1846_v22 = vand.u32 2147483648, %v6807_v50 }
 0x1c1   :  { %v4969_v18 = vpop.eup %4968  ;;  %v6831_v24 = vmax.f32 %v1754_v13, 1e-12  ;;  %vm1864_vm3 = vcmp.eq.f32.partialorder %v6818_v4, inf  ;;  %v1867_v8 = vand.u32 2147483648, %v6818_v4  ;;  %vm1859_vm14 = vcmp.eq.f32.partialorder %v6821_v26, 0.0 }
 0x1c2   :  { %v6836_v30 = vmax.f32 %v1753_v56, 1e-12  ;;  %v1835_v7 = vmul.f32 %v4969_v18, %v6789_v42  ;;  %v6841_v41 = vpop.f32.mrb[36].mxu1  ;;  %v4971_v53 = vpop.eup %4970 }
 0x1c3   :  { %v6846_v2 = vpop.f32.mrb[37].mxu1  ;;  %4980 = vrsqrt.f32 %v6831_v24  ;;  %v1828_v19 = vmul.f32 %v4971_v53, %v6793_v58 }
 0x1c4   :  { %v1837_v15 = vsel %vm1836_vm8, %v6789_v42, %v1835_v7  ;;  %4982 = vrsqrt.f32 %v6836_v30  ;;  %vm1866_vm8 = vcmp.eq.f32.partialorder %v6818_v4, 0.0 }
 0x1c5   :  { %v6857_v40 = vsel %vm1838_vm9, %v1839_v59, %v1837_v15  ;;  %v4973_v47 = vpop.eup %4972  ;;  %v1830_v21 = vsel %vm1829_vm10, %v6793_v58, %v1828_v19  ;;  %vm1857_vm9 = vcmp.eq.f32.partialorder %v6821_v26, inf  ;;  %v1860_v15 = vand.u32 2147483648, %v6821_v26 }
 0x1c6   :  { %v3900_v23 = vadd.f32 -0.1, %v6857_v40  ;;  %v6868_v42 = vpop.f32.mrb[38].mxu1  ;;  %v6872_v13 = vsel %vm1831_vm13, %v1832_v57, %v1830_v21  ;;  %v1849_v56 = vmul.f32 %v4973_v47, %v6802_v6  ;;  %v4975_v59 = vpop.eup %4974  ;;  %vm1878_vm10 = vcmp.eq.f32.partialorder %v6831_v24, inf }
 0x1c7   :  { %v6877_v18 = vpop.f32.mrb[39].mxu1  ;;  %v3899_v53 = vadd.f32 -0.1, %v6872_v13  ;;  %v1842_v57 = vmul.f32 %v4975_v59, %v6807_v50  ;;  %vm1880_vm13 = vcmp.eq.f32.partialorder %v6831_v24, 0.0  ;;  %v1881_v47 = vand.u32 2147483648, %v6831_v24 }
 0x1c8   :  { %v2715_v7 = vmax.f32 %v3900_v23, 0.0  ;;  %v1851_v58 = vsel %vm1850_vm7, %v6802_v6, %v1849_v56  ;;  %v2747_v5 = vmul.f32 40.0, %v3900_v23  ;;  %vm1871_vm7 = vcmp.eq.f32.partialorder %v6836_v30, inf }
 0x1c9   :  { %v4977_v19 = vpop.eup %4976  ;;  %v2714_v20 = vmax.f32 %v3899_v53, 0.0  ;;  %v6891_v51 = vsel %vm1852_vm0, %v1853_v10, %v1851_v58  ;;  %v2746_v35 = vmul.f32 40.0, %v3899_v53  ;;  %v1844_v59 = vsel %vm1843_vm15, %v6807_v50, %v1842_v57 }
 0x1ca   :  { %v2731_v21 = vmul.f32 %v6810_v62, %v2715_v7  ;;  %v6893_v45 = vpop.f32.mrb[40].mxu1  ;;  %v4979_v43 = vpop.eup %4978  ;;  %v3902_v56 = vadd.f32 -0.1, %v6891_v51  ;;  %v1863_v9 = vmul.f32 %v4977_v19, %v6818_v4  ;;  %v6907_v10 = vsel %vm1845_vm4, %v1846_v22, %v1844_v59 }
 0x1cb   :  { %v6900_v48 = vpop.f32.mrb[41].mxu1  ;;  %v2730_v6 = vmul.f32 %v2714_v20, %v6813_v1  ;;  %v1856_v23 = vmul.f32 %v4979_v43, %v6821_v26  ;;  %v3901_v58 = vadd.f32 -0.1, %v6907_v10 }
 0x1cc   :  { %v6902_v62 = vmul.f32 %v2747_v5, %v2731_v21  ;;  %v2717_v53 = vmax.f32 %v3902_v56, 0.0  ;;  %v1865_v19 = vsel %vm1864_vm3, %v6818_v4, %v1863_v9  ;;  %v2749_v22 = vmul.f32 40.0, %v3902_v56 }
 0x1cd   :  { %v4981_v7 = vpop.eup %4980  ;;  %v6915_v57 = vmul.f32 %v2746_v35, %v2730_v6  ;;  %v6919_v20 = vsel %vm1866_vm8, %v1867_v8, %v1865_v19  ;;  %v1858_v43 = vsel %vm1857_vm9, %v6821_v26, %v1856_v23  ;;  %v2716_v21 = vmax.f32 %v3901_v58, 0.0 }
 0x1ce   :  { %8164 = vst [vmem:[#allocation37_spill] sm:$0xff] %v6902_v62  ;;  %v4983_v5 = vpop.eup %4982  ;;  %v1877_v50 = vmul.f32 %v4981_v7, %v6831_v24  ;;  %v6925_v1 = vpop.f32.mrb[42].mxu1  ;;  %2788 = vmax.xlane.f32.xlu1 %v6902_v62  ;;  %v2733_v9 = vmul.f32 %v6823_v49, %v2717_v53  ;;  %v3904_v35 = vadd.f32 -0.1, %v6919_v20  ;;  %v6934_v4 = vsel %vm1859_vm14, %v1860_v15, %v1858_v43 }
 0x1cf   :  { %8165 = vst [vmem:[#allocation38_spill] sm:$0xff] %v6915_v57  ;;  %v6930_v59 = vpop.f32.mrb[43].mxu1  ;;  %v1870_v6 = vmul.f32 %v4983_v5, %v6836_v30  ;;  %vm1873_vm3 = vcmp.eq.f32.partialorder %v6836_v30, 0.0  ;;  %v2732_v49 = vmul.f32 %v2716_v21, %v6826_v29  ;;  %v2748_v56 = vmul.f32 40.0, %v3901_v58 }
 0x1d0   :  { %v1879_v8 = vsel %vm1878_vm10, %v6831_v24, %v1877_v50  ;;  %v6941_v23 = vmul.f32 %v2749_v22, %v2733_v9  ;;  %v2719_v7 = vmax.f32 %v3904_v35, 0.0  ;;  %v3903_v53 = vadd.f32 -0.1, %v6934_v4 }
 0x1d1   :  { %v6947_v26 = vsel %vm1880_vm13, %v1881_v47, %v1879_v8  ;;  %v1872_v15 = vsel %vm1871_vm7, %v6836_v30, %v1870_v6  ;;  %v1874_v19 = vand.u32 2147483648, %v6836_v30  ;;  %v6956_v43 = vmul.f32 %v2748_v56, %v2732_v49 }
 0x1d2   :  { %8166 = vst [vmem:[#allocation40_spill] sm:$0xff] %v6941_v23  ;;  %v6953_v5 = vpop.f32.mrb[44].mxu1  ;;  %2786 = vmax.xlane.f32.xlu1 %v6915_v57  ;;  %v2735_v29 = vmul.f32 %v6841_v41, %v2719_v7  ;;  %v2751_v58 = vmul.f32 40.0, %v3904_v35  ;;  %v3906_v50 = vadd.f32 -0.1, %v6947_v26  ;;  %v2718_v47 = vmax.f32 %v3903_v53, 0.0 }
 0x1d3   :  { %8167 = vst [vmem:[#allocation39_spill] sm:$0xff] %v6956_v43  ;;  %v6960_v24 = vpop.f32.mrb[45].mxu1  ;;  %v6964_v9 = vsel %vm1873_vm3, %v1874_v19, %v1872_v15  ;;  %v2750_v6 = vmul.f32 40.0, %v3903_v53  ;;  %v3177_v41 = vsub.f32 1.4, %v6857_v40  ;;  %v1708_v19 = vadd.f32 %v6773_v3, %v6731_v14 }
 0x1d4   :  { %v6966_v22 = vmul.f32 %v2751_v58, %v2735_v29  ;;  %v2721_v21 = vmax.f32 %v3906_v50, 0.0  ;;  %v2734_v8 = vmul.f32 %v2718_v47, %v6846_v2  ;;  %v3905_v49 = vadd.f32 -0.1, %v6964_v9 }
 0x1d5   :  { %v2753_v7 = vmul.f32 40.0, %v3906_v50  ;;  %v3176_v15 = vsub.f32 1.4, %v6872_v13  ;;  %v1707_v2 = vadd.f32 %v6773_v3, %v6734_v63  ;;  %v6986_v58 = vadd.f32 %v6773_v3, %v6739_v12 }
 0x1d6   :  { %v6970_v56 = vpop.f32.mrb[46].mxu1  ;;  %2792 = vmax.xlane.f32.xlu1 %v6941_v23  ;;  %v2737_v35 = vmul.f32 %v6868_v42, %v2721_v21  ;;  %v6982_v53 = vmul.f32 %v2750_v6, %v2734_v8  ;;  %v2720_v29 = vmax.f32 %v3905_v49, 0.0  ;;  %v6990_v40 = vadd.f32 %v6773_v3, %v6742_v34 }
 0x1d7   :  { %v6975_v30 = vpop.f32.mrb[47].mxu1  ;;  %v3179_v13 = vsub.f32 1.4, %v6891_v51  ;;  %v2752_v50 = vmul.f32 40.0, %v3905_v49  ;;  %v3193_v63 = vmax.f32 %v3177_v41, 0.0  ;;  %v3241_v12 = vmul.f32 40.0, %v3177_v41 }
 0x1d8   :  { %8168 = vst [vmem:[#allocation41_spill] sm:$0xff] %v6975_v30  ;;  %v6992_v42 = vmul.f32 %v2753_v7, %v2737_v35  ;;  %v2736_v14 = vmul.f32 %v2720_v29, %v6877_v18  ;;  %v3178_v21 = vsub.f32 1.4, %v6907_v10  ;;  %v3192_v23 = vmax.f32 %v3176_v15, 0.0 }
 0x1d9   :  { %v3181_v34 = vsub.f32 1.4, %v6919_v20  ;;  %v3240_v7 = vmul.f32 40.0, %v3176_v15  ;;  %v3195_v62 = vmax.f32 %v3179_v13, 0.0  ;;  %v3243_v30 = vmul.f32 40.0, %v3179_v13 }
 0x1da   :  { %v4569_v47 = vpop.f32.mrb[48].mxu1  ;;  %2790 = vmax.xlane.f32.xlu1 %v6956_v43  ;;  %v6999_v57 = vmul.f32 %v2752_v50, %v2736_v14  ;;  %v3180_v43 = vsub.f32 1.4, %v6934_v4  ;;  %v3194_v20 = vmax.f32 %v3178_v21, 0.0  ;;  %v3242_v14 = vmul.f32 40.0, %v3178_v21 }
 0x1db   :  { %v3209_v8 = vsub.f32 1.0, %v4569_v47  ;;  %v3129_v6 = vpop.f32.mrb[49].mxu1  ;;  %v3245_v4 = vmul.f32 40.0, %v3181_v34 }
 0x1dc   :  { %v3208_v35 = vsub.f32 1.0, %v3129_v6  ;;  %v4477_v51 = vpop.f32.mrb[0].mxu0  ;;  %v3196_v21 = vmax.f32 %v3180_v43, 0.0 }
 0x1dd   :  { %v3225_v18 = vmul.f32 %v3209_v8, %v3193_v63  ;;  %v4819_v49 = vadd.f32 %v4477_v51, %v6672_v16  ;;  %v1473_v29 = vpop.f32.mrb[1].mxu0  ;;  %v3197_v63 = vmax.f32 %v3181_v34, 0.0 }
 0x1de   :  { %v3224_v10 = vmul.f32 %v3208_v35, %v3192_v23  ;;  %v4820_v41 = vadd.f32 %v1473_v29, %v6676_v54  ;;  %v4572_v47 = vpop.f32.mrb[50].mxu1  ;;  %2796 = vmax.xlane.f32.xlu1 %v6966_v22 }
 0x1df   :  { %v7005_v50 = vmul.f32 %v3241_v12, %v3225_v18  ;;  %v1724_v15 = vmul.f32 2.0, %v4819_v49  ;;  %v3211_v6 = vsub.f32 1.0, %v4572_v47  ;;  %v3139_v27 = vpop.f32.mrb[51].mxu1 }
 0x1e0   :  { %v7007_v8 = vmul.f32 %v3240_v7, %v3224_v10  ;;  %v1723_v16 = vmul.f32 2.0, %v4820_v41  ;;  %v3210_v13 = vsub.f32 1.0, %v3139_v27  ;;  %v4480_v51 = vpop.f32.mrb[2].mxu0  ;;  %v3244_v7 = vmul.f32 40.0, %v3180_v43 }
 0x1e1   :  { %v1740_v23 = vsub.f32 %v1708_v19, %v1724_v15  ;;  %v3227_v35 = vmul.f32 %v3211_v6, %v3195_v62  ;;  %v4821_v54 = vadd.f32 %v4480_v51, %v6679_v32  ;;  %v1485_v29 = vpop.f32.mrb[3].mxu0  ;;  %3282 = vmax.xlane.f32.xlu0 %v7005_v50 }
 0x1e2   :  { %v1739_v12 = vsub.f32 %v1707_v2, %v1723_v16  ;;  %v3226_v18 = vmul.f32 %v3210_v13, %v3194_v20  ;;  %v4822_v49 = vadd.f32 %v1485_v29, %v6681_v44  ;;  %v4575_v47 = vpop.f32.mrb[52].mxu1  ;;  %2794 = vmax.xlane.f32.xlu1 %v6982_v53 }
 0x1e3   :  { %v7013_v10 = vmax.f32 %v1740_v23, 1e-12  ;;  %v7015_v27 = vmul.f32 %v3243_v30, %v3227_v35  ;;  %v1726_v19 = vmul.f32 2.0, %v4821_v54  ;;  %v3213_v62 = vsub.f32 1.0, %v4575_v47  ;;  %v3149_v34 = vpop.f32.mrb[53].mxu1 }
 0x1e4   :  { %v7017_v32 = vmax.f32 %v1739_v12, 1e-12  ;;  %v7019_v41 = vmul.f32 %v3242_v14, %v3226_v18  ;;  %v1725_v15 = vmul.f32 2.0, %v4822_v49  ;;  %v3212_v2 = vsub.f32 1.0, %v3149_v34  ;;  %v4483_v20 = vpop.f32.mrb[4].mxu0 }
 0x1e5   :  { %4984 = vrsqrt.f32 %v7013_v10  ;;  %v1742_v44 = vsub.f32 %v6986_v58, %v1726_v19  ;;  %v3229_v6 = vmul.f32 %v3213_v62, %v3197_v63  ;;  %v1497_v43 = vpop.f32.mrb[5].mxu0  ;;  %3280 = vmax.xlane.f32.xlu0 %v7007_v8  ;;  %v3183_v30 = vsub.f32 1.4, %v6947_v26 }
 0x1e6   :  { %4986 = vrsqrt.f32 %v7017_v32  ;;  %v1741_v16 = vsub.f32 %v6990_v40, %v1725_v15  ;;  %v3228_v13 = vmul.f32 %v3212_v2, %v3196_v21  ;;  %v4823_v14 = vadd.f32 %v4483_v20, %v6683_v11  ;;  %v4578_v51 = vpop.f32.mrb[54].mxu1  ;;  %2800 = vmax.xlane.f32.xlu1 %v6992_v42 }
 0x1e7   :  { %v1711_v23 = vadd.f32 %v6773_v3, %v6750_v37  ;;  %v7031_v58 = vmax.f32 %v1742_v44, 1e-12  ;;  %v7033_v63 = vmul.f32 %v3245_v4, %v3229_v6  ;;  %v4824_v35 = vadd.f32 %v1497_v43, %v6685_v55  ;;  %v3159_v26 = vpop.f32.mrb[55].mxu1 }
 0x1e8   :  { %v1712_v54 = vadd.f32 %v6773_v3, %v6747_v39  ;;  %v7038_v40 = vmax.f32 %v1741_v16, 1e-12  ;;  %v7040_v29 = vmul.f32 %v3244_v7, %v3228_v13  ;;  %v1728_v11 = vmul.f32 2.0, %v4823_v14  ;;  %v4486_v21 = vpop.f32.mrb[6].mxu0 }
 0x1e9   :  { %4988 = vrsqrt.f32 %v7031_v58  ;;  %v1727_v12 = vmul.f32 2.0, %v4824_v35  ;;  %v3199_v37 = vmax.f32 %v3183_v30, 0.0  ;;  %v3215_v18 = vsub.f32 1.0, %v4578_v51  ;;  %v1509_v49 = vpop.f32.mrb[7].mxu0  ;;  %3286 = vmax.xlane.f32.xlu0 %v7015_v27 }
 0x1ea   :  { %v1714_v55 = vadd.f32 %v6773_v3, %v6756_v36  ;;  %v1713_v39 = vadd.f32 %v6773_v3, %v6759_v60  ;;  %v1744_v4 = vsub.f32 %v1712_v54, %v1728_v11  ;;  %v3182_v47 = vsub.f32 1.4, %v6964_v9  ;;  %2798 = vmax.xlane.f32.xlu1 %v6999_v57 }
 0x1eb   :  { %v1743_v7 = vsub.f32 %v1711_v23, %v1727_v12  ;;  %v3231_v19 = vmul.f32 %v3215_v18, %v3199_v37  ;;  %v3247_v62 = vmul.f32 40.0, %v3183_v30  ;;  %v3214_v34 = vsub.f32 1.0, %v3159_v26 }
 0x1ec   :  { %4990 = vrsqrt.f32 %v7038_v40  ;;  %v7051_v15 = vmax.f32 %v1744_v4, 1e-12  ;;  %v3198_v2 = vmax.f32 %v3182_v47, 0.0  ;;  %v4825_v20 = vadd.f32 %v4486_v21, %v6687_v25 }
 0x1ed   :  { %v3201_v36 = vsub.f32 1.0, %v6893_v45  ;;  %v3200_v60 = vsub.f32 1.0, %v6900_v48  ;;  %v7056_v3 = vmul.f32 %v3247_v62, %v3231_v19  ;;  %v4826_v9 = vadd.f32 %v1509_v49, %v6689_v0  ;;  %3284 = vmax.xlane.f32.xlu0 %v7019_v41 }
 0x1ee   :  { %v3203_v44 = vsub.f32 1.0, %v6925_v1  ;;  %v3230_v6 = vmul.f32 %v3214_v34, %v3198_v2  ;;  %v3246_v43 = vmul.f32 40.0, %v3182_v47  ;;  %v1730_v30 = vmul.f32 2.0, %v4825_v20 }
 0x1ef   :  { %v4985_v16 = vpop.eup %4984  ;;  %4992 = vrsqrt.f32 %v7051_v15  ;;  %v7062_v13 = vmax.f32 %v1743_v7, 1e-12  ;;  %v1729_v25 = vmul.f32 2.0, %v4826_v9  ;;  %vm1773_vm4 = vcmp.eq.f32.partialorder %v7017_v32, inf }
 0x1f0   :  { %v4987_v48 = vpop.eup %4986  ;;  %v7065_v45 = vmul.f32 %v3246_v43, %v3230_v6  ;;  %v1746_v14 = vsub.f32 %v1714_v55, %v1730_v30  ;;  %vm1775_vm14 = vcmp.eq.f32.partialorder %v7017_v32, 0.0  ;;  %v1779_v0 = vmul.f32 %v4985_v16, %v7013_v10 }
 0x1f1   :  { %v1745_v51 = vsub.f32 %v1713_v39, %v1729_v25  ;;  %3290 = vmax.xlane.f32.xlu0 %v7033_v63  ;;  %v1772_v23 = vmul.f32 %v4987_v48, %v7017_v32  ;;  %vm1780_vm0 = vcmp.eq.f32.partialorder %v7013_v10, inf  ;;  %v1783_v35 = vand.u32 2147483648, %v7013_v10 }
 0x1f2   :  { %v7073_v26 = vmax.f32 %v1746_v14, 1e-12  ;;  %v1776_v54 = vand.u32 2147483648, %v7017_v32  ;;  %v1781_v11 = vsel %vm1780_vm0, %v7013_v10, %v1779_v0  ;;  %vm1782_vm15 = vcmp.eq.f32.partialorder %v7013_v10, 0.0 }
 0x1f3   :  { %v4989_v21 = vpop.eup %4988  ;;  %4994 = vrsqrt.f32 %v7062_v13  ;;  %v1774_v12 = vsel %vm1773_vm4, %v7017_v32, %v1772_v23  ;;  %v1784_v37 = vsel %vm1782_vm15, %v1783_v35, %v1781_v11  ;;  %vm1794_vm8 = vcmp.eq.f32.partialorder %v7031_v58, inf }
 0x1f4   :  { %v7083_v18 = vmax.f32 %v1745_v51, 1e-12  ;;  %v1777_v49 = vsel %vm1775_vm14, %v1776_v54, %v1774_v12  ;;  %v3892_v55 = vadd.f32 -0.1, %v1784_v37  ;;  %v3169_v39 = vsub.f32 1.4, %v1784_v37 }
 0x1f5   :  { %3288 = vmax.xlane.f32.xlu0 %v7040_v29  ;;  %v3891_v10 = vadd.f32 -0.1, %v1777_v49  ;;  %v3168_v4 = vsub.f32 1.4, %v1777_v49  ;;  %v1793_v47 = vmul.f32 %v4989_v21, %v7031_v58  ;;  %vm1796_vm9 = vcmp.eq.f32.partialorder %v7031_v58, 0.0 }
 0x1f6   :  { %v4991_v7 = vpop.eup %4990  ;;  %4996 = vrsqrt.f32 %v7073_v26  ;;  %v2707_v19 = vmax.f32 %v3892_v55, 0.0  ;;  %v2739_v62 = vmul.f32 40.0, %v3892_v55  ;;  %v3185_v34 = vmax.f32 %v3169_v39, 0.0 }
 0x1f7   :  { %v2706_v2 = vmax.f32 %v3891_v10, 0.0  ;;  %v2738_v20 = vmul.f32 40.0, %v3891_v10  ;;  %v3184_v32 = vmax.f32 %v3168_v4, 0.0  ;;  %v3233_v9 = vmul.f32 40.0, %v3169_v39 }
 0x1f8   :  { %v2723_v6 = vmul.f32 %v6768_v38, %v2707_v19  ;;  %v3217_v43 = vmul.f32 %v3201_v36, %v3185_v34  ;;  %v1795_v30 = vsel %vm1794_vm8, %v7031_v58, %v1793_v47  ;;  %v1797_v16 = vand.u32 2147483648, %v7031_v58 }
 0x1f9   :  { %v4993_v25 = vpop.eup %4992  ;;  %3294 = vmax.xlane.f32.xlu0 %v7056_v3  ;;  %v2722_v48 = vmul.f32 %v2706_v2, %v6770_v33  ;;  %v3216_v14 = vmul.f32 %v3200_v60, %v3184_v32  ;;  %v3232_v0 = vmul.f32 40.0, %v3168_v4  ;;  %v1786_v51 = vmul.f32 %v4991_v7, %v7038_v40 }
 0x1fa   :  { %v7099_v23 = vmul.f32 %v2739_v62, %v2723_v6  ;;  %v7101_v35 = vmul.f32 %v3233_v9, %v3217_v43  ;;  %v1798_v38 = vsel %vm1796_vm9, %v1797_v16, %v1795_v30  ;;  %vm1787_vm10 = vcmp.eq.f32.partialorder %v7038_v40, inf }
 0x1fb   :  { %v7106_v36 = vmul.f32 %v2738_v20, %v2722_v48  ;;  %v7108_v54 = vmul.f32 %v3232_v0, %v3216_v14  ;;  %v3894_v11 = vadd.f32 -0.1, %v1798_v38  ;;  %v3171_v21 = vsub.f32 1.4, %v1798_v38 }
 0x1fc   :  { %v3202_v33 = vsub.f32 1.0, %v6930_v59  ;;  %v1788_v60 = vsel %vm1787_vm10, %v7038_v40, %v1786_v51  ;;  %v1790_v12 = vand.u32 2147483648, %v7038_v40  ;;  %v1807_v37 = vmul.f32 %v4993_v25, %v7051_v15 }
 0x1fd   :  { %v4995_v49 = vpop.eup %4994  ;;  %4998 = vrsqrt.f32 %v7083_v18  ;;  %3292 = vmax.xlane.f32.xlu0 %v7065_v45  ;;  %2770 = vmax.xlane.f32.xlu1 %v7106_v36  ;;  %v2709_v58 = vmax.f32 %v3894_v11, 0.0  ;;  %vm1789_vm13 = vcmp.eq.f32.partialorder %v7038_v40, 0.0  ;;  %vm1808_vm7 = vcmp.eq.f32.partialorder %v7051_v15, inf }
 0x1fe   :  { %v2741_v55 = vmul.f32 40.0, %v3894_v11  ;;  %v3187_v59 = vmax.f32 %v3171_v21, 0.0  ;;  %v3235_v39 = vmul.f32 40.0, %v3171_v21  ;;  %v1791_v10 = vsel %vm1789_vm13, %v1790_v12, %v1788_v60 }
 0x1ff   :  { %v2725_v4 = vmul.f32 %v6776_v46, %v2709_v58  ;;  %v3893_v47 = vadd.f32 -0.1, %v1791_v10  ;;  %v3170_v7 = vsub.f32 1.4, %v1791_v10  ;;  %v1809_v19 = vsel %vm1808_vm7, %v7051_v15, %v1807_v37 }
 0x200   :  { %v4997_v62 = vpop.eup %4996  ;;  %v3219_v34 = vmul.f32 %v3203_v44, %v3187_v59  ;;  %vm1810_vm3 = vcmp.eq.f32.partialorder %v7051_v15, 0.0  ;;  %v1811_v40 = vand.u32 2147483648, %v7051_v15  ;;  %v1800_v2 = vmul.f32 %v4995_v49, %v7062_v13 }
 0x201   :  { %2772 = vmax.xlane.f32.xlu0 %v7099_v23  ;;  %3264 = vmax.xlane.f32.xlu1 %v7108_v54  ;;  %v7128_v20 = vmul.f32 %v2741_v55, %v2725_v4  ;;  %v2708_v46 = vmax.f32 %v3893_v47, 0.0  ;;  %v3186_v32 = vmax.f32 %v3170_v7, 0.0  ;;  %vm1801_vm4 = vcmp.eq.f32.partialorder %v7062_v13, inf }
 0x202   :  { %v7131_v9 = vmul.f32 %v3235_v39, %v3219_v34  ;;  %v2740_v1 = vmul.f32 40.0, %v3893_v47  ;;  %v3234_v44 = vmul.f32 40.0, %v3170_v7  ;;  %v1812_v6 = vsel %vm1810_vm3, %v1811_v40, %v1809_v19 }
 0x203   :  { %v2724_v43 = vmul.f32 %v2708_v46, %v6778_v61  ;;  %v3218_v15 = vmul.f32 %v3202_v33, %v3186_v32  ;;  %v3896_v30 = vadd.f32 -0.1, %v1812_v6  ;;  %v1802_v16 = vsel %vm1801_vm4, %v7062_v13, %v1800_v2 }
 0x204   :  { %v3173_v25 = vsub.f32 1.4, %v1812_v6  ;;  %v1804_v48 = vand.u32 2147483648, %v7062_v13  ;;  %vm1803_vm14 = vcmp.eq.f32.partialorder %v7062_v13, 0.0  ;;  %v3205_v61 = vsub.f32 1.0, %v6953_v5 }
 0x205   :  { %3266 = vmax.xlane.f32.xlu0 %v7101_v35  ;;  %2776 = vmax.xlane.f32.xlu1 %v7128_v20  ;;  %v7138_v14 = vmul.f32 %v2740_v1, %v2724_v43  ;;  %v7140_v0 = vmul.f32 %v3234_v44, %v3218_v15  ;;  %v2711_v51 = vmax.f32 %v3896_v30, 0.0  ;;  %v1821_v21 = vmul.f32 %v4997_v62, %v7073_v26  ;;  %v2143_v43 = vpop.xlane.xlu1 %2142 }
 0x206   :  { %v3189_v38 = vmax.f32 %v3173_v25, 0.0  ;;  %v1805_v11 = vsel %vm1803_vm14, %v1804_v48, %v1802_v16  ;;  %v2743_v12 = vmul.f32 40.0, %v3896_v30  ;;  %v3237_v58 = vmul.f32 40.0, %v3173_v25 }
 0x207   :  { %v4999_v33 = vpop.eup %4998  ;;  %v2727_v60 = vmul.f32 %v6784_v52, %v2711_v51  ;;  %v3895_v37 = vadd.f32 -0.1, %v1805_v11  ;;  %v3172_v55 = vsub.f32 1.4, %v1805_v11  ;;  %vm1822_vm0 = vcmp.eq.f32.partialorder %v7073_v26, inf }
 0x208   :  { %v3221_v49 = vmul.f32 %v3205_v61, %v3189_v38  ;;  %v1823_v59 = vsel %vm1822_vm0, %v7073_v26, %v1821_v21  ;;  %v3204_v39 = vsub.f32 1.0, %v6960_v24  ;;  %v1825_v4 = vand.u32 2147483648, %v7073_v26 }
 0x209   :  { %3270 = vmax.xlane.f32.xlu0 %v7131_v9  ;;  %2774 = vmax.xlane.f32.xlu1 %v7138_v14  ;;  %v7149_v13 = vmul.f32 %v2743_v12, %v2727_v60  ;;  %v2710_v5 = vmax.f32 %v3895_v37, 0.0  ;;  %v3188_v52 = vmax.f32 %v3172_v55, 0.0  ;;  %v2742_v7 = vmul.f32 40.0, %v3895_v37  ;;  %v8169_v60 = vld [vmem:[#allocation34_spill] sm:$0xff]  ;;  %v8170_v12 = vld [vmem:[#allocation25_spill] sm:$0xff]  ;;  %v8171_v37 = vld [vmem:[#allocation36_spill] sm:$0xff] }
 0x20a   :  { %v7153_v10 = vmul.f32 %v3237_v58, %v3221_v49  ;;  %vm1824_vm15 = vcmp.eq.f32.partialorder %v7073_v26, 0.0  ;;  %v1814_v19 = vmul.f32 %v4999_v33, %v7083_v18  ;;  %v3236_v34 = vmul.f32 40.0, %v3172_v55  ;;  %v2213_v33 = vpop.xlane.xlu1 %2212  ;;  %v8172_v58 = vld [vmem:[#allocation41_spill] sm:$0xff] }
 0x20b   :  { %v2726_v47 = vmul.f32 %v2710_v5, %v6786_v17  ;;  %v3220_v62 = vmul.f32 %v3204_v39, %v3188_v52  ;;  %v1826_v40 = vsel %vm1824_vm15, %v1825_v4, %v1823_v59  ;;  %vm1815_vm8 = vcmp.eq.f32.partialorder %v7083_v18, inf }
 0x20c   :  { %v3898_v2 = vadd.f32 -0.1, %v1826_v40  ;;  %v3175_v46 = vsub.f32 1.4, %v1826_v40  ;;  %v1816_v17 = vsel %vm1815_vm8, %v7083_v18, %v1814_v19  ;;  %v1818_v26 = vand.u32 2147483648, %v7083_v18 }
 0x20d   :  { %3268 = vmax.xlane.f32.xlu0 %v7140_v0  ;;  %2780 = vmax.xlane.f32.xlu1 %v7149_v13  ;;  %v7161_v24 = vmul.f32 %v2742_v7, %v2726_v47  ;;  %v7164_v32 = vmul.f32 %v3236_v34, %v3220_v62  ;;  %v3207_v1 = vsub.f32 1.0, %v6970_v56  ;;  %vm1817_vm9 = vcmp.eq.f32.partialorder %v7083_v18, 0.0  ;;  %v8175_v7 = vld [vmem:[#allocation22_spill] sm:$0xff] }
 0x20e   :  { %v2713_v44 = vmax.f32 %v3898_v2, 0.0  ;;  %v3191_v6 = vmax.f32 %v3175_v46, 0.0  ;;  %v2745_v15 = vmul.f32 40.0, %v3898_v2  ;;  %v1819_v30 = vsel %vm1817_vm9, %v1818_v26, %v1816_v17 }
 0x20f   :  { %v3239_v48 = vmul.f32 40.0, %v3175_v46  ;;  %v3897_v51 = vadd.f32 -0.1, %v1819_v30  ;;  %v3174_v21 = vsub.f32 1.4, %v1819_v30  ;;  %v2127_v49 = vmul.f32 %v8170_v12, %v8171_v37  ;;  %v8176_v46 = vld [vmem:[#allocation23_spill] sm:$0xff] }
 0x210   :  { %v2729_v16 = vmul.f32 %v6796_v28, %v2713_v44  ;;  %v3223_v25 = vmul.f32 %v3207_v1, %v3191_v6  ;;  %v2198_v28 = vmul.f32 %v8170_v12, %v8169_v60  ;;  %vm2381_vm10 = vcmp.gt.f32.partialorder %v2143_v43, 0.0  ;;  %v8177_v6 = vld [vmem:[#allocation21_spill] sm:$0xff] }
 0x211   :  { %3274 = vmax.xlane.f32.xlu0 %v7153_v10  ;;  %2778 = vmax.xlane.f32.xlu1 %v7161_v24  ;;  %v2712_v56 = vmax.f32 %v3897_v51, 0.0  ;;  %v2744_v11 = vmul.f32 40.0, %v3897_v51  ;;  %vm2397_vm13 = vcmp.lt.f32.partialorder %v2213_v33, 128.0  ;;  %v3206_v55 = vsub.f32 1.0, %v8172_v58  ;;  %v8178_v51 = vld [vmem:[#allocation37_spill] sm:$0xff]  ;;  %v8180_v33 = vld [vmem:[#allocation38_spill] sm:$0xff] }
 0x212   :  { %v7173_v61 = vmul.f32 %v2745_v15, %v2729_v16  ;;  %v7175_v38 = vmul.f32 %v3239_v48, %v3223_v25  ;;  %v3190_v59 = vmax.f32 %v3174_v21, 0.0  ;;  %vm7187_vm7 = vmand %vm2381_vm10, %vm2397_vm13  ;;  %v3238_v52 = vmul.f32 40.0, %v3174_v21  ;;  %v7216_v25 = vpop.xlane.xlu1 %2148 }
 0x213   :  { %v2728_v18 = vmul.f32 %v2712_v56, %v6798_v31  ;;  %v2220_v4 = vsel %vm2140_vm11, %v2198_v28, 0.0  ;;  %v2150_v47 = vsel %vm2140_vm11, %v2127_v49, 0.0  ;;  %v2199_v19 = vmul.f32 %v8175_v7, %v8169_v60 }
 0x214   :  { %v3222_v31 = vmul.f32 %v3206_v55, %v3190_v59  ;;  %v2128_v62 = vmul.f32 %v8175_v7, %v8171_v37  ;;  %v2200_v17 = vmul.f32 %v8176_v46, %v8169_v60  ;;  %v2129_v26 = vmul.f32 %v8176_v46, %v8171_v37  ;;  %v8182_v55 = vld [vmem:[#allocation40_spill] sm:$0xff] }
 0x215   :  { %3272 = vmax.xlane.f32.xlu0 %v7164_v32  ;;  %2784 = vmax.xlane.f32.xlu1 %v7173_v61  ;;  %v7185_v5 = vmul.f32 %v2744_v11, %v2728_v18  ;;  %v2223_v40 = vsel %vm2140_vm11, %v2199_v19, 0.0  ;;  %v2130_v43 = vmul.f32 %v8177_v6, %v8171_v37  ;;  %v2201_v30 = vmul.f32 %v8177_v6, %v8169_v60  ;;  %v7222_v11 = vpop.xlane.xlu0 %2145 }
 0x216   :  { %v7199_v34 = vmul.f32 %v3238_v52, %v3222_v31  ;;  %v2153_v2 = vsel %vm2140_vm11, %v2128_v62, 0.0  ;;  %v2226_v1 = vsel %vm2140_vm11, %v2200_v17, 0.0  ;;  %v2156_v44 = vsel %vm2140_vm11, %v2129_v26, 0.0 }
 0x217   :  { %v2159_v15 = vsel %vm2140_vm11, %v2130_v43, 0.0  ;;  %v2229_v16 = vsel %vm2140_vm11, %v2201_v30, 0.0  ;;  %vm2382_vm3 = vcmp.gt.f32.partialorder %v7222_v11, 0.0  ;;  %vm2383_vm0 = vcmp.gt.f32.partialorder %v7216_v25, 0.0 }
 0x218   :  { %vm3721_vm8 = vcmask 7168  }
 0x219   :  { %3278 = vmax.xlane.f32.xlu0 %v7175_v38  ;;  %2782 = vmax.xlane.f32.xlu1 %v7185_v5  ;;  %v7230_v58 = vpop.xlane.xlu0 %2215 }
 0x21a   :  { %vm2398_vm4 = vcmp.lt.f32.partialorder %v7230_v58, 128.0 }
 0x21b   :  { %vm2414_vm14 = vmand %vm2382_vm3, %vm2398_vm4 }
 0x21d   :  { %2221 = vadd.xlane.f32.xlu0 %v2220_v4  ;;  %2151 = vadd.xlane.f32.xlu1 %v2150_v47  ;;  %v8184_v4 = vld [vmem:[#allocation39_spill] sm:$0xff]  ;;  %v7238_v19 = vpop.xlane.xlu0 %2218 }
 0x21e   :  { %vm2399_vm15 = vcmp.lt.f32.partialorder %v7238_v19, 128.0 }
 0x21f   :  { %vm2415_vm9 = vmand %vm2383_vm0, %vm2399_vm15 }
 0x221   :  { %2224 = vadd.xlane.f32.xlu0 %v2223_v40  ;;  %2154 = vadd.xlane.f32.xlu1 %v2153_v2 }
 0x225   :  { %2227 = vadd.xlane.f32.xlu0 %v2226_v1  ;;  %2157 = vadd.xlane.f32.xlu1 %v2156_v44 }
 0x229   :  { %2160 = vadd.xlane.f32.xlu0 %v2159_v15 }
 0x22d   :  { %2230 = vadd.xlane.f32.xlu0 %v2229_v16 }
 0x231   :  { %3276 = vmax.xlane.f32.xlu0 %v7199_v34 }
 0x25b   :  { %v7218_v48 = vpop.xlane.xlu1 %2788 }
 0x25c   :  { %v2811_v56 = vsub.f32 %v8178_v51, %v7218_v48 }
 0x25e   :  { %v2836_v18 = vmul.f32 1.442695, %v2811_v56 }
 0x25f   :  { %v7224_v21 = vpop.xlane.xlu1 %2786 }
 0x260   :  { %8179 = vst [vmem:[#allocation42_spill] sm:$0xff] %v7224_v21  ;;  %5000 = vpow2.f32 %v2836_v18  ;;  %v2810_v12 = vsub.f32 %v8180_v33, %v7224_v21 }
 0x262   :  { %v2834_v28 = vmul.f32 1.442695, %v2810_v12 }
 0x263   :  { %v7228_v49 = vpop.xlane.xlu1 %2792 }
 0x264   :  { %8181 = vst [vmem:[#allocation44_spill] sm:$0xff] %v7228_v49  ;;  %5002 = vpow2.f32 %v2834_v28  ;;  %v2813_v59 = vsub.f32 %v8182_v55, %v7228_v49 }
 0x266   :  { %v2840_v31 = vmul.f32 1.442695, %v2813_v59 }
 0x267   :  { %v7234_v52 = vpop.xlane.xlu1 %2790 }
 0x268   :  { %8183 = vst [vmem:[#allocation43_spill] sm:$0xff] %v7234_v52  ;;  %5004 = vpow2.f32 %v2840_v31  ;;  %v2812_v47 = vsub.f32 %v8184_v4, %v7234_v52 }
 0x26a   :  { %v5001_v7 = vpop.eup %5000  ;;  %v2838_v62 = vmul.f32 1.442695, %v2812_v47 }
 0x26b   :  { %2868 = vadd.xlane.f32.xlu1 %v5001_v7  ;;  %v7240_v40 = vpop.xlane.xlu1 %2796 }
 0x26c   :  { %8185 = vst [vmem:[#allocation45_spill] sm:$0xff] %v7240_v40  ;;  %5006 = vpow2.f32 %v2838_v62  ;;  %v2815_v2 = vsub.f32 %v6966_v22, %v7240_v40 }
 0x26e   :  { %v5003_v46 = vpop.eup %5002  ;;  %v2844_v17 = vmul.f32 1.442695, %v2815_v2  ;;  %v7244_v26 = vpop.xlane.xlu0 %3282 }
 0x26f   :  { %v3305_v1 = vsub.f32 %v7005_v50, %v7244_v26  ;;  %2866 = vadd.xlane.f32.xlu1 %v5003_v46  ;;  %v7248_v44 = vpop.xlane.xlu1 %2794 }
 0x270   :  { %8186 = vst [vmem:[#allocation47_spill] sm:$0xff] %v7248_v44  ;;  %5008 = vpow2.f32 %v2844_v17  ;;  %v2814_v6 = vsub.f32 %v6982_v53, %v7248_v44 }
 0x271   :  { %v3330_v43 = vmul.f32 1.442695, %v3305_v1 }
 0x272   :  { %v5005_v15 = vpop.eup %5004  ;;  %v2842_v30 = vmul.f32 1.442695, %v2814_v6  ;;  %v7252_v16 = vpop.xlane.xlu0 %3280 }
 0x273   :  { %8187 = vst [vmem:[#allocation49_spill] sm:$0xff] %v7252_v16  ;;  %5010 = vpow2.f32 %v3330_v43  ;;  %v3304_v56 = vsub.f32 %v7007_v8, %v7252_v16  ;;  %2872 = vadd.xlane.f32.xlu1 %v5005_v15  ;;  %v7256_v18 = vpop.xlane.xlu1 %2800 }
 0x274   :  { %8188 = vst [vmem:[#allocation51_spill] sm:$0xff] %v7256_v18  ;;  %5012 = vpow2.f32 %v2842_v30  ;;  %v2817_v12 = vsub.f32 %v6992_v42, %v7256_v18 }
 0x275   :  { %v3328_v28 = vmul.f32 1.442695, %v3304_v56 }
 0x276   :  { %v5007_v59 = vpop.eup %5006  ;;  %v2848_v31 = vmul.f32 1.442695, %v2817_v12  ;;  %v7260_v47 = vpop.xlane.xlu0 %3286 }
 0x277   :  { %8189 = vst [vmem:[#allocation53_spill] sm:$0xff] %v7260_v47  ;;  %5014 = vpow2.f32 %v3328_v28  ;;  %v3307_v7 = vsub.f32 %v7015_v27, %v7260_v47  ;;  %2870 = vadd.xlane.f32.xlu1 %v5007_v59  ;;  %v7264_v62 = vpop.xlane.xlu1 %2798 }
 0x278   :  { %8190 = vst [vmem:[#allocation46_spill] sm:$0xff] %v7264_v62  ;;  %5016 = vpow2.f32 %v2848_v31  ;;  %v2816_v2 = vsub.f32 %v6999_v57, %v7264_v62 }
 0x279   :  { %v3334_v46 = vmul.f32 1.442695, %v3307_v7 }
 0x27a   :  { %v5009_v17 = vpop.eup %5008  ;;  %v2846_v1 = vmul.f32 1.442695, %v2816_v2  ;;  %v7268_v6 = vpop.xlane.xlu0 %3284 }
 0x27b   :  { %8191 = vst [vmem:[#allocation48_spill] sm:$0xff] %v7268_v6  ;;  %5018 = vpow2.f32 %v3334_v46  ;;  %v3306_v43 = vsub.f32 %v7019_v41, %v7268_v6  ;;  %2876 = vadd.xlane.f32.xlu1 %v5009_v17 }
 0x27c   :  { %5020 = vpow2.f32 %v2846_v1 }
 0x27d   :  { %v5011_v15 = vpop.eup %5010  ;;  %v3332_v30 = vmul.f32 1.442695, %v3306_v43 }
 0x27e   :  { %v5013_v56 = vpop.eup %5012  ;;  %v7272_v12 = vpop.xlane.xlu0 %3290  ;;  %3362 = vadd.xlane.f32.xlu0 %v5011_v15 }
 0x27f   :  { %8192 = vst [vmem:[#allocation50_spill] sm:$0xff] %v7272_v12  ;;  %5022 = vpow2.f32 %v3332_v30  ;;  %v3309_v28 = vsub.f32 %v7033_v63, %v7272_v12  ;;  %2874 = vadd.xlane.f32.xlu1 %v5013_v56 }
 0x281   :  { %v5015_v59 = vpop.eup %5014  ;;  %v3338_v31 = vmul.f32 1.442695, %v3309_v28 }
 0x282   :  { %v5017_v7 = vpop.eup %5016  ;;  %v7276_v2 = vpop.xlane.xlu0 %3288  ;;  %3360 = vadd.xlane.f32.xlu0 %v5015_v59 }
 0x283   :  { %8193 = vst [vmem:[#allocation52_spill] sm:$0xff] %v7276_v2  ;;  %5024 = vpow2.f32 %v3338_v31  ;;  %v3308_v46 = vsub.f32 %v7040_v29, %v7276_v2  ;;  %2880 = vadd.xlane.f32.xlu1 %v5017_v7 }
 0x285   :  { %v5019_v17 = vpop.eup %5018  ;;  %v3336_v1 = vmul.f32 1.442695, %v3308_v46 }
 0x286   :  { %v5021_v43 = vpop.eup %5020  ;;  %v7280_v15 = vpop.xlane.xlu0 %3294  ;;  %3366 = vadd.xlane.f32.xlu0 %v5019_v17 }
 0x287   :  { %8194 = vst [vmem:[#allocation54_spill] sm:$0xff] %v7280_v15  ;;  %5026 = vpow2.f32 %v3336_v1  ;;  %v3311_v30 = vsub.f32 %v7056_v3, %v7280_v15  ;;  %2878 = vadd.xlane.f32.xlu1 %v5021_v43 }
 0x289   :  { %v5023_v56 = vpop.eup %5022  ;;  %v3342_v28 = vmul.f32 1.442695, %v3311_v30 }
 0x28a   :  { %3364 = vadd.xlane.f32.xlu0 %v5023_v56  ;;  %v7284_v59 = vpop.xlane.xlu0 %3292  ;;  %v7286_v31 = vpop.xlane.xlu1 %2770 }
 0x28b   :  { %8195 = vst [vmem:[#allocation34_spill] sm:$0xff] %v7284_v59  ;;  %5028 = vpow2.f32 %v3342_v28  ;;  %v3310_v7 = vsub.f32 %v7065_v45, %v7284_v59  ;;  %v2802_v46 = vsub.f32 %v7106_v36, %v7286_v31 }
 0x28d   :  { %v5025_v17 = vpop.eup %5024  ;;  %v3340_v1 = vmul.f32 1.442695, %v3310_v7  ;;  %v2818_v18 = vmul.f32 1.442695, %v2802_v46 }
 0x28e   :  { %3370 = vadd.xlane.f32.xlu0 %v5025_v17  ;;  %v7292_v15 = vpop.xlane.xlu0 %2772  ;;  %v7294_v43 = vpop.xlane.xlu1 %3264 }
 0x28f   :  { %5030 = vpow2.f32 %v3340_v1  ;;  %v2803_v30 = vsub.f32 %v7099_v23, %v7292_v15  ;;  %v3296_v56 = vsub.f32 %v7108_v54, %v7294_v43 }
 0x290   :  { %5032 = vpow2.f32 %v2818_v18 }
 0x291   :  { %v5027_v28 = vpop.eup %5026  ;;  %v2820_v62 = vmul.f32 1.442695, %v2803_v30  ;;  %v3312_v59 = vmul.f32 1.442695, %v3296_v56 }
 0x292   :  { %3368 = vadd.xlane.f32.xlu0 %v5027_v28  ;;  %v7300_v44 = vpop.xlane.xlu0 %3266  ;;  %v7302_v7 = vpop.xlane.xlu1 %2776 }
 0x293   :  { %5034 = vpow2.f32 %v2820_v62  ;;  %v3297_v46 = vsub.f32 %v7101_v35, %v7300_v44  ;;  %v2805_v17 = vsub.f32 %v7128_v20, %v7302_v7 }
 0x294   :  { %5036 = vpow2.f32 %v3312_v59 }
 0x295   :  { %v5029_v1 = vpop.eup %5028  ;;  %v3314_v40 = vmul.f32 1.442695, %v3297_v46  ;;  %v2824_v2 = vmul.f32 1.442695, %v2805_v17 }
 0x296   :  { %3374 = vadd.xlane.f32.xlu0 %v5029_v1  ;;  %v7308_v18 = vpop.xlane.xlu0 %3270  ;;  %v7310_v30 = vpop.xlane.xlu1 %2774 }
 0x297   :  { %5038 = vpow2.f32 %v3314_v40  ;;  %v3299_v56 = vsub.f32 %v7131_v9, %v7308_v18  ;;  %v2804_v62 = vsub.f32 %v7138_v14, %v7310_v30 }
 0x298   :  { %5040 = vpow2.f32 %v2824_v2 }
 0x299   :  { %v5031_v28 = vpop.eup %5030  ;;  %v3318_v12 = vmul.f32 1.442695, %v3299_v56  ;;  %v2822_v52 = vmul.f32 1.442695, %v2804_v62 }
 0x29a   :  { %v5033_v59 = vpop.eup %5032  ;;  %3372 = vadd.xlane.f32.xlu0 %v5031_v28  ;;  %v7316_v46 = vpop.xlane.xlu0 %3268 }
 0x29b   :  { %v7318_v17 = vpop.xlane.xlu1 %2780  ;;  %5042 = vpow2.f32 %v3318_v12  ;;  %v3298_v40 = vsub.f32 %v7140_v0, %v7316_v46  ;;  %2850 = vadd.xlane.f32.xlu1 %v5033_v59 }
 0x29c   :  { %8196 = vst [vmem:[#allocation25_spill] sm:$0xff] %v7318_v17  ;;  %v2807_v1 = vsub.f32 %v7149_v13, %v7318_v17  ;;  %5044 = vpow2.f32 %v2822_v52 }
 0x29d   :  { %v5035_v49 = vpop.eup %5034  ;;  %v3316_v2 = vmul.f32 1.442695, %v3298_v40 }
 0x29e   :  { %v2828_v56 = vmul.f32 1.442695, %v2807_v1  ;;  %v5037_v62 = vpop.eup %5036  ;;  %2852 = vadd.xlane.f32.xlu0 %v5035_v49  ;;  %v7326_v28 = vpop.xlane.xlu0 %3274  ;;  %v8199_v1 = vmov 0.0  }
 0x29f   :  { %8197 = vst [vmem:[#allocation36_spill] sm:$0xff] %v7326_v28  ;;  %v7328_v12 = vpop.xlane.xlu1 %2778  ;;  %5046 = vpow2.f32 %v3316_v2  ;;  %v3301_v59 = vsub.f32 %v7153_v10, %v7326_v28  ;;  %3344 = vadd.xlane.f32.xlu1 %v5037_v62  ;;  %v7339_v2 = vsel %vm7187_vm7, 1.0, %v8199_v1 }
 0x2a0   :  { %8198 = vst [vmem:[#allocation41_spill] sm:$0xff] %v7328_v12  ;;  %v2806_v52 = vsub.f32 %v7161_v24, %v7328_v12  ;;  %5048 = vpow2.f32 %v2828_v56  ;;  %8200 = vst [vmem:[#allocation22_spill] sm:$0xff] %v7339_v2  ;;  %v7346_v56 = vsel %vm2414_vm14, 1.0, %v8199_v1  ;;  %v3763_v21 = vsel %vm3721_vm8, %v7339_v2, 0.0 }
 0x2a1   :  { %v5039_v11 = vpop.eup %5038  ;;  %v3322_v49 = vmul.f32 1.442695, %v3301_v59  ;;  %8203 = vst [vmem:[#allocation37_spill] sm:$0xff] %v7346_v56 }
 0x2a2   :  { %v2826_v58 = vmul.f32 1.442695, %v2806_v52  ;;  %v5041_v40 = vpop.eup %5040  ;;  %3346 = vadd.xlane.f32.xlu0 %v5039_v11  ;;  %v7341_v62 = vpop.xlane.xlu0 %3272 }
 0x2a3   :  { %8201 = vst [vmem:[#allocation23_spill] sm:$0xff] %v7341_v62  ;;  %v7343_v6 = vpop.xlane.xlu1 %2784  ;;  %5050 = vpow2.f32 %v3322_v49  ;;  %v3300_v19 = vsub.f32 %v7164_v32, %v7341_v62  ;;  %2856 = vadd.xlane.f32.xlu1 %v5041_v40  ;;  %v3764_v49 = vsel %vm3721_vm8, %v7346_v56, 0.0  ;;  %v2935_v62 = vmax.f32 %v8180_v33, %v8178_v51 }
 0x2a4   :  { %8202 = vst [vmem:[#allocation21_spill] sm:$0xff] %v7343_v6  ;;  %v2809_v59 = vsub.f32 %v7173_v61, %v7343_v6  ;;  %5052 = vpow2.f32 %v2826_v58  ;;  %v7363_v6 = vsel %vm2415_vm9, 1.0, %v8199_v1 }
 0x2a5   :  { %v5043_v39 = vpop.eup %5042  ;;  %v3320_v52 = vmul.f32 1.442695, %v3300_v19  ;;  %8206 = vst [vmem:[#allocation39_spill] sm:$0xff] %v7363_v6  ;;  %v3766_v12 = vsel %vm3721_vm8, %v7363_v6, 0.0 }
 0x2a6   :  { %v2832_v11 = vmul.f32 1.442695, %v2809_v59  ;;  %v5045_v47 = vpop.eup %5044  ;;  %3350 = vadd.xlane.f32.xlu0 %v5043_v39  ;;  %v7358_v16 = vpop.xlane.xlu0 %3278  ;;  %v3765_v59 = vadd.f32 %v3764_v49, %v3763_v21 }
 0x2a7   :  { %8204 = vst [vmem:[#allocation38_spill] sm:$0xff] %v7358_v16  ;;  %v7360_v40 = vpop.xlane.xlu1 %2782  ;;  %5054 = vpow2.f32 %v3320_v52  ;;  %v3303_v25 = vsub.f32 %v7175_v38, %v7358_v16  ;;  %2854 = vadd.xlane.f32.xlu1 %v5045_v47  ;;  %v3429_v47 = vmax.f32 %v7007_v8, %v7005_v50 }
 0x2a8   :  { %8205 = vst [vmem:[#allocation40_spill] sm:$0xff] %v7360_v40  ;;  %v2808_v58 = vsub.f32 %v7185_v5, %v7360_v40  ;;  %5056 = vpow2.f32 %v2832_v11  ;;  %v3767_v11 = vadd.f32 %v3766_v12, %v3765_v59 }
 0x2a9   :  { %v5047_v19 = vpop.eup %5046  ;;  %v3326_v2 = vmul.f32 1.442695, %v3303_v25 }
 0x2aa   :  { %v2830_v39 = vmul.f32 1.442695, %v2808_v58  ;;  %v5049_v56 = vpop.eup %5048  ;;  %3348 = vadd.xlane.f32.xlu0 %v5047_v19  ;;  %v2222_v52 = vpop.xlane.xlu0 %2221  ;;  %v2939_v58 = vmax.f32 %v2935_v62, %v8182_v55 }
 0x2ab   :  { %v2152_v28 = vpop.xlane.xlu1 %2151  ;;  %5058 = vpow2.f32 %v3326_v2  ;;  %vm2400_vm10 = vcmp.lt.f32.partialorder %v2222_v52, 128.0  ;;  %2860 = vadd.xlane.f32.xlu1 %v5049_v56 }
 0x2ac   :  { %vm2384_vm13 = vcmp.gt.f32.partialorder %v2152_v28, 0.0  ;;  %5060 = vpow2.f32 %v2830_v39  ;;  %v3433_v39 = vmax.f32 %v3429_v47, %v7015_v27  ;;  %v2930_v62 = vmax.f32 %v8184_v4, %v2939_v58 }
 0x2ad   :  { %vm2416_vm7 = vmand %vm2384_vm13, %vm2400_vm10  ;;  %v5051_v21 = vpop.eup %5050 }
 0x2ae   :  { %v7376_v49 = vsel %vm2416_vm7, 1.0, %v8199_v1  ;;  %v5053_v25 = vpop.eup %5052  ;;  %3354 = vadd.xlane.f32.xlu0 %v5051_v21  ;;  %v2225_v2 = vpop.xlane.xlu0 %2224  ;;  %v3424_v47 = vmax.f32 %v7019_v41, %v3433_v39 }
 0x2af   :  { %8207 = vst [vmem:[#allocation55_spill] sm:$0xff] %v7376_v49  ;;  %v3768_v19 = vsel %vm3721_vm8, %v7376_v49, 0.0  ;;  %v2155_v56 = vpop.xlane.xlu1 %2154  ;;  %vm2401_vm3 = vcmp.lt.f32.partialorder %v2225_v2, 128.0  ;;  %2858 = vadd.xlane.f32.xlu1 %v5053_v25  ;;  %v8209_v25 = vld [vmem:[#allocation26_spill] sm:$0xff] }
 0x2b0   :  { %v3769_v28 = vadd.f32 %v3768_v19, %v3767_v11  ;;  %vm2385_vm4 = vcmp.gt.f32.partialorder %v2155_v56, 0.0  ;;  %v2131_v19 = vmul.f32 %v8209_v25, %v8171_v37 }
 0x2b1   :  { %vm2417_vm14 = vmand %vm2385_vm4, %vm2401_vm3  ;;  %v5055_v12 = vpop.eup %5054 }
 0x2b2   :  { %v7383_v59 = vsel %vm2417_vm14, 1.0, %v8199_v1  ;;  %v5057_v52 = vpop.eup %5056  ;;  %3352 = vadd.xlane.f32.xlu0 %v5055_v12  ;;  %v2228_v21 = vpop.xlane.xlu0 %2227  ;;  %v2162_v39 = vsel %vm2140_vm11, %v2131_v19, 0.0 }
 0x2b3   :  { %8208 = vst [vmem:[#allocation56_spill] sm:$0xff] %v7383_v59  ;;  %v3770_v6 = vsel %vm3721_vm8, %v7383_v59, 0.0  ;;  %v2158_v49 = vpop.xlane.xlu1 %2157  ;;  %vm2402_vm0 = vcmp.lt.f32.partialorder %v2228_v21, 128.0  ;;  %2864 = vadd.xlane.f32.xlu1 %v5057_v52  ;;  %v2934_v59 = vmax.f32 %v2930_v62, %v6966_v22  ;;  %v8211_v52 = vld [vmem:[#allocation31_spill] sm:$0xff] }
 0x2b4   :  { %v3771_v11 = vadd.f32 %v3770_v6, %v3769_v28  ;;  %vm2386_vm15 = vcmp.gt.f32.partialorder %v2158_v49, 0.0  ;;  %v3428_v49 = vmax.f32 %v3424_v47, %v7033_v63  ;;  %v2132_v21 = vmul.f32 %v8211_v52, %v8171_v37 }
 0x2b5   :  { %vm2418_vm9 = vmand %vm2386_vm15, %vm2402_vm0  ;;  %v5059_v2 = vpop.eup %5058  ;;  %v2938_v40 = vmax.f32 %v2934_v59, %v6982_v53 }
 0x2b6   :  { %v7392_v56 = vsel %vm2418_vm9, 1.0, %v8199_v1  ;;  %v5061_v58 = vpop.eup %5060  ;;  %3358 = vadd.xlane.f32.xlu0 %v5059_v2  ;;  %v2161_v6 = vpop.xlane.xlu0 %2160  ;;  %v3432_v62 = vmax.f32 %v3428_v49, %v7040_v29  ;;  %v2165_v2 = vsel %vm2140_vm11, %v2132_v21, 0.0 }
 0x2b7   :  { %8210 = vst [vmem:[#allocation26_spill] sm:$0xff] %v7392_v56  ;;  %v3772_v12 = vsel %vm3721_vm8, %v7392_v56, 0.0  ;;  %2862 = vadd.xlane.f32.xlu1 %v5061_v58  ;;  %vm2387_vm10 = vcmp.gt.f32.partialorder %v2161_v6, 0.0  ;;  %v2942_v19 = vmax.f32 %v2938_v40, %v6992_v42 }
 0x2b8   :  { %v3773_v28 = vadd.f32 %v3772_v12, %v3771_v11  ;;  %v2203_v11 = vmul.f32 %v8211_v52, %v8169_v60  ;;  %v3436_v6 = vmax.f32 %v3432_v62, %v7056_v3  ;;  %v2931_v62 = vmax.f32 %v7099_v23, %v7149_v13 }
 0x2b9   :  { %v2933_v52 = vmax.f32 %v6999_v57, %v2942_v19 }
 0x2ba   :  { %v2231_v16 = vpop.xlane.xlu0 %2230  ;;  %v2235_v49 = vsel %vm2140_vm11, %v2203_v11, 0.0  ;;  %v3427_v40 = vmax.f32 %v7065_v45, %v3436_v6  ;;  %v3425_v11 = vmax.f32 %v7101_v35, %v7153_v10  ;;  %v2090_v6 = vsel %vm2018_vm1, 1.0, %v8199_v1 }
 0x2bb   :  { %vm2403_vm13 = vcmp.lt.f32.partialorder %v2231_v16, 128.0  ;;  %2163 = vadd.xlane.f32.xlu1 %v2162_v39  ;;  %v2937_v21 = vmax.f32 %v2933_v52, %v7106_v36 }
 0x2bc   :  { %vm2419_vm7 = vmand %vm2387_vm10, %vm2403_vm13 }
 0x2bd   :  { %v7407_v47 = vsel %vm2419_vm7, 1.0, %v8199_v1 }
 0x2be   :  { %8212 = vst [vmem:[#allocation31_spill] sm:$0xff] %v7407_v47  ;;  %v3774_v59 = vsel %vm3721_vm8, %v7407_v47, 0.0  ;;  %v7412_v58 = vpop.xlane.xlu0 %3276  ;;  %v2094_v47 = vsel %vm2022_vm5, 1.0, %v8199_v1 }
 0x2bf   :  { %8213 = vst [vmem:[#allocation57_spill] sm:$0xff] %v7412_v58  ;;  %v7414_v16 = vadd.f32 %v3774_v59, %v3773_v28  ;;  %v3302_v12 = vsub.f32 %v7199_v34, %v7412_v58  ;;  %2166 = vadd.xlane.f32.xlu1 %v2165_v2  ;;  %v3431_v28 = vmax.f32 %v3427_v40, %v7108_v54  ;;  %v2095_v58 = vsel %vm2023_vm6, 1.0, %v8199_v1 }
 0x2c0   :  { %v2941_v59 = vmax.f32 %v2937_v21, %v7128_v20 }
 0x2c1   :  { %8214 = vst [vmem:[#allocation58_spill] sm:$0xff] %v7414_v16  ;;  %v3324_v39 = vmul.f32 1.442695, %v3302_v12  ;;  %v3435_v16 = vmax.f32 %v3431_v28, %v7131_v9 }
 0x2c2   :  { %v2932_v2 = vmax.f32 %v7138_v14, %v2941_v59 }
 0x2c3   :  { %5062 = vpow2.f32 %v3324_v39  ;;  %2236 = vadd.xlane.f32.xlu1 %v2235_v49  ;;  %v2091_v39 = vsel %vm2019_vm2, 1.0, %v8199_v1  ;;  %v3426_v52 = vmax.f32 %v7140_v0, %v3435_v16  ;;  %v4942_v49 = vpack.i.bf16 %v2095_v58, %v2094_v47  ;;  %v8222_v47 = vld [vmem:[#allocation7_spill] sm:$0xff] }
 0x2c4   :  { %v2936_v40 = vmax.f32 %v2932_v2, %v2931_v62  ;;  %v4937_v28 = vpack.i.bf16 %v2091_v39, %v2090_v6  ;;  %v2096_v62 = vsel %vm2024_vm12, 1.0, %v8199_v1  ;;  %v8220_v2 = vld [vmem:[#allocation13_spill] sm:$0xff]  ;;  %vm8223_vm2 = vcmp.gt.f32.partialorder %v8222_v47, 0.1 }
 0x2c5   :  { %v3430_v21 = vmax.f32 %v3426_v52, %v3425_v11  ;;  %vm8221_vm1 = vcmp.gt.f32.partialorder %v8220_v2, 0.1  ;;  %v2092_v58 = vsel %vm8223_vm2, 1.0, %v8199_v1 }
 0x2c6   :  { %v2940_v12 = vmax.f32 %v2936_v40, %v7161_v24  ;;  %v2097_v11 = vsel %vm8221_vm1, 1.0, %v8199_v1  ;;  %v8224_v40 = vld [vmem:[#allocation8_spill] sm:$0xff] }
 0x2c7   :  { %v3434_v17 = vmax.f32 %v3430_v21, %v7164_v32  ;;  %v4947_v56 = vpack.i.bf16 %v2097_v11, %v2096_v62  ;;  %vm8225_vm5 = vcmp.gt.f32.partialorder %v8224_v40, 0.1 }
 0x2c8   :  { %v2093_v21 = vsel %vm8225_vm5, 1.0, %v8199_v1 }
 0x2c9   :  { %v3437_v6 = vmax.f32 %v3434_v17, %v7175_v38 }
 0x2cb   :  { %v3438_v52 = vmax.f32 %v7199_v34, %v3437_v6 }
 0x2cd   :  { %v5063_v19 = vpop.eup %5062  ;;  %v3439_v59 = vrot.slane %v3438_v52, 4 }
 0x2ce   :  { %3356 = vadd.xlane.f32.xlu0 %v5063_v19  ;;  %v2943_v19 = vmax.f32 %v2940_v12, %v7173_v61  ;;  %v4932_v12 = vpack.i.bf16 %v2093_v21, %v2092_v58  ;;  %v8226_v58 = vld [vmem:[#allocation29_spill] sm:$0xff] }
 0x2cf   :  { %v3440_v17 = vmax.f32 %v3438_v52, %v3439_v59  ;;  %v2206_v21 = vmul.f32 %v8226_v58, %v8169_v60 }
 0x2d0   :  { %v2944_v39 = vmax.f32 %v7185_v5, %v2943_v19 }
 0x2d1   :  { %v3441_v62 = vrot.slane %v3440_v17, 2 }
 0x2d3   :  { %v3442_v11 = vmax.f32 %v3440_v17, %v3441_v62  ;;  %v2202_v17 = vmul.f32 %v8209_v25, %v8169_v60  ;;  %v8227_v62 = vld [vmem:[#allocation27_spill] sm:$0xff] }
 0x2d4   :  { %4938 = vperm.xlu1 %4911, %v4937_v28   ;;  %v2945_v28 = vrot.slane %v2944_v39, 4 }
 0x2d5   :  { %v3443_v6 = vrot.slane %v3442_v11, 1 }
 0x2d6   :  { %v2946_v16 = vmax.f32 %v2944_v39, %v2945_v28 }
 0x2d7   :  { %v7464_v47 = vmax.f32 %v3442_v11, %v3443_v6  ;;  %v2204_v6 = vmul.f32 %v8227_v62, %v8169_v60 }
 0x2d8   :  { %4943 = vperm.xlu1 %4911, %v4942_v49   ;;  %v2947_v49 = vrot.slane %v2946_v16, 2 }
 0x2d9   :  { %v3445_v39 = vsub.f32 %v7108_v54, %v7464_v47  ;;  %v3446_v52 = vsub.f32 %v7101_v35, %v7464_v47  ;;  %v3447_v35 = vsub.f32 %v7140_v0, %v7464_v47  ;;  %v3448_v11 = vsub.f32 %v7131_v9, %v7464_v47 }
 0x2da   :  { %v2948_v2 = vmax.f32 %v2946_v16, %v2947_v49  ;;  %v2244_v49 = vsel %vm2140_vm11, %v2206_v21, 0.0 }
 0x2db   :  { %v3461_v16 = vmul.f32 1.442695, %v3445_v39  ;;  %v3467_v21 = vmul.f32 1.442695, %v3448_v11 }
 0x2dc   :  { %4948 = vperm.xlu1 %4911, %v4947_v56   ;;  %v2949_v19 = vrot.slane %v2948_v2, 1 }
 0x2de   :  { %v7462_v56 = vmax.f32 %v2948_v2, %v2949_v19  ;;  %v2133_v2 = vmul.f32 %v8227_v62, %v8171_v37  ;;  %v3465_v19 = vmul.f32 1.442695, %v3447_v35 }
 0x2e0   :  { %v2951_v40 = vsub.f32 %v7106_v36, %v7462_v56  ;;  %v2952_v1 = vsub.f32 %v7099_v23, %v7462_v56  ;;  %v2953_v36 = vsub.f32 %v7138_v14, %v7462_v56  ;;  %v3463_v23 = vmul.f32 1.442695, %v3446_v52 }
 0x2e1   :  { %v2954_v14 = vsub.f32 %v7128_v20, %v7462_v56  ;;  %v2168_v0 = vsel %vm2140_vm11, %v2133_v2, 0.0  ;;  %v3449_v20 = vsub.f32 %v7164_v32, %v7464_v47  ;;  %v3450_v32 = vsub.f32 %v7153_v10, %v7464_v47 }
 0x2e2   :  { %v2967_v28 = vmul.f32 1.442695, %v2951_v40  ;;  %v2971_v25 = vmul.f32 1.442695, %v2953_v36  ;;  %v2955_v40 = vsub.f32 %v7161_v24, %v7462_v56  ;;  %v2956_v24 = vsub.f32 %v7149_v13, %v7462_v56 }
 0x2e3   :  { %v2973_v39 = vmul.f32 1.442695, %v2954_v14  ;;  %v3469_v35 = vmul.f32 1.442695, %v3449_v20  ;;  %v2957_v14 = vsub.f32 %v7185_v5, %v7462_v56  ;;  %v2135_v20 = vmul.f32 %v8226_v58, %v8171_v37 }
 0x2e4   :  { %4933 = vperm.xlu0 %4910, %v4932_v12   ;;  %v2969_v12 = vmul.f32 1.442695, %v2952_v1  ;;  %5064 = vpow2.f32 %v2967_v28  ;;  %v2232_v1 = vsel %vm2140_vm11, %v2202_v17, 0.0  ;;  %v2238_v28 = vsel %vm2140_vm11, %v2204_v6, 0.0 }
 0x2e5   :  { %v2975_v36 = vmul.f32 1.442695, %v2955_v40  ;;  %v2979_v5 = vmul.f32 1.442695, %v2957_v14 }
 0x2e6   :  { %5066 = vpow2.f32 %v2969_v12  ;;  %v8228_v12 = vld [vmem:[#allocation28_spill] sm:$0xff] }
 0x2e7   :  { %5068 = vpow2.f32 %v3461_v16  ;;  %v2134_v16 = vmul.f32 %v8228_v12, %v8171_v37  ;;  %v2205_v13 = vmul.f32 %v8228_v12, %v8169_v60 }
 0x2e8   :  { %5070 = vpow2.f32 %v3463_v23 }
 0x2e9   :  { %5072 = vpow2.f32 %v2971_v25  ;;  %v2171_v2 = vsel %vm2140_vm11, %v2134_v16, 0.0  ;;  %v2977_v25 = vmul.f32 1.442695, %v2956_v24 }
 0x2ea   :  { %5074 = vpow2.f32 %v3465_v19  ;;  %v3451_v19 = vsub.f32 %v7199_v34, %v7464_v47 }
 0x2ee   :  { %v5065_v9 = vpop.eup %5064 }
 0x2f0   :  { %v5067_v17 = vpop.eup %5066 }
 0x2f1   :  { %v5069_v23 = vpop.eup %5068 }
 0x2f8   :  { %v2869_v59 = vpop.xlane.xlu1 %2868 }
 0x2f9   :  { %5076 = vlog2.f32 %v2869_v59 }
 0x2fa   :  { %5078 = vpow2.f32 %v2973_v39  ;;  %v2241_v39 = vsel %vm2140_vm11, %v2205_v13, 0.0 }
 0x2fb   :  { %5080 = vpow2.f32 %v3467_v21 }
 0x2fc   :  { %v7483_v54 = vpop.xlane.xlu1 %2866 }
 0x300   :  { %2245 = vadd.xlane.f32.xlu1 %v2244_v49  ;;  %v7497_v52 = vpop.xlane.xlu1 %2872  ;;  %v5071_v49 = vpop.eup %5070 }
 0x301   :  { %v3493_v11 = vadd.f32 %v5071_v49, %v5069_v23  ;;  %v5073_v10 = vpop.eup %5072  ;;  %v2174_v23 = vsel %vm2140_vm11, %v2135_v20, 0.0  ;;  %v8229_v49 = vld [vmem:[#allocation32_spill] sm:$0xff] }
 0x302   :  { %v5075_v21 = vpop.eup %5074 }
 0x303   :  { %2233 = vadd.xlane.f32.xlu0 %v2232_v1  ;;  %v2999_v1 = vadd.f32 %v5067_v17, %v5065_v9  ;;  %v2958_v9 = vsub.f32 %v7173_v61, %v7462_v56  ;;  %v3494_v12 = vadd.f32 %v5075_v21, %v3493_v11  ;;  %v3473_v17 = vmul.f32 1.442695, %v3451_v19 }
 0x304   :  { %v7508_v62 = vpop.xlane.xlu1 %2870  ;;  %v3453_v11 = vsub.f32 %v7007_v8, %v7464_v47 }
 0x305   :  { %v3000_v40 = vadd.f32 %v5073_v10, %v2999_v1  ;;  %v2981_v1 = vmul.f32 1.442695, %v2958_v9 }
 0x307   :  { %2169 = vadd.xlane.f32.xlu0 %v2168_v0  ;;  %v3471_v0 = vmul.f32 1.442695, %v3450_v32  ;;  %v2136_v32 = vmul.f32 %v8229_v49, %v8171_v37 }
 0x308   :  { %v7524_v34 = vpop.xlane.xlu1 %2876 }
 0x30b   :  { %2239 = vadd.xlane.f32.xlu0 %v2238_v28  ;;  %v3363_v59 = vpop.xlane.xlu0 %3362  ;;  %v5077_v28 = vpop.eup %5076 }
 0x30c   :  { %5082 = vlog2.f32 %v3363_v59  ;;  %v5079_v16 = vpop.eup %5078  ;;  %v2959_v59 = vsub.f32 %v8180_v33, %v7462_v56  ;;  %v2207_v33 = vmul.f32 %v8229_v49, %v8169_v60  ;;  %v2961_v49 = vsub.f32 %v8184_v4, %v7462_v56 }
 0x30d   :  { %5084 = vpow2.f32 %v2975_v36  ;;  %v3452_v36 = vsub.f32 %v7175_v38, %v7464_v47  ;;  %v3001_v58 = vadd.f32 %v5079_v16, %v3000_v40  ;;  %v5081_v61 = vpop.eup %5080  ;;  %v2177_v40 = vsel %vm2140_vm11, %v2136_v32, 0.0 }
 0x30e   :  { %5086 = vpow2.f32 %v3469_v35  ;;  %v2901_v35 = vmul.f32 0.6931472, %v5077_v28  ;;  %v3495_v13 = vadd.f32 %v5081_v61, %v3494_v12  ;;  %v2983_v9 = vmul.f32 1.442695, %v2959_v59 }
 0x30f   :  { %2172 = vadd.xlane.f32.xlu0 %v2171_v2  ;;  %v7517_v6 = vpop.xlane.xlu0 %3360  ;;  %5088 = vpow2.f32 %v2977_v25  ;;  %v3475_v10 = vmul.f32 1.442695, %v3452_v36  ;;  %v3477_v36 = vmul.f32 1.442695, %v3453_v11 }
 0x310   :  { %5090 = vpow2.f32 %v3471_v0  ;;  %v7539_v0 = vpop.xlane.xlu1 %2874  ;;  %v2923_v21 = vadd.f32 %v2901_v35, %v7218_v48  ;;  %v8230_v48 = vld [vmem:[#allocation35_spill] sm:$0xff] }
 0x311   :  { %5092 = vpow2.f32 %v2979_v5  ;;  %v2208_v4 = vmul.f32 %v8230_v48, %v8169_v60 }
 0x312   :  { %5094 = vpow2.f32 %v3473_v17  ;;  %v3454_v17 = vsub.f32 %v7005_v50, %v7464_v47 }
 0x313   :  { %2242 = vadd.xlane.f32.xlu0 %v2241_v39  ;;  %v7526_v24 = vpop.xlane.xlu0 %3366  ;;  %v2960_v39 = vsub.f32 %v8178_v51, %v7462_v56  ;;  %5096 = vpow2.f32 %v2981_v1  ;;  %v3455_v1 = vsub.f32 %v7019_v41, %v7464_v47 }
 0x314   :  { %5098 = vpow2.f32 %v3475_v10  ;;  %v7559_v35 = vpop.xlane.xlu1 %2880  ;;  %v2987_v10 = vmul.f32 1.442695, %v2961_v49 }
 0x315   :  { %5100 = vpow2.f32 %v2983_v9  ;;  %v2985_v32 = vmul.f32 1.442695, %v2960_v39  ;;  %v3456_v39 = vsub.f32 %v7015_v27, %v7464_v47 }
 0x316   :  { %v5083_v2 = vpop.eup %5082  ;;  %5102 = vpow2.f32 %v3477_v36 }
 0x317   :  { %v5085_v14 = vpop.eup %5084  ;;  %v3395_v25 = vmul.f32 0.6931472, %v5083_v2  ;;  %2175 = vadd.xlane.f32.xlu0 %v2174_v23  ;;  %v7535_v38 = vpop.xlane.xlu0 %3364  ;;  %v3479_v2 = vmul.f32 1.442695, %v3454_v17  ;;  %5104 = vpow2.f32 %v2985_v32 }
 0x318   :  { %v3002_v19 = vadd.f32 %v5085_v14, %v3001_v58  ;;  %v5087_v20 = vpop.eup %5086  ;;  %v2247_v58 = vsel %vm2140_vm11, %v2207_v33, 0.0 }
 0x319   :  { %v3417_v5 = vadd.f32 %v3395_v25, %v7244_v26  ;;  %v3496_v8 = vadd.f32 %v5087_v20, %v3495_v13  ;;  %v5089_v28 = vpop.eup %5088  ;;  %v2137_v26 = vmul.f32 %v8230_v48, %v8171_v37  ;;  %v2962_v25 = vsub.f32 %v8182_v55, %v7462_v56 }
 0x31a   :  { %v3003_v51 = vadd.f32 %v5089_v28, %v3002_v19  ;;  %v5091_v23 = vpop.eup %5090  ;;  %5106 = vpow2.f32 %v3479_v2  ;;  %v3481_v20 = vmul.f32 1.442695, %v3455_v1  ;;  %v2250_v55 = vsel %vm2140_vm11, %v2208_v4, 0.0 }
 0x31b   :  { %v7548_v12 = vadd.f32 %v3417_v5, %v2923_v21  ;;  %2178 = vadd.xlane.f32.xlu0 %v2177_v40  ;;  %v7550_v16 = vpop.xlane.xlu0 %3370  ;;  %v3497_v61 = vadd.f32 %v5091_v23, %v3496_v8  ;;  %v5093_v59 = vpop.eup %5092  ;;  %v2180_v14 = vsel %vm2140_vm11, %v2137_v26, 0.0  ;;  %v2963_v40 = vsub.f32 %v6982_v53, %v7462_v56  ;;  %v8231_v5 = vld [vmem:[#allocation30_spill] sm:$0xff] }
 0x31c   :  { %v3004_v13 = vadd.f32 %v5093_v59, %v3003_v51  ;;  %v5095_v11 = vpop.eup %5094  ;;  %v7576_v21 = vpop.xlane.xlu1 %2878  ;;  %v2138_v9 = vmul.f32 %v8231_v5, %v8171_v37  ;;  %v2989_v8 = vmul.f32 1.442695, %v2962_v25  ;;  %5108 = vpow2.f32 %v2987_v10  ;;  %v8232_v10 = vld [vmem:[#allocation33_spill] sm:$0xff] }
 0x31d   :  { %v3498_v19 = vadd.f32 %v5095_v11, %v3497_v61  ;;  %v5097_v33 = vpop.eup %5096  ;;  %v2964_v53 = vsub.f32 %v6966_v22, %v7462_v56  ;;  %v2991_v36 = vmul.f32 1.442695, %v2963_v40  ;;  %v3457_v48 = vsub.f32 %v7040_v29, %v7464_v47 }
 0x31e   :  { %v3005_v28 = vadd.f32 %v5097_v33, %v3004_v13  ;;  %v5099_v17 = vpop.eup %5098  ;;  %5110 = vpow2.f32 %v3481_v20  ;;  %v3483_v26 = vmul.f32 1.442695, %v3456_v39  ;;  %v2183_v49 = vsel %vm2140_vm11, %v2138_v9, 0.0 }
 0x31f   :  { %2248 = vadd.xlane.f32.xlu0 %v2247_v58  ;;  %v7561_v50 = vpop.xlane.xlu0 %3368  ;;  %v3499_v51 = vadd.f32 %v5099_v17, %v3498_v19  ;;  %v5101_v58 = vpop.eup %5100  ;;  %v2209_v32 = vmul.f32 %v8231_v5, %v8169_v60  ;;  %5112 = vpow2.f32 %v2989_v8  ;;  %v2965_v59 = vsub.f32 %v6999_v57, %v7462_v56 }
 0x320   :  { %v3006_v61 = vadd.f32 %v5101_v58, %v3005_v28  ;;  %v5103_v22 = vpop.eup %5102  ;;  %v2993_v1 = vmul.f32 1.442695, %v2964_v53  ;;  %v3485_v4 = vmul.f32 1.442695, %v3457_v48  ;;  %v2139_v19 = vmul.f32 %v8232_v10, %v8171_v37 }
 0x321   :  { %v3500_v2 = vadd.f32 %v5103_v22, %v3499_v51  ;;  %v5105_v13 = vpop.eup %5104  ;;  %v2253_v11 = vsel %vm2140_vm11, %v2209_v32, 0.0  ;;  %v2966_v33 = vsub.f32 %v6992_v42, %v7462_v56  ;;  %v2995_v39 = vmul.f32 1.442695, %v2965_v59 }
 0x322   :  { %v3007_v40 = vadd.f32 %v5105_v13, %v3006_v61  ;;  %v3459_v5 = vsub.f32 %v7065_v45, %v7464_v47  ;;  %v2186_v37 = vsel %vm2140_vm11, %v2139_v19, 0.0  ;;  %v2210_v28 = vmul.f32 %v8232_v10, %v8169_v60 }
 0x323   :  { %2181 = vadd.xlane.f32.xlu0 %v2180_v14  ;;  %v7572_v41 = vpop.xlane.xlu0 %3374  ;;  %v3458_v14 = vsub.f32 %v7033_v63, %v7464_v47  ;;  %v3460_v45 = vsub.f32 %v7056_v3, %v7464_v47 }
 0x324   :  { %v5107_v57 = vpop.eup %5106  ;;  %v2256_v60 = vsel %vm2140_vm11, %v2210_v28, 0.0 }
 0x325   :  { %v3501_v20 = vadd.f32 %v5107_v57, %v3500_v2  ;;  %v3487_v9 = vmul.f32 1.442695, %v3458_v14 }
 0x327   :  { %2251 = vadd.xlane.f32.xlu0 %v2250_v55  ;;  %v7583_v27 = vpop.xlane.xlu0 %3372  ;;  %v5109_v55 = vpop.eup %5108 }
 0x328   :  { %v2851_v23 = vpop.xlane.xlu1 %2850  ;;  %v3008_v17 = vadd.f32 %v5109_v55, %v3007_v40  ;;  %v5111_v42 = vpop.eup %5110 }
 0x329   :  { %5114 = vlog2.f32 %v2851_v23  ;;  %v5113_v53 = vpop.eup %5112  ;;  %v3502_v51 = vadd.f32 %v5111_v42, %v3501_v20 }
 0x32a   :  { %5116 = vpow2.f32 %v2991_v36  ;;  %v2997_v36 = vmul.f32 1.442695, %v2966_v33  ;;  %v3009_v32 = vadd.f32 %v5113_v53, %v3008_v17 }
 0x32b   :  { %2184 = vadd.xlane.f32.xlu0 %v2183_v49  ;;  %v2853_v29 = vpop.xlane.xlu0 %2852  ;;  %5118 = vpow2.f32 %v3483_v26  ;;  %v3489_v26 = vmul.f32 1.442695, %v3459_v5 }
 0x32c   :  { %5120 = vlog2.f32 %v2853_v29  ;;  %v3345_v25 = vpop.xlane.xlu1 %3344  ;;  %v3491_v29 = vmul.f32 1.442695, %v3460_v45 }
 0x32d   :  { %5122 = vlog2.f32 %v3345_v25 }
 0x32e   :  { %5124 = vpow2.f32 %v2993_v1 }
 0x32f   :  { %2254 = vadd.xlane.f32.xlu0 %v2253_v11  ;;  %v3347_v63 = vpop.xlane.xlu0 %3346  ;;  %5126 = vpow2.f32 %v3485_v4 }
 0x330   :  { %5128 = vlog2.f32 %v3347_v63  ;;  %v2857_v8 = vpop.xlane.xlu1 %2856 }
 0x331   :  { %5130 = vlog2.f32 %v2857_v8 }
 0x332   :  { %5132 = vpow2.f32 %v2995_v39 }
 0x333   :  { %v5115_v58 = vpop.eup %5114  ;;  %2187 = vadd.xlane.f32.xlu0 %v2186_v37  ;;  %v3351_v48 = vpop.xlane.xlu0 %3350  ;;  %5134 = vpow2.f32 %v3487_v9 }
 0x334   :  { %v5117_v23 = vpop.eup %5116  ;;  %5136 = vlog2.f32 %v3351_v48  ;;  %v2855_v49 = vpop.xlane.xlu1 %2854  ;;  %v2883_v59 = vmul.f32 0.6931472, %v5115_v58 }
 0x335   :  { %v5119_v61 = vpop.eup %5118  ;;  %5138 = vlog2.f32 %v2855_v49  ;;  %v3010_v25 = vadd.f32 %v5117_v23, %v3009_v32 }
 0x336   :  { %v5121_v22 = vpop.eup %5120  ;;  %5140 = vpow2.f32 %v2997_v36  ;;  %v3503_v1 = vadd.f32 %v5119_v61, %v3502_v51  ;;  %v2914_v40 = vadd.f32 %v2883_v59, %v7286_v31 }
 0x337   :  { %v5123_v2 = vpop.eup %5122  ;;  %2257 = vadd.xlane.f32.xlu0 %v2256_v60  ;;  %v3349_v13 = vpop.xlane.xlu0 %3348  ;;  %5142 = vpow2.f32 %v3489_v26  ;;  %v2885_v10 = vmul.f32 0.6931472, %v5121_v22 }
 0x338   :  { %v5125_v3 = vpop.eup %5124  ;;  %v3377_v14 = vmul.f32 0.6931472, %v5123_v2  ;;  %5144 = vlog2.f32 %v3349_v13  ;;  %v2861_v4 = vpop.xlane.xlu1 %2860 }
 0x339   :  { %v5127_v11 = vpop.eup %5126  ;;  %5146 = vlog2.f32 %v2861_v4  ;;  %v3011_v8 = vadd.f32 %v5125_v3, %v3010_v25  ;;  %v2915_v28 = vadd.f32 %v2885_v10, %v7292_v15 }
 0x33a   :  { %v5129_v19 = vpop.eup %5128  ;;  %v3408_v57 = vadd.f32 %v3377_v14, %v7294_v43  ;;  %v3504_v33 = vadd.f32 %v5127_v11, %v3503_v1  ;;  %5148 = vpow2.f32 %v3491_v29 }
 0x33b   :  { %v5131_v39 = vpop.eup %5130  ;;  %v3379_v20 = vmul.f32 0.6931472, %v5129_v19  ;;  %v3355_v55 = vpop.xlane.xlu0 %3354 }
 0x33c   :  { %v5133_v63 = vpop.eup %5132  ;;  %v7609_v5 = vadd.f32 %v3408_v57, %v2914_v40  ;;  %5150 = vlog2.f32 %v3355_v55  ;;  %v2859_v9 = vpop.xlane.xlu1 %2858  ;;  %v2889_v42 = vmul.f32 0.6931472, %v5131_v39  ;;  %v8233_v55 = vld [vmem:[#allocation25_spill] sm:$0xff] }
 0x33d   :  { %v5135_v37 = vpop.eup %5134  ;;  %v3409_v17 = vadd.f32 %v3379_v20, %v7300_v44  ;;  %5152 = vlog2.f32 %v2859_v9  ;;  %v3012_v23 = vadd.f32 %v5133_v63, %v3011_v8 }
 0x33e   :  { %v5137_v31 = vpop.eup %5136  ;;  %v3549_v43 = vand.u32 2147483647, %v7609_v5  ;;  %v3505_v53 = vadd.f32 %v5135_v37, %v3504_v33  ;;  %v2917_v44 = vadd.f32 %v2889_v42, %v7302_v7 }
 0x33f   :  { %v5139_v36 = vpop.eup %5138  ;;  %v7614_v51 = vadd.f32 %v3409_v17, %v2915_v28  ;;  %v3383_v58 = vmul.f32 0.6931472, %v5137_v31  ;;  %v3353_v48 = vpop.xlane.xlu0 %3352 }
 0x340   :  { %v5141_v45 = vpop.eup %5140  ;;  %v3565_v26 = vsub.f32 0.0, %v3549_v43  ;;  %5154 = vlog2.f32 %v3353_v48  ;;  %v2887_v32 = vmul.f32 0.6931472, %v5139_v36  ;;  %v2865_v19 = vpop.xlane.xlu1 %2864 }
 0x341   :  { %v5143_v49 = vpop.eup %5142  ;;  %v3550_v15 = vand.u32 2147483647, %v7614_v51  ;;  %v3411_v60 = vadd.f32 %v3383_v58, %v7308_v18  ;;  %5156 = vlog2.f32 %v7517_v6  ;;  %v3013_v4 = vadd.f32 %v5141_v45, %v3012_v23 }
 0x342   :  { %v5145_v61 = vpop.eup %5144  ;;  %v3581_v22 = vmul.f32 1.442695, %v3565_v26  ;;  %v3506_v59 = vadd.f32 %v5143_v49, %v3505_v53  ;;  %v2916_v18 = vadd.f32 %v2887_v32, %v7310_v30  ;;  %v8234_v30 = vld [vmem:[#allocation36_spill] sm:$0xff]  ;;  %v8235_v26 = vld [vmem:[#allocation41_spill] sm:$0xff]  ;;  %v8236_v49 = vld [vmem:[#allocation23_spill] sm:$0xff] }
 0x343   :  { %v5147_v1 = vpop.eup %5146  ;;  %v3566_v2 = vsub.f32 0.0, %v3550_v15  ;;  %v7620_v13 = vadd.f32 %v3411_v60, %v2917_v44  ;;  %v3381_v29 = vmul.f32 0.6931472, %v5145_v61  ;;  %v3359_v3 = vpop.xlane.xlu0 %3358  ;;  %v3014_v9 = vrot.slane %v3013_v4, 4 }
 0x344   :  { %5158 = vpow2.f32 %v3581_v22  ;;  %v2893_v14 = vmul.f32 0.6931472, %v5147_v1  ;;  %v5149_v25 = vpop.eup %5148 }
 0x345   :  { %v3583_v11 = vmul.f32 1.442695, %v3566_v2  ;;  %v3552_v7 = vand.u32 2147483647, %v7620_v13  ;;  %v3410_v10 = vadd.f32 %v3381_v29, %v7316_v46  ;;  %5160 = vlog2.f32 %v3359_v3 }
 0x346   :  { %v5151_v40 = vpop.eup %5150  ;;  %v3507_v6 = vadd.f32 %v5149_v25, %v3506_v59  ;;  %v2919_v63 = vadd.f32 %v2893_v14, %v8233_v55  ;;  %v3015_v36 = vadd.f32 %v3014_v9, %v3013_v4 }
 0x347   :  { %v5153_v57 = vpop.eup %5152  ;;  %5162 = vpow2.f32 %v3583_v11  ;;  %v3568_v33 = vsub.f32 0.0, %v3552_v7  ;;  %v7625_v39 = vadd.f32 %v3410_v10, %v2916_v18  ;;  %v3387_v20 = vmul.f32 0.6931472, %v5151_v40 }
 0x348   :  { %5164 = vlog2.f32 %v2865_v19  ;;  %v2891_v46 = vmul.f32 0.6931472, %v5153_v57  ;;  %v3508_v42 = vrot.slane %v3507_v6, 4  ;;  %v3016_v29 = vrot.slane %v3015_v36, 2 }
 0x349   :  { %v3587_v8 = vmul.f32 1.442695, %v3568_v33  ;;  %v3551_v37 = vand.u32 2147483647, %v7625_v39  ;;  %v3413_v28 = vadd.f32 %v3387_v20, %v8234_v30  ;;  %5166 = vlog2.f32 %v7483_v54  ;;  %v2863_v33 = vpop.xlane.xlu1 %2862  ;;  %v8238_v30 = vld [vmem:[#allocation49_spill] sm:$0xff] }
 0x34a   :  { %v5155_v17 = vpop.eup %5154  ;;  %v2918_v23 = vadd.f32 %v2891_v46, %v8235_v26  ;;  %v3509_v60 = vadd.f32 %v3508_v42, %v3507_v6  ;;  %v3017_v19 = vadd.f32 %v3016_v29, %v3015_v36 }
 0x34b   :  { %5168 = vpow2.f32 %v3587_v8  ;;  %v3567_v31 = vsub.f32 0.0, %v3551_v37  ;;  %v7631_v43 = vadd.f32 %v3413_v28, %v2919_v63  ;;  %v3385_v53 = vmul.f32 0.6931472, %v5155_v17  ;;  %v5157_v58 = vpop.eup %5156  ;;  %v8237_v63 = vld [vmem:[#allocation38_spill] sm:$0xff]  ;;  %v8239_v17 = vld [vmem:[#allocation21_spill] sm:$0xff] }
 0x34c   :  { %v3510_v4 = vrot.slane %v3509_v60, 2  ;;  %v3393_v40 = vmul.f32 0.6931472, %v5157_v58  ;;  %v3018_v37 = vrot.slane %v3017_v19, 1  ;;  %v8240_v58 = vld [vmem:[#allocation42_spill] sm:$0xff] }
 0x34d   :  { %v3585_v48 = vmul.f32 1.442695, %v3567_v31  ;;  %v3554_v45 = vand.u32 2147483647, %v7631_v43  ;;  %v3412_v15 = vadd.f32 %v3385_v53, %v8236_v49 }
 0x34e   :  { %v5159_v44 = vpop.eup %5158  ;;  %v3511_v20 = vadd.f32 %v3510_v4, %v3509_v60  ;;  %v3416_v28 = vadd.f32 %v3393_v40, %v8238_v30  ;;  %v3019_v49 = vadd.f32 %v3018_v37, %v3017_v19 }
 0x34f   :  { %v3613_v32 = vadd.f32 1.0, %v5159_v44  ;;  %5170 = vpow2.f32 %v3585_v48  ;;  %v3570_v54 = vsub.f32 0.0, %v3554_v45  ;;  %v7636_v61 = vadd.f32 %v3412_v15, %v2918_v23  ;;  %v5161_v22 = vpop.eup %5160 }
 0x350   :  { %v3391_v7 = vmul.f32 0.6931472, %v5161_v22  ;;  %v3512_v31 = vrot.slane %v3511_v20, 1  ;;  %v3534_v22 = vmax.f32 %v7614_v51, 0.0 }
 0x351   :  { %v5163_v59 = vpop.eup %5162  ;;  %5172 = vlog2.f32 %v3613_v32  ;;  %v3591_v1 = vmul.f32 1.442695, %v3570_v54  ;;  %v3553_v2 = vand.u32 2147483647, %v7636_v61  ;;  %v3533_v54 = vmax.f32 %v7609_v5, 0.0 }
 0x352   :  { %v5165_v3 = vpop.eup %5164  ;;  %v3614_v14 = vadd.f32 1.0, %v5163_v59  ;;  %v3415_v9 = vadd.f32 %v3391_v7, %v8237_v63  ;;  %v3513_v32 = vadd.f32 %v3512_v31, %v3511_v20  ;;  %v3536_v5 = vmax.f32 %v7620_v13, 0.0  ;;  %v8244_v31 = vld [vmem:[#allocation57_spill] sm:$0xff] }
 0x353   :  { %5174 = vpow2.f32 %v3591_v1  ;;  %v3569_v25 = vsub.f32 0.0, %v3553_v2  ;;  %v5167_v11 = vpop.eup %5166  ;;  %v2897_v57 = vmul.f32 0.6931472, %v5165_v3  ;;  %v3535_v13 = vmax.f32 %v7625_v39, 0.0 }
 0x354   :  { %5176 = vlog2.f32 %v3614_v14  ;;  %v2899_v55 = vmul.f32 0.6931472, %v5167_v11 }
 0x355   :  { %v5169_v18 = vpop.eup %5168  ;;  %v3589_v10 = vmul.f32 1.442695, %v3569_v25  ;;  %v2921_v42 = vadd.f32 %v2897_v57, %v8239_v17 }
 0x356   :  { %v3616_v6 = vadd.f32 1.0, %v5169_v18  ;;  %v2922_v48 = vadd.f32 %v2899_v55, %v8240_v58 }
 0x357   :  { %5178 = vpow2.f32 %v3589_v10  ;;  %v7643_v45 = vadd.f32 %v3415_v9, %v2921_v42  ;;  %v8243_v42 = vld [vmem:[#allocation40_spill] sm:$0xff] }
 0x358   :  { %5180 = vlog2.f32 %v3616_v6  ;;  %v7645_v44 = vadd.f32 %v3416_v28, %v2922_v48  ;;  %v3558_v6 = vand.u32 2147483647, %v7548_v12 }
 0x359   :  { %v5171_v8 = vpop.eup %5170  ;;  %5182 = vlog2.f32 %v2863_v33  ;;  %v3556_v1 = vand.u32 2147483647, %v7643_v45 }
 0x35a   :  { %v3615_v46 = vadd.f32 1.0, %v5171_v8  ;;  %v3557_v4 = vand.u32 2147483647, %v7645_v44  ;;  %v8242_v8 = vld [vmem:[#allocation22_spill] sm:$0xff] }
 0x35b   :  { %v5173_v53 = vpop.eup %5172  ;;  %v3357_v36 = vpop.xlane.xlu0 %3356  ;;  %v3572_v18 = vsub.f32 0.0, %v3556_v1 }
 0x35c   :  { %5184 = vlog2.f32 %v3615_v46  ;;  %v3630_v23 = vmul.f32 0.6931472, %v5173_v53  ;;  %v3573_v57 = vsub.f32 0.0, %v3557_v4  ;;  %v3574_v46 = vsub.f32 0.0, %v3558_v6 }
 0x35d   :  { %v5175_v26 = vpop.eup %5174  ;;  %5186 = vlog2.f32 %v3357_v36 }
 0x35e   :  { %v5177_v15 = vpop.eup %5176  ;;  %v3618_v60 = vadd.f32 1.0, %v5175_v26  ;;  %v3661_v29 = vadd.f32 %v3630_v23, %v3533_v54  ;;  %v3597_v17 = vmul.f32 1.442695, %v3573_v57  ;;  %v3599_v1 = vmul.f32 1.442695, %v3574_v46 }
 0x35f   :  { %v3632_v59 = vmul.f32 0.6931472, %v5177_v15  ;;  %v8245_v15 = vld [vmem:[#allocation55_spill] sm:$0xff] }
 0x360   :  { %5188 = vlog2.f32 %v3618_v60  ;;  %v3678_v10 = vmul.f32 0.025, %v3661_v29 }
 0x361   :  { %v5179_v2 = vpop.eup %5178  ;;  %v3662_v3 = vadd.f32 %v3632_v59, %v3534_v22  ;;  %5190 = vlog2.f32 %v3019_v49 }
 0x362   :  { %v5181_v14 = vpop.eup %5180  ;;  %v3617_v25 = vadd.f32 1.0, %v5179_v2  ;;  %5192 = vlog2.f32 %v3513_v32  ;;  %v8246_v32 = vld [vmem:[#allocation39_spill] sm:$0xff] }
 0x363   :  { %v5183_v11 = vpop.eup %5182  ;;  %5194 = vlog2.f32 %v7497_v52  ;;  %v3679_v7 = vmul.f32 0.025, %v3662_v3  ;;  %v3636_v51 = vmul.f32 0.6931472, %v5181_v14  ;;  %v8241_v52 = vld [vmem:[#allocation37_spill] sm:$0xff]  ;;  %v3537_v14 = vmax.f32 %v7636_v61, 0.0 }
 0x364   :  { %5196 = vlog2.f32 %v3617_v25  ;;  %v2895_v33 = vmul.f32 0.6931472, %v5183_v11 }
 0x365   :  { %5198 = vlog2.f32 %v7508_v62  ;;  %v3664_v19 = vadd.f32 %v3636_v51, %v3536_v5  ;;  %v3706_v55 = vmul.f32 %v3679_v7, %v8241_v52  ;;  %v3595_v62 = vmul.f32 1.442695, %v3572_v18  ;;  %v8248_v52 = vld [vmem:[#allocation26_spill] sm:$0xff] }
 0x366   :  { %v5185_v40 = vpop.eup %5184  ;;  %5200 = vlog2.f32 %v7524_v34  ;;  %v3705_v34 = vmul.f32 %v3678_v10, %v8242_v8 }
 0x367   :  { %v5187_v20 = vpop.eup %5186  ;;  %5202 = vlog2.f32 %v7526_v24  ;;  %v3634_v63 = vmul.f32 0.6931472, %v5185_v40  ;;  %v3681_v37 = vmul.f32 0.025, %v3664_v19  ;;  %v2920_v24 = vadd.f32 %v2895_v33, %v8243_v42  ;;  %v7681_v19 = vpop.xlane.xlu1 %2163  ;;  %v8247_v33 = vld [vmem:[#allocation56_spill] sm:$0xff] }
 0x368   :  { %5204 = vlog2.f32 %v7535_v38  ;;  %v3389_v9 = vmul.f32 0.6931472, %v5187_v20  ;;  %v3723_v39 = vsel %vm3721_vm8, %v3706_v55, 0.0  ;;  %v3538_v38 = vmax.f32 %v7631_v43, 0.0 }
 0x369   :  { %5206 = vlog2.f32 %v7550_v16  ;;  %v3663_v30 = vadd.f32 %v3634_v63, %v3535_v13  ;;  %v3722_v49 = vsel %vm3721_vm8, %v3705_v34, 0.0  ;;  %v3708_v60 = vmul.f32 %v3681_v37, %v8245_v15  ;;  %v8252_v15 = vld [vmem:[#allocation43_spill] sm:$0xff] }
 0x36a   :  { %v5189_v28 = vpop.eup %5188  ;;  %v3414_v53 = vadd.f32 %v3389_v9, %v8244_v31  ;;  %5208 = vpow2.f32 %v3595_v62  ;;  %v3724_v2 = vadd.f32 %v3723_v39, %v3722_v49  ;;  %vm2388_vm11 = vcmp.gt.f32.partialorder %v7681_v19, 0.0 }
 0x36b   :  { %v5191_v36 = vpop.eup %5190  ;;  %v3680_v58 = vmul.f32 0.025, %v3663_v30  ;;  %v3640_v48 = vmul.f32 0.6931472, %v5189_v28  ;;  %5210 = vlog2.f32 %v7561_v50  ;;  %v3727_v18 = vsel %vm3721_vm8, %v3708_v60, 0.0  ;;  %v7687_v8 = vpop.xlane.xlu1 %2166  ;;  %v8249_v30 = vld [vmem:[#allocation53_spill] sm:$0xff] }
 0x36c   :  { %v7666_v26 = vpop.eup %5192  ;;  %v7668_v16 = vadd.f32 %v3414_v53, %v2920_v24  ;;  %5212 = vpow2.f32 %v3597_v17  ;;  %v8250_v24 = vld [vmem:[#allocation48_spill] sm:$0xff]  ;;  %v3021_v39 = vmul.f32 0.6931472, %v5191_v36  ;;  %vm2389_vm6 = vcmp.gt.f32.partialorder %v7687_v8, 0.0 }
 0x36d   :  { %v5195_v23 = vpop.eup %5194  ;;  %v3707_v54 = vmul.f32 %v3680_v58, %v8246_v32  ;;  %v3666_v22 = vadd.f32 %v3640_v48, %v3538_v38  ;;  %5214 = vlog2.f32 %v7539_v0  ;;  %v8251_v38 = vld [vmem:[#allocation44_spill] sm:$0xff]  ;;  %v8267_v19 = vmov 0.0  }
 0x36e   :  { %v5197_v59 = vpop.eup %5196  ;;  %v3555_v43 = vand.u32 2147483647, %v7668_v16  ;;  %5216 = vlog2.f32 %v7576_v21  ;;  %v2905_v63 = vmul.f32 0.6931472, %v5195_v23  ;;  %v3542_v8 = vmax.f32 %v7548_v12, 0.0 }
 0x36f   :  { %v5199_v29 = vpop.eup %5198  ;;  %v3725_v3 = vsel %vm3721_vm8, %v3707_v54, 0.0  ;;  %v3638_v4 = vmul.f32 0.6931472, %v5197_v59  ;;  %v3683_v51 = vmul.f32 0.025, %v3666_v22  ;;  %5218 = vlog2.f32 %v7583_v27  ;;  %v7702_v36 = vpop.xlane.xlu1 %2236 }
 0x370   :  { %v5201_v25 = vpop.eup %5200  ;;  %v3571_v11 = vsub.f32 0.0, %v3555_v43  ;;  %v3726_v7 = vadd.f32 %v3725_v3, %v3724_v2  ;;  %5220 = vpow2.f32 %v3599_v1  ;;  %v2903_v27 = vmul.f32 0.6931472, %v5199_v29  ;;  %v8253_v3 = vld [vmem:[#allocation50_spill] sm:$0xff] }
 0x371   :  { %v5203_v5 = vpop.eup %5202  ;;  %v3665_v50 = vadd.f32 %v3638_v4, %v3537_v14  ;;  %v3710_v21 = vmul.f32 %v3683_v51, %v8248_v52  ;;  %v3515_v54 = vmul.f32 0.6931472, %v7666_v26  ;;  %v3022_v29 = vadd.f32 %v3021_v39, %v7462_v56  ;;  %v8254_v4 = vld [vmem:[#allocation52_spill] sm:$0xff] }
 0x372   :  { %v5205_v10 = vpop.eup %5204  ;;  %v3593_v40 = vmul.f32 1.442695, %v3571_v11  ;;  %v3728_v61 = vadd.f32 %v3727_v18, %v3726_v7  ;;  %v3399_v0 = vmul.f32 0.6931472, %v5203_v5  ;;  %v2924_v60 = vadd.f32 %v2903_v27, %v8252_v15  ;;  %v8255_v5 = vld [vmem:[#allocation45_spill] sm:$0xff]  ;;  %v8256_v18 = vld [vmem:[#allocation47_spill] sm:$0xff] }
 0x373   :  { %v5207_v6 = vpop.eup %5206  ;;  %v3682_v57 = vmul.f32 0.025, %v3665_v50  ;;  %v3397_v13 = vmul.f32 0.6931472, %v5205_v10  ;;  %v3731_v17 = vsel %vm3721_vm8, %v3710_v21, 0.0  ;;  %v3516_v50 = vadd.f32 %v3515_v54, %v7464_v47  ;;  %v4939_v21 = vpop.permute.xlu1 %4938  ;;  %v8258_v47 = vld [vmem:[#allocation46_spill] sm:$0xff] }
 0x374   :  { %5222 = vpow2.f32 %v3593_v40  ;;  %v5209_v55 = vpop.eup %5208  ;;  %v3419_v28 = vadd.f32 %v3399_v0, %v8249_v30  ;;  %v3403_v48 = vmul.f32 0.6931472, %v5207_v6  ;;  %vm2405_vm12 = vcmp.lt.f32.partialorder %v7702_v36, 128.0 }
 0x375   :  { %v3709_v20 = vmul.f32 %v3682_v57, %v8247_v33  ;;  %v5211_v9 = vpop.eup %5210  ;;  %5224 = vlog2.f32 %v7572_v41  ;;  %v3620_v46 = vadd.f32 1.0, %v5209_v55  ;;  %v3418_v31 = vadd.f32 %v3397_v13, %v8250_v24  ;;  %vm7744_vm3 = vmand %vm2389_vm6, %vm2405_vm12 }
 0x376   :  { %v5213_v37 = vpop.eup %5212  ;;  %5226 = vlog2.f32 %v7559_v35  ;;  %v2925_v41 = vadd.f32 %v2905_v63, %v8251_v38  ;;  %v3401_v23 = vmul.f32 0.6931472, %v5211_v9  ;;  %v2909_v35 = vmul.f32 0.6931472, %v5201_v25 }
 0x377   :  { %v3729_v62 = vsel %vm3721_vm8, %v3709_v20, 0.0  ;;  %v5215_v42 = vpop.eup %5214  ;;  %v3621_v32 = vadd.f32 1.0, %v5213_v37  ;;  %5228 = vlog2.f32 %v3620_v46  ;;  %v7700_v43 = vadd.f32 %v3418_v31, %v2924_v60  ;;  %v8257_v20 = vld [vmem:[#allocation34_spill] sm:$0xff] }
 0x378   :  { %v3730_v34 = vadd.f32 %v3729_v62, %v3728_v61  ;;  %v5217_v58 = vpop.eup %5216  ;;  %v2907_v59 = vmul.f32 0.6931472, %v5215_v42  ;;  %v7698_v1 = vadd.f32 %v3419_v28, %v2925_v41  ;;  %v3421_v14 = vadd.f32 %v3403_v48, %v8253_v3  ;;  %v8259_v31 = vld [vmem:[#allocation54_spill] sm:$0xff]  ;;  %v8260_v41 = vld [vmem:[#allocation51_spill] sm:$0xff] }
 0x379   :  { %v5219_v49 = vpop.eup %5218  ;;  %v3420_v11 = vadd.f32 %v3401_v23, %v8254_v4  ;;  %v2927_v26 = vadd.f32 %v2909_v35, %v8255_v5  ;;  %5230 = vlog2.f32 %v3621_v32  ;;  %v2911_v61 = vmul.f32 0.6931472, %v5217_v58 }
 0x37a   :  { %v7693_v53 = vadd.f32 %v3731_v17, %v3730_v34  ;;  %v5221_v22 = vpop.eup %5220  ;;  %v3405_v25 = vmul.f32 0.6931472, %v5219_v49  ;;  %v2926_v10 = vadd.f32 %v2907_v59, %v8256_v18  ;;  %v3560_v40 = vand.u32 2147483647, %v7698_v1  ;;  %v4934_v17 = vpop.permute.xlu0 %4933 }
 0x37b   :  { %v3622_v51 = vadd.f32 1.0, %v5221_v22  ;;  %v3559_v56 = vand.u32 2147483647, %v7700_v43  ;;  %v7712_v0 = vadd.f32 %v3421_v14, %v2927_v26  ;;  %v2928_v13 = vadd.f32 %v2911_v61, %v8258_v47  ;;  %v8261_v22 = vld [vmem:[#allocation24_spill] sm:$0xff]  ;;  %v8263_v26 = vld [vmem:[#allocation15_spill] sm:$0xff] }
 0x37c   :  { %v7714_v33 = vadd.f32 %v3420_v11, %v2926_v10  ;;  %v3422_v52 = vadd.f32 %v3405_v25, %v8257_v20  ;;  %v3576_v55 = vsub.f32 0.0, %v3560_v40  ;;  %v7718_v62 = vadd.f32 %v3516_v50, %v3022_v29 }
 0x37d   :  { %v3575_v27 = vsub.f32 0.0, %v3559_v56  ;;  %v3562_v37 = vand.u32 2147483647, %v7712_v0  ;;  %v4941_v46 = vunpack.i.h.bf16 %v4939_v21  ;;  %v4940_v42 = vunpack.i.l.bf16 %v4939_v21 }
 0x37e   :  { %v5223_v2 = vpop.eup %5222  ;;  %v3561_v30 = vand.u32 2147483647, %v7714_v33  ;;  %v7722_v28 = vadd.f32 %v3422_v52, %v2928_v13  ;;  %v3603_v24 = vmul.f32 1.442695, %v3576_v55  ;;  %v3696_v58 = vand.u32 2147483647, %v7718_v62  ;;  %v4944_v52 = vpop.permute.xlu1 %4943 }
 0x37f   :  { %v3619_v7 = vadd.f32 1.0, %v5223_v2  ;;  %v5225_v6 = vpop.eup %5224  ;;  %v3601_v23 = vmul.f32 1.442695, %v3575_v27  ;;  %v4935_v49 = vunpack.i.l.bf16 %v4934_v17  ;;  %v3578_v35 = vsub.f32 0.0, %v3562_v37  ;;  %v8262_v2 = vld [vmem:[#allocation11_spill] sm:$0xff] }
 0x380   :  { %v5227_v57 = vpop.eup %5226  ;;  %v3407_v63 = vmul.f32 0.6931472, %v5225_v6  ;;  %v3577_v32 = vsub.f32 0.0, %v3561_v30  ;;  %v3563_v54 = vand.u32 2147483647, %v7722_v28  ;;  %v2300_v59 = vmul.f32 %v4941_v46, %v8261_v22  ;;  %v8266_v13 = vld [vmem:[#allocation31_spill] sm:$0xff] }
 0x381   :  { %5232 = vlog2.f32 %v3619_v7  ;;  %v2913_v9 = vmul.f32 0.6931472, %v5227_v57  ;;  %v5229_v34 = vpop.eup %5228  ;;  %v2299_v29 = vmul.f32 %v4940_v42, %v8262_v2  ;;  %v3539_v3 = vmax.f32 %v7668_v16, 0.0 }
 0x382   :  { %5234 = vlog2.f32 %v3622_v51  ;;  %v3423_v39 = vadd.f32 %v3407_v63, %v8259_v31  ;;  %v3644_v15 = vmul.f32 0.6931472, %v5229_v34  ;;  %v3540_v4 = vmax.f32 %v7643_v45, 0.0  ;;  %v8268_v34 = vld [vmem:[#allocation14_spill] sm:$0xff] }
 0x383   :  { %v5231_v38 = vpop.eup %5230  ;;  %v2929_v48 = vadd.f32 %v2913_v9, %v8260_v41  ;;  %5236 = vpow2.f32 %v3603_v24  ;;  %v2301_v51 = vmul.f32 %v4935_v49, %v8263_v26  ;;  %v3605_v18 = vmul.f32 1.442695, %v3577_v32 }
 0x384   :  { %v3646_v25 = vmul.f32 0.6931472, %v5231_v38  ;;  %v3668_v50 = vadd.f32 %v3644_v15, %v3540_v4  ;;  %5238 = vpow2.f32 %v3601_v23  ;;  %v3579_v10 = vsub.f32 0.0, %v3563_v54  ;;  %v8269_v15 = vld [vmem:[#allocation20_spill] sm:$0xff]  ;;  %v4949_v54 = vpop.permute.xlu1 %4948 }
 0x385   :  { %v7732_v11 = vadd.f32 %v3423_v39, %v2929_v48  ;;  %v3541_v16 = vmax.f32 %v7645_v44, 0.0  ;;  %v3607_v40 = vmul.f32 1.442695, %v3578_v35  ;;  %v2307_v45 = vadd.f32 %v2300_v59, %v2299_v29  ;;  %v8270_v4 = vld [vmem:[#allocation16_spill] sm:$0xff] }
 0x386   :  { %v4936_v6 = vunpack.i.h.bf16 %v4934_v17  ;;  %v3685_v47 = vmul.f32 0.025, %v3668_v50  ;;  %5240 = vpow2.f32 %v3605_v18  ;;  %v3609_v9 = vmul.f32 1.442695, %v3579_v10 }
 0x387   :  { %v3564_v57 = vand.u32 2147483647, %v7732_v11  ;;  %v3669_v21 = vadd.f32 %v3646_v25, %v3541_v16  ;;  %v2308_v55 = vadd.f32 %v2307_v45, %v2301_v51  ;;  %v4945_v36 = vunpack.i.l.bf16 %v4944_v52 }
 0x388   :  { %v2302_v37 = vmul.f32 %v4936_v6, %v8268_v34  ;;  %5242 = vpow2.f32 %v3607_v40  ;;  %v7759_v24 = vsel %vm7744_vm3, 1.0, %v8267_v19  ;;  %v4946_v49 = vunpack.i.h.bf16 %v4944_v52  ;;  %v8271_v6 = vld [vmem:[#allocation17_spill] sm:$0xff] }
 0x389   :  { %v3580_v42 = vsub.f32 0.0, %v3564_v57  ;;  %v3686_v39 = vmul.f32 0.025, %v3669_v21  ;;  %5244 = vpow2.f32 %v3609_v9  ;;  %v8273_v9 = vld [vmem:[#allocation19_spill] sm:$0xff] }
 0x38a   :  { %v2309_v38 = vadd.f32 %v2308_v55, %v2302_v37  ;;  %v2304_v25 = vmul.f32 %v4946_v49, %v8270_v4 }
 0x38b   :  { %v5233_v60 = vpop.eup %5232  ;;  %v3713_v23 = vmul.f32 %v3686_v39, %v7759_v24  ;;  %v3611_v59 = vmul.f32 1.442695, %v3580_v42 }
 0x38c   :  { %v3642_v14 = vmul.f32 0.6931472, %v5233_v60  ;;  %v5235_v7 = vpop.eup %5234  ;;  %v2303_v60 = vmul.f32 %v4945_v36, %v8269_v15 }
 0x38d   :  { %v3648_v44 = vmul.f32 0.6931472, %v5235_v7  ;;  %v5237_v48 = vpop.eup %5236  ;;  %v4950_v7 = vunpack.i.l.bf16 %v4949_v54  ;;  %5246 = vpow2.f32 %v3611_v59 }
 0x38e   :  { %v3667_v5 = vadd.f32 %v3642_v14, %v3539_v3  ;;  %v5239_v32 = vpop.eup %5238  ;;  %v2310_v2 = vadd.f32 %v2309_v38, %v2303_v60  ;;  %v3737_v14 = vsel %vm3721_vm8, %v3713_v23, 0.0  ;;  %v3624_v20 = vadd.f32 1.0, %v5237_v48  ;;  %v2246_v60 = vpop.xlane.xlu1 %2245 }
 0x38f   :  { %v3670_v41 = vadd.f32 %v3648_v44, %v3542_v8  ;;  %v3623_v45 = vadd.f32 1.0, %v5239_v32  ;;  %v2375_v8 = vrot.slane %v8273_v9, 4  ;;  %vm2408_vm1 = vcmp.lt.f32.partialorder %v2246_v60, 128.0 }
 0x390   :  { %v3684_v61 = vmul.f32 0.025, %v3667_v5  ;;  %v2234_v56 = vpop.xlane.xlu0 %2233  ;;  %v5241_v51 = vpop.eup %5240 }
 0x391   :  { %vm2404_vm4 = vcmp.lt.f32.partialorder %v2234_v56, 128.0  ;;  %v3687_v29 = vmul.f32 0.025, %v3670_v41  ;;  %v2305_v56 = vmul.f32 %v4950_v7, %v8271_v6  ;;  %v3625_v52 = vadd.f32 1.0, %v5241_v51 }
 0x392   :  { %vm2420_vm14 = vmand %vm2388_vm11, %vm2404_vm4  ;;  %v3711_v63 = vmul.f32 %v3684_v61, %v8266_v13  ;;  %v5243_v16 = vpop.eup %5242  ;;  %v4951_v61 = vunpack.i.h.bf16 %v4949_v54  ;;  %v3545_v7 = vmax.f32 %v7714_v33, 0.0 }
 0x393   :  { %v7750_v27 = vsel %vm2420_vm14, 1.0, %v8267_v19  ;;  %v5245_v44 = vpop.eup %5244  ;;  %v3626_v55 = vadd.f32 1.0, %v5243_v16 }
 0x394   :  { %v3712_v30 = vmul.f32 %v3685_v47, %v7750_v27  ;;  %v3733_v46 = vsel %vm3721_vm8, %v3711_v63, 0.0  ;;  %v2170_v17 = vpop.xlane.xlu0 %2169  ;;  %v8272_v47 = vld [vmem:[#allocation18_spill] sm:$0xff]  ;;  %v3627_v36 = vadd.f32 1.0, %v5245_v44  ;;  %v3776_v4 = vsel %vm3721_vm8, %v7750_v27, 0.0 }
 0x395   :  { %v3734_v31 = vadd.f32 %v3733_v46, %v7693_v53  ;;  %vm2390_vm0 = vcmp.gt.f32.partialorder %v2170_v17, 0.0  ;;  %v3697_v53 = vsub.f32 0.0, %v3696_v58  ;;  %v2311_v58 = vadd.f32 %v2310_v2, %v2304_v25 }
 0x396   :  { %v3735_v12 = vsel %vm3721_vm8, %v3712_v30, 0.0  ;;  %v2306_v13 = vmul.f32 %v4951_v61, %v8272_v47  ;;  %v2376_v46 = vadd.f32 %v2375_v8, %v8273_v9 }
 0x397   :  { %v3736_v22 = vadd.f32 %v3735_v12, %v3734_v31  ;;  %v3698_v18 = vmul.f32 1.442695, %v3697_v53  ;;  %v2312_v21 = vadd.f32 %v2311_v58, %v2305_v56  ;;  %v5247_v37 = vpop.eup %5246  ;;  %v3543_v53 = vmax.f32 %v7700_v43, 0.0 }
 0x398   :  { %v2240_v35 = vpop.xlane.xlu0 %2239  ;;  %v3628_v31 = vadd.f32 1.0, %v5247_v37  ;;  %v2377_v12 = vrot.slane %v2376_v46, 2 }
 0x399   :  { %vm2406_vm15 = vcmp.lt.f32.partialorder %v2240_v35, 128.0  ;;  %v3738_v50 = vadd.f32 %v3737_v14, %v3736_v22  ;;  %5248 = vpow2.f32 %v3698_v18  ;;  %v2313_v34 = vadd.f32 %v2312_v21, %v2306_v13 }
 0x39a   :  { %vm2422_vm9 = vmand %vm2390_vm0, %vm2406_vm15  ;;  %5250 = vlog2.f32 %v3623_v45  ;;  %v7780_v22 = vadd.f32 %v2377_v12, %v2376_v46  ;;  %v3544_v14 = vmax.f32 %v7698_v1, 0.0  ;;  %v3546_v18 = vmax.f32 %v7712_v0, 0.0 }
 0x39b   :  { %v7768_v3 = vsel %vm2422_vm9, 1.0, %v8267_v19  ;;  %5252 = vlog2.f32 %v3624_v20  ;;  %v2314_v17 = vrot.slane %v2313_v34, 4  ;;  %v3547_v20 = vmax.f32 %v7722_v28, 0.0 }
 0x39c   :  { %v3714_v5 = vmul.f32 %v3687_v29, %v7768_v3  ;;  %v2173_v26 = vpop.xlane.xlu0 %2172  ;;  %5254 = vlog2.f32 %v3625_v52  ;;  %v2379_v6 = vrot.slane %v7780_v22, 1  ;;  %v3778_v52 = vsel %vm3721_vm8, %v7759_v24, 0.0 }
 0x39d   :  { %5256 = vlog2.f32 %v3626_v55  ;;  %v2315_v48 = vadd.f32 %v2314_v17, %v2313_v34  ;;  %vm2391_vm13 = vcmp.gt.f32.partialorder %v2173_v26, 0.0  ;;  %v3780_v44 = vsel %vm3721_vm8, %v7768_v3, 0.0 }
 0x39e   :  { %v3739_v10 = vsel %vm3721_vm8, %v3714_v5, 0.0  ;;  %5258 = vlog2.f32 %v3627_v36  ;;  %v3548_v12 = vmax.f32 %v7732_v11, 0.0 }
 0x39f   :  { %v7774_v40 = vadd.f32 %v3739_v10, %v3738_v50  ;;  %5260 = vlog2.f32 %v3628_v31  ;;  %v2316_v2 = vrot.slane %v2315_v48, 2  ;;  %v8276_v10 = vld [vmem:[#allocation58_spill] sm:$0xff] }
 0x3a0   :  { %v2243_v57 = vpop.xlane.xlu0 %2242  ;;  %v3777_v16 = vadd.f32 %v3776_v4, %v8276_v10 }
 0x3a1   :  { %vm2407_vm10 = vcmp.lt.f32.partialorder %v2243_v57, 128.0  ;;  %v2317_v58 = vadd.f32 %v2316_v2, %v2315_v48 }
 0x3a2   :  { %vm2423_vm2 = vmand %vm2391_vm13, %vm2407_vm10  ;;  %v3779_v47 = vadd.f32 %v3778_v52, %v3777_v16 }
 0x3a3   :  { %v5249_v42 = vpop.eup %5248  ;;  %v2439_v27 = vsel %vm2423_vm2, 1.0, %v8267_v19  ;;  %v2318_v55 = vrot.slane %v2317_v58, 1 }
 0x3a4   :  { %v2176_v63 = vpop.xlane.xlu0 %2175  ;;  %v5251_v38 = vpop.eup %5250  ;;  %v3700_v23 = vadd.f32 1.0, %v5249_v42  ;;  %v3782_v36 = vsel %vm3721_vm8, %v2439_v27, 0.0  ;;  %v3781_v46 = vadd.f32 %v3780_v44, %v3779_v47 }
 0x3a5   :  { %v5253_v41 = vpop.eup %5252  ;;  %v3650_v15 = vmul.f32 0.6931472, %v5251_v38  ;;  %vm2392_vm7 = vcmp.gt.f32.partialorder %v2176_v63, 0.0  ;;  %v2319_v31 = vadd.f32 %v2318_v55, %v2317_v58 }
 0x3a6   :  { %v5255_v49 = vpop.eup %5254  ;;  %v3652_v54 = vmul.f32 0.6931472, %v5253_v41  ;;  %5262 = vlog2.f32 %v3700_v23  ;;  %vm7787_vm6 = vmand %vm2392_vm7, %vm2408_vm1  ;;  %v2380_v41 = vadd.f32 %v2379_v6, %v7780_v22 }
 0x3a7   :  { %v5257_v32 = vpop.eup %5256  ;;  %v3654_v59 = vmul.f32 0.6931472, %v5255_v49  ;;  %v3671_v25 = vadd.f32 %v3650_v15, %v3543_v53  ;;  %v2440_v0 = vsel %vm7787_vm6, 1.0, %v8267_v19  ;;  %vm2445_vm10 = vcmp.gt.f32.partialorder %v2319_v31, 0.0 }
 0x3a8   :  { %v2179_v30 = vpop.xlane.xlu0 %2178  ;;  %v5259_v29 = vpop.eup %5258  ;;  %v3656_v51 = vmul.f32 0.6931472, %v5257_v32  ;;  %v3672_v50 = vadd.f32 %v3652_v54, %v3544_v14  ;;  %v3784_v17 = vsel %vm3721_vm8, %v2440_v0, 0.0  ;;  %vm2446_vm13 = vcmp.lt.f32.partialorder %v2380_v41, 128.0 }
 0x3a9   :  { %v3673_v26 = vadd.f32 %v3654_v59, %v3545_v7  ;;  %v3658_v1 = vmul.f32 0.6931472, %v5259_v29  ;;  %vm2393_vm12 = vcmp.gt.f32.partialorder %v2179_v30, 0.0  ;;  %v3688_v33 = vmul.f32 0.025, %v3671_v25  ;;  %v5261_v56 = vpop.eup %5260  ;;  %vm2447_vm2 = vmand %vm2445_vm10, %vm2446_vm13 }
 0x3aa   :  { %v3674_v45 = vadd.f32 %v3656_v51, %v3546_v18  ;;  %v3689_v57 = vmul.f32 0.025, %v3672_v50  ;;  %v3660_v30 = vmul.f32 0.6931472, %v5261_v56  ;;  %v3695_v7 = vmax.f32 %v7718_v62, 0.0 }
 0x3ab   :  { %v3715_v21 = vmul.f32 %v3688_v33, %v2439_v27  ;;  %v3690_v63 = vmul.f32 0.025, %v3673_v26  ;;  %v3675_v9 = vadd.f32 %v3658_v1, %v3547_v20  ;;  %v2448_v62 = vsel %vm2447_vm2, 1.0, %v8267_v19 }
 0x3ac   :  { %v2249_v39 = vpop.xlane.xlu0 %2248  ;;  %v3716_v34 = vmul.f32 %v3689_v57, %v2440_v0  ;;  %v3691_v37 = vmul.f32 0.025, %v3674_v45  ;;  %v3676_v54 = vadd.f32 %v3660_v30, %v3548_v12  ;;  %vm3807_vm6 = vcmask 1040384  }
 0x3ad   :  { %vm2409_vm5 = vcmp.lt.f32.partialorder %v2249_v39, 128.0  ;;  %v3741_v3 = vsel %vm3721_vm8, %v3715_v21, 0.0  ;;  %v3783_v39 = vadd.f32 %v3782_v36, %v3781_v46  ;;  %v3692_v15 = vmul.f32 0.025, %v3675_v9 }
 0x3ae   :  { %vm2425_vm3 = vmand %vm2393_vm12, %vm2409_vm5  ;;  %v3743_v48 = vsel %vm3721_vm8, %v3716_v34, 0.0  ;;  %v3693_v50 = vmul.f32 0.025, %v3676_v54  ;;  %v3819_v56 = vsel %vm3807_vm6, %v2448_v62, 0.0 }
 0x3af   :  { %v2441_v13 = vsel %vm2425_vm3, 1.0, %v8267_v19  ;;  %v3785_v32 = vadd.f32 %v3784_v17, %v3783_v39 }
 0x3b0   :  { %v2182_v35 = vpop.xlane.xlu0 %2181  ;;  %v5263_v8 = vpop.eup %5262  ;;  %v3717_v42 = vmul.f32 %v3690_v63, %v2441_v13  ;;  %v3786_v23 = vsel %vm3721_vm8, %v2441_v13, 0.0 }
 0x3b1   :  { %vm2394_vm4 = vcmp.gt.f32.partialorder %v2182_v35, 0.0  ;;  %v3742_v35 = vadd.f32 %v3741_v3, %v7774_v40  ;;  %v3702_v53 = vmul.f32 0.6931472, %v5263_v8  ;;  %v3787_v22 = vadd.f32 %v3786_v23, %v3785_v32 }
 0x3b2   :  { %v3745_v59 = vsel %vm3721_vm8, %v3717_v42, 0.0 }
 0x3b3   :  { %v3744_v11 = vadd.f32 %v3743_v48, %v3742_v35  ;;  %v3703_v43 = vadd.f32 %v3702_v53, %v3695_v7 }
 0x3b4   :  { %v2252_v5 = vpop.xlane.xlu0 %2251 }
 0x3b5   :  { %vm2410_vm11 = vcmp.lt.f32.partialorder %v2252_v5, 128.0  ;;  %v3746_v40 = vadd.f32 %v3745_v59, %v3744_v11  ;;  %v3704_v45 = vmul.f32 0.025, %v3703_v43 }
 0x3b6   :  { %vm2426_vm14 = vmand %vm2394_vm4, %vm2410_vm11 }
 0x3b7   :  { %v2442_v24 = vsel %vm2426_vm14, 1.0, %v8267_v19  ;;  %v3806_v6 = vmul.f32 %v3704_v45, %v2448_v62 }
 0x3b8   :  { %v2185_v61 = vpop.xlane.xlu0 %2184  ;;  %v3718_v49 = vmul.f32 %v3691_v37, %v2442_v24  ;;  %v3788_v2 = vsel %vm3721_vm8, %v2442_v24, 0.0 }
 0x3b9   :  { %vm2395_vm0 = vcmp.gt.f32.partialorder %v2185_v61, 0.0  ;;  %v3789_v5 = vadd.f32 %v3788_v2, %v3787_v22  ;;  %v3808_v57 = vsel %vm3807_vm6, %v3806_v6, 0.0 }
 0x3ba   :  { %v3747_v14 = vsel %vm3721_vm8, %v3718_v49, 0.0 }
 0x3bb   :  { %v3748_v26 = vadd.f32 %v3747_v14, %v3746_v40 }
 0x3bc   :  { %v2255_v28 = vpop.xlane.xlu0 %2254 }
 0x3bd   :  { %vm2411_vm15 = vcmp.lt.f32.partialorder %v2255_v28, 128.0 }
 0x3be   :  { %vm2427_vm9 = vmand %vm2395_vm0, %vm2411_vm15 }
 0x3bf   :  { %v2443_v38 = vsel %vm2427_vm9, 1.0, %v8267_v19 }
 0x3c0   :  { %v2188_v60 = vpop.xlane.xlu0 %2187  ;;  %v3719_v29 = vmul.f32 %v3692_v15, %v2443_v38  ;;  %v3790_v4 = vsel %vm3721_vm8, %v2443_v38, 0.0 }
 0x3c1   :  { %vm2396_vm7 = vcmp.gt.f32.partialorder %v2188_v60, 0.0  ;;  %v3791_v18 = vadd.f32 %v3790_v4, %v3789_v5 }
 0x3c2   :  { %v3749_v51 = vsel %vm3721_vm8, %v3719_v29, 0.0 }
 0x3c3   :  { %v3750_v27 = vadd.f32 %v3749_v51, %v3748_v26 }
 0x3c4   :  { %v2258_v25 = vpop.xlane.xlu0 %2257 }
 0x3c5   :  { %vm2412_vm1 = vcmp.lt.f32.partialorder %v2258_v25, 128.0 }
 0x3c6   :  { %vm2428_vm5 = vmand %vm2396_vm7, %vm2412_vm1 }
 0x3c7   :  { %v2444_v1 = vsel %vm2428_vm5, 1.0, %v8267_v19 }
 0x3c8   :  { %v3720_v58 = vmul.f32 %v3693_v50, %v2444_v1  ;;  %v3792_v10 = vsel %vm3721_vm8, %v2444_v1, 0.0 }
 0x3c9   :  { %v3793_v16 = vadd.f32 %v3792_v10, %v3791_v18 }
 0x3ca   :  { %v3751_v33 = vsel %vm3721_vm8, %v3720_v58, 0.0  ;;  %vm3834_vm8 = vcmask 0  }
 0x3cb   :  { %3794 = vadd.xlane.f32.xlu1 %v3793_v16  ;;  %v3752_v61 = vadd.f32 %v3751_v33, %v3750_v27 }
 0x3cd   :  { %3753 = vadd.xlane.f32.xlu0 %v3752_v61 }
 0x3cf   :  { %3820 = vadd.xlane.f32.xlu1 %v3819_v56 }
 0x3d1   :  { %3809 = vadd.xlane.f32.xlu0 %v3808_v57 }
 0x458   :  { %v3795_v0 = vpop.xlane.xlu1 %3794 }
 0x459   :  { %v3796_v20 = vrot.slane %v3795_v0, 4 }
 0x45a   :  { %v3754_v52 = vpop.xlane.xlu0 %3753 }
 0x45b   :  { %v3797_v44 = vadd.f32 %v3796_v20, %v3795_v0  ;;  %v3755_v21 = vrot.slane %v3754_v52, 4 }
 0x45c   :  { %v3821_v55 = vpop.xlane.xlu1 %3820 }
 0x45d   :  { %v3798_v47 = vrot.slane %v3797_v44, 2  ;;  %v3756_v19 = vadd.f32 %v3755_v21, %v3754_v52  ;;  %v3822_v13 = vrot.slane %v3821_v55, 4 }
 0x45e   :  { %v3810_v63 = vpop.xlane.xlu0 %3809 }
 0x45f   :  { %v3757_v9 = vrot.slane %v3756_v19, 2  ;;  %v3823_v8 = vadd.f32 %v3822_v13, %v3821_v55  ;;  %v3811_v36 = vrot.slane %v3810_v63, 4  ;;  %v3799_v34 = vadd.f32 %v3798_v47, %v3797_v44 }
 0x461   :  { %v3824_v37 = vrot.slane %v3823_v8, 2  ;;  %v3812_v28 = vadd.f32 %v3811_v36, %v3810_v63  ;;  %v3758_v30 = vadd.f32 %v3757_v9, %v3756_v19  ;;  %v3800_v46 = vrot.slane %v3799_v34, 1 }
 0x463   :  { %v3825_v24 = vadd.f32 %v3824_v37, %v3823_v8  ;;  %v3813_v3 = vrot.slane %v3812_v28, 2  ;;  %v3759_v17 = vrot.slane %v3758_v30, 1  ;;  %v3801_v39 = vadd.f32 %v3800_v46, %v3799_v34 }
 0x465   :  { %v3814_v42 = vadd.f32 %v3813_v3, %v3812_v28  ;;  %v3760_v31 = vadd.f32 %v3759_v17, %v3758_v30  ;;  %v3826_v38 = vrot.slane %v3825_v24, 1 }
 0x467   :  { %4899 = vpush %v3760_v31  ;;  %v3815_v12 = vrot.slane %v3814_v42, 1  ;;  %v3827_v48 = vadd.f32 %v3826_v38, %v3825_v24 }
 0x468   :  { %4901 = vpush %v3801_v39 }
 0x469   :  { %v3816_v41 = vadd.f32 %v3815_v12, %v3814_v42 }
 0x46b   :  { %4903 = vpush %v3816_v41 }
 0x46c   :  { %4905 = vpush %v3827_v48 }
 0x498   :  { %s4900_s4 = spop %4899 }
 0x499   :  { %s4902_s5 = spop %4901  ;;  %v3762_v35 = vstv %s4900_s4 }
 0x49a   :  { %v3803_v23 = vstv %s4902_s5 }
 0x49b   :  { %5264 = vrcp.f32 %v3803_v23 }
 0x49c   :  { %s4904_s17 = spop %4903 }
 0x49d   :  { %s4906_s18 = spop %4905  ;;  %v3818_v32 = vstv %s4904_s17 }
 0x49e   :  { %v3829_v49 = vstv %s4906_s18 }
 0x49f   :  { %5266 = vrcp.f32 %v3829_v49 }
 0x4a5   :  { %v5265_v15 = vpop.eup %5264 }
 0x4a6   :  { %v3805_v54 = vmul.f32 %v5265_v15, %v3762_v35 }
 0x4a9   :  { %v5267_v60 = vpop.eup %5266 }
 0x4aa   :  { %v3831_v53 = vmul.f32 %v5267_v60, %v3818_v32 }
 0x4ac   :  { %v3832_v59 = vadd.f32 %v3831_v53, %v3805_v54 }
 0x4ae   :  { %v3833_v2 = vmul.f32 0.5, %v3832_v59 }
 0x4b0   :  { %3835 = vst.msk [vmem:[#allocation2] sm:$0x1] %vm3834_vm8, %v3833_v2 }
 0x4b1   :  { %5279 = shalt.err (!%p5276_p4)
}
 0x4b2   :  { %s5280_s25 = scalar_lea.hbm %s7842_s6, 16 }
 0x4b3   :  { %p5281_p5 = scmp.ne.s32.totalorder %s7842_s6, %s5280_s25  ;;  %p5284_p6 = scmp.lt.u32.totalorder %s5280_s25, %s7842_s6 }
 0x4b5   :  { %p5286_p7 = pnand %p5284_p6, %p5281_p5 }
 0x4b7   :  { %5289 = shalt.err (!%p5286_p7)
}
 0x4b8   :  { %3845 = dma.vmem_to_hbm [thread:$0]  %s3843_s20, 16, %s7842_s6, [#allocation3]  }
 0x4b9   :  { %5290 = dma.done.wait [#allocation3], 16  }
 0x4ba   :  { %5291 = vsyncadd [#allocation3], 4294967280 }
 0x4bb   :  { %3849 = vsyncpa [#allocation3], 1 }

</bundles_post_ra>
